<compile_context>
chip_gen: v7x
topology: tpu7x:2x2x1
jax: 0.10.0
libtpu: 0.0.40
codegen_flags: <defaults>
</compile_context>

<pallas_src>
import functools

import numpy as np
import jax
import jax.numpy as jnp
from jax.experimental import pallas as pl
from jax.experimental.pallas import tpu as pltpu


# ----------------------------------------------------------------------------
# Synthetic "config" / DATASETS_INFO replacement (deterministic, in-script).
# ----------------------------------------------------------------------------
CONFIG = {
    "num_all_classes": 4,      # last class (id 3) plays the role of the 255/ignore class
    "num_real_classes": 3,
    "ignore_class": 3,
    "temperature": 0.5,
    "base_temperature": 1.0,   # unused: reference get_loss() applies no scaling
    "min_views_per_class": 5,
    "max_views_per_class": 2500,
    "max_features_total": 10000,
    "label_scaling_mode": "nn",
    "cross_scale_contrast": False,
}

_MP_BUCKET = 512     # anchor-count bucket (avoids per-batch recompiles)
_BW_BUCKET = 512     # positive-band width bucket


def _round_up(x, m):
    return ((x + m - 1) // m) * m


def _hw_params():
    """Generation-aware VMEM budget: big-VMEM parts (v5e/v6e, 128 MiB) get a
    ~96 MiB limit and larger row tiles; 64-MiB parts (v7x) get ~44 MiB."""
    vmem_cap = 64 * 1024 * 1024
    try:
        vmem_cap = int(pltpu.get_tpu_info().vmem_capacity_bytes)
    except Exception:
        pass
    big_vmem = vmem_cap >= 96 * 1024 * 1024
    vmem_limit = (96 if big_vmem else 44) * 1024 * 1024
    return big_vmem, vmem_limit


def _pick_tile_rows(mp_est, n_classes, big_vmem):
    """Largest row tile that (a) keeps the live (TM, Mp) f32 strips inside the
    generation's VMEM budget and (b) keeps the per-class padding (class blocks
    are padded to TM multiples) a small fraction of the problem."""
    if big_vmem:                       # v5e / v6e: 128 MiB VMEM
        cands = (512, 256, 128) if mp_est <= 8192 else (256, 128)
    else:                              # v7x: 64 MiB VMEM per TensorCore
        if mp_est <= 2048:
            cands = (512, 256, 128)
        elif mp_est <= 4096:
            cands = (256, 128)
        else:
            cands = (128,)
    waste_budget = max(512, mp_est // 16)
    for t in cands:
        if n_classes * t <= waste_budget:
            return t
    return 128


# ----------------------------------------------------------------------------
# Pallas kernel: one (TM, Mp) strip of the supervised contrastive loss with a
# band-limited positive pass.
# ----------------------------------------------------------------------------
def _contrastive_tile_kernel(bs_ref, cs_ref, cc_ref,               # SMEM prefetch
                             lhs_ref, rhsT_ref, feats_ref,         # VMEM inputs
                             labr_ref, labc_ref, out_ref,
                             *, tm, bw, inv_temperature):
    i = pl.program_id(0)
    band_start = pl.multiple_of(bs_ref[i], 128)   # 128-aligned by construction
    cls_start = cs_ref[i]                         # class block start (columns)
    cls_count = cc_ref[i]                         # real anchors in this class

    lhs = lhs_ref[...]                            # (TM, Cp) bf16 anchor strip
    lab_r = labr_ref[...]                         # (1, Mp) int32, -1 == padding
    lab_c = labc_ref[...]                         # (TM, 1) int32

    # ---- full-width denominator pass: NN matmul on the MXU, exp on the EUP --
    logits = jnp.dot(lhs, rhsT_ref[...], preferred_element_type=jnp.float32)
    logits = logits * inv_temperature                         # (TM, Mp) f32
    # Row-max shift cancels exactly in the final expression; keeps exp() well
    # conditioned at small temperatures.
    row_max = jnp.max(logits, axis=1, keepdims=True)          # (TM, 1)
    exp_l = jnp.exp(logits - row_max)                         # (TM, Mp)  EUP
    # Column validity / negatives come straight from the padded labels
    # (no full-width iota materialization).
    neg_mask = jnp.logical_and(lab_c != lab_r, lab_r >= 0)    # (TM, Mp) bool
    neg_sum = jnp.sum(jnp.where(neg_mask, exp_l, 0.0), axis=1, keepdims=True)

    # ---- band-limited positive pass ----------------------------------------
    # All valid rows of this tile share one class block, so every positive
    # column lies in [cls_start, cls_start + cls_count) which is covered by the
    # static-width band [band_start, band_start + bw).
    band_feats = feats_ref[pl.ds(band_start, bw), :]          # (BW, Cp) bf16
    band_logits = jax.lax.dot_general(
        lhs, band_feats,
        dimension_numbers=(((1,), (1,)), ((), ())),           # NT contraction
        preferred_element_type=jnp.float32) * inv_temperature # (TM, BW)
    band_shift = band_logits - row_max
    log_prob = band_shift - jnp.log(jnp.exp(band_shift) + neg_sum)   # (TM, BW)

    abs_col = jax.lax.broadcasted_iota(jnp.int32, (1, bw), 1) + band_start
    abs_row = jax.lax.broadcasted_iota(jnp.int32, (tm, 1), 0) + i * tm
    in_class = jnp.logical_and(abs_col >= cls_start,
                               abs_col < cls_start + cls_count)
    pos_mask = jnp.logical_and(in_class, abs_col != abs_row)  # (TM, BW)
    pos_lp = jnp.sum(jnp.where(pos_mask, log_prob, 0.0), axis=1, keepdims=True)

    # Every valid row has exactly (cls_count - 1) positives (self excluded).
    denom = jnp.maximum(cls_count - 1, 1).astype(jnp.float32)
    has_pos = cls_count > 1          # guard: reference would be 0/0 here
    row_valid = lab_c >= 0
    row_loss = jnp.where(jnp.logical_and(row_valid, has_pos),
                         -(pos_lp / denom), 0.0)              # (TM, 1)

    # Tiny lane-dense per-tile partial sum; wrapper sums element [0, 0].
    out_ref[...] = jnp.broadcast_to(jnp.sum(row_loss),
                                    (1, 8, 128)).astype(jnp.float32)


def contrastive_loss_pallas(feats_flat, labels_flat, temperature):
    """feats_flat: (M, C) float32 numpy; labels_flat: (M,) int numpy.
    Returns the scalar supervised-contrastive loss.  The loss is invariant to a
    joint row/column permutation of the anchors, which we exploit by sorting
    anchors by class so every class occupies one contiguous column block."""
    feats = np.asarray(feats_flat, np.float32)
    labels = np.asarray(labels_flat, np.int64).reshape(-1)
    m, c = feats.shape
    if m == 0:
        return jnp.asarray(0.0, jnp.float32)

    big_vmem, vmem_limit = _hw_params()

    # --- host-side layout: sort by class, pad class blocks to TM multiples ---
    order = np.argsort(labels, kind="stable")
    feats_sorted = feats[order]
    labels_sorted = labels[order]
    uniq, counts = np.unique(labels_sorted, return_counts=True)

    mp_est = _round_up(max(m, _MP_BUCKET), _MP_BUCKET)
    tm = _pick_tile_rows(mp_est, len(uniq), big_vmem)

    block_starts = []
    off = 0
    for cnt in counts:
        block_starts.append(off)
        off += _round_up(int(cnt), tm)
    m_padded = off
    mp = _round_up(max(m_padded, _MP_BUCKET), _MP_BUCKET)      # bucketed
    cp = _round_up(max(c, 128), 128)                           # 128-aligned K
    bw = min(mp, _round_up(int(counts.max()), _BW_BUCKET))     # bucketed band

    f_host = np.zeros((mp, c), np.float32)                     # pad rows = 0
    lab_host = np.full((mp,), -1, np.int32)                    # pad label = -1
    src = 0
    for blk, cnt, cls in zip(block_starts, counts, uniq):
        cnt = int(cnt)
        f_host[blk:blk + cnt] = feats_sorted[src:src + cnt]
        lab_host[blk:blk + cnt] = int(cls)
        src += cnt

    num_tiles = mp // tm
    band_starts = np.zeros((num_tiles,), np.int32)
    cls_starts = np.zeros((num_tiles,), np.int32)
    cls_counts = np.zeros((num_tiles,), np.int32)
    for blk, cnt in zip(block_starts, counts):
        cnt = int(cnt)
        t0 = blk // tm
        t1 = (blk + _round_up(cnt, tm)) // tm
        band_starts[t0:t1] = min(blk, mp - bw)   # keeps the band in-bounds
        cls_starts[t0:t1] = blk
        cls_counts[t0:t1] = cnt

    # --- device side: hoisted L2 norm (== F.normalize eps=1e-12) + padding ---
    f_dev = jnp.asarray(f_host)
    sumsq = jnp.sum(f_dev * f_dev, axis=1, keepdims=True)
    fn = f_dev * jax.lax.rsqrt(jnp.maximum(sumsq, 1e-24))
    f_pad = jnp.pad(fn, ((0, 0), (0, cp - c))).astype(jnp.bfloat16)   # (Mp, Cp)
    ft_pad = f_pad.T                                                  # (Cp, Mp)
    lab_row = jnp.asarray(lab_host).reshape(1, mp)
    lab_col = jnp.asarray(lab_host).reshape(mp, 1)

    kernel = functools.partial(
        _contrastive_tile_kernel,
        tm=tm, bw=bw, inv_temperature=1.0 / float(temperature))

    # TODO(synk): mark the resident inputs (ft_pad / f_pad / lab_row) with
    # pipeline_mode=pl.Buffered(1) once single-buffered constant blocks are
    # verified on the target jaxlib; their index_map is constant so default
    # double-buffering only wastes VMEM.
    # TODO(synk): for Mp far beyond the configured max_features_total=10000 on
    # 64-MiB-VMEM parts, add an inner column-chunked online-softmax pass so at
    # most one (TM, TN) logits block is live; at Mp<=~12k a single strip fits.
    out = pl.pallas_call(
        kernel,
        out_shape=jax.ShapeDtypeStruct((num_tiles, 8, 128), jnp.float32),
        grid_spec=pltpu.PrefetchScalarGridSpec(
            num_scalar_prefetch=3,
            grid=(num_tiles,),
            in_specs=[
                pl.BlockSpec((tm, cp), lambda i, b, s, n: (i, 0)),   # anchor row strip
                pl.BlockSpec((cp, mp), lambda i, b, s, n: (0, 0)),   # resident feats^T (NN matmul)
                pl.BlockSpec((mp, cp), lambda i, b, s, n: (0, 0)),   # resident feats (band slice)
                pl.BlockSpec((1, mp), lambda i, b, s, n: (0, 0)),    # label row (resident)
                pl.BlockSpec((tm, 1), lambda i, b, s, n: (i, 0)),    # label column strip
            ],
            out_specs=pl.BlockSpec((1, 8, 128), lambda i, b, s, n: (i, 0, 0)),
        ),
        compiler_params=pltpu.CompilerParams(
            dimension_semantics=("parallel",),     # megacore sharding on v7x
            vmem_limit_bytes=vmem_limit,
        ),
    )(jnp.asarray(band_starts), jnp.asarray(cls_starts), jnp.asarray(cls_counts),
      f_pad, ft_pad, f_pad, lab_row, lab_col)

    # NOTE: the reference get_loss() has no (temperature/base_temperature)
    # scaling, so none is applied here.
    return jnp.sum(out[:, 0, 0]) / jnp.float32(m)


# ----------------------------------------------------------------------------
# Host-side glue replicating the module's forward (no_grad preprocessing).
# ----------------------------------------------------------------------------
def _get_dist_and_classes_nn(label, scale):
    # torch nearest-neighbour downsample with exact integer ratio == strided slice
    lbl_down = label[:, ::scale, ::scale]                     # (N, h, w)
    return lbl_down, lbl_down


def _select_views_per_class(min_views, total_cls, cfg):
    if cfg["max_views_per_class"] == 1:
        views = min_views
    else:
        views = min(min_views, cfg["max_views_per_class"])
    if views * total_cls > cfg["max_features_total"]:
        views = cfg["max_features_total"] // total_cls
    return int(views)


def _sample_anchors_fast(dominant_classes, features, cfg, rng):
    # dominant_classes: (N, h, w) int; features: (N, C, h, w) float32
    n = dominant_classes.shape[0]
    c = features.shape[1]
    feats = np.asarray(features).reshape(n, c, -1)
    dom = np.asarray(dominant_classes).reshape(n, -1)

    classes = np.arange(cfg["num_all_classes"])
    compare = dom[:, :, None] == classes[None, None, :]       # (N, P, K)
    cls_counts = compare.sum(1)                               # (N, K)
    batch_inds, cls_in_batch = np.where(
        cls_counts[:, :-1] >= cfg["min_views_per_class"])
    if batch_inds.shape[0] == 0:
        return None, None, True
    min_views = int(cls_counts[batch_inds, cls_in_batch].min())
    total_cls = int(cls_in_batch.shape[0])
    views = _select_views_per_class(min_views, total_cls, cfg)

    sampled_features = np.zeros((total_cls, c, views), np.float32)
    sampled_labels = np.zeros((total_cls,), np.int32)
    for i in range(total_cls):
        idx = np.nonzero(compare[batch_inds[i], :, cls_in_batch[i]])[0]
        # TODO(synk): torch.randperm's exact RNG stream cannot be reproduced;
        # a deterministic numpy permutation is used instead.
        perm = rng.permutation(idx.shape[0])
        sel = idx[perm[:views]]
        sampled_features[i] = feats[batch_inds[i]][:, sel]
        sampled_labels[i] = int(cls_in_batch[i])
    return sampled_features, sampled_labels, False


def dense_contrastive_loss_v2_forward(label, features, cfg):
    """label: (N, H, W) int; features: (N, C, h, w) float32. Returns scalar loss."""
    scale = int(label.shape[-1] // features.shape[-1])
    _, dominant_classes = _get_dist_and_classes_nn(np.asarray(label), scale)

    rng = np.random.RandomState(0)
    sampled_features, sampled_labels, flag_error = _sample_anchors_fast(
        dominant_classes, np.asarray(features), cfg, rng)

    if flag_error:
        # loss = (features - features).mean() == 0
        return jnp.asarray(0.0, jnp.float32)

    # contrastive_loss: feats (T, C, V) -> transpose -> flatten to (T*V, C)
    t, c, v = sampled_features.shape
    feats_flat = np.transpose(sampled_features, (0, 2, 1)).reshape(t * v, c)
    labels_flat = np.repeat(sampled_labels, v).astype(np.int32)
    return contrastive_loss_pallas(feats_flat, labels_flat, cfg["temperature"])


# ----------------------------------------------------------------------------
# Main
# ----------------------------------------------------------------------------
if __name__ == "__main__":
    key = jax.random.PRNGKey(0)
    k_lbl, k_feat = jax.random.split(key)

    N, C, H, W = 2, 4, 16, 16
    h, w = 8, 8                                   # feature spatial size -> scale = 2

    label = jax.random.randint(k_lbl, (N, H, W), 0, CONFIG["num_all_classes"],
                               dtype=jnp.int32)
    features = jax.random.normal(k_feat, (N, C, h, w), dtype=jnp.float32)

    loss = dense_contrastive_loss_v2_forward(label, features, CONFIG)
    loss = jax.block_until_ready(loss)
    assert bool(jnp.isfinite(loss)), "loss is not finite"
    print("KERNEL_OK")
</pallas_src>

<mosaic_0001>
module attributes {stable_mosaic.version = 11 : i64} {
  func.func @_contrastive_tile_kernel(%arg0: i32, %arg1: memref<4xi32, #tpu.memory_space<smem>>, %arg2: memref<4xi32, #tpu.memory_space<smem>>, %arg3: memref<4xi32, #tpu.memory_space<smem>>, %arg4: memref<128x128xbf16, #tpu.memory_space<vmem>>, %arg5: memref<128x512xbf16, #tpu.memory_space<vmem>>, %arg6: memref<512x128xbf16, #tpu.memory_space<vmem>>, %arg7: memref<1x512xi32, #tpu.memory_space<vmem>>, %arg8: memref<128x1xi32, #tpu.memory_space<vmem>>, %arg9: memref<1x8x128xf32, #tpu.memory_space<vmem>>) attributes {dimension_semantics = [#tpu.dimension_semantics<parallel>], iteration_bounds = array<i64: 4>, scalar_prefetch = 3 : i64, scratch_operands = 0 : i64, tpu.core_type = #tpu.core_type<tc>, window_params = [{transform_indices = @transform_0, window_bounds = array<i64: 128, 128>}, {pipeline_mode = #tpu.pipeline_mode<synchronous>, transform_indices = @transform_1, window_bounds = array<i64: 128, 512>}, {pipeline_mode = #tpu.pipeline_mode<synchronous>, transform_indices = @transform_2, window_bounds = array<i64: 512, 128>}, {pipeline_mode = #tpu.pipeline_mode<synchronous>, transform_indices = @transform_3, window_bounds = array<i64: 1, 512>}, {transform_indices = @transform_4, window_bounds = array<i64: 128, 1>}, {transform_indices = @transform_5, window_bounds = array<i64: 1, 8, 128>}]} {
    %0 = arith.index_cast %arg0 : i32 to index
    %1 = memref.load %arg1[%0] : memref<4xi32, #tpu.memory_space<smem>>
    %2 = tpu.assume_multiple %1, 128 : i32
    %3 = arith.index_cast %arg0 : i32 to index
    %4 = memref.load %arg2[%3] : memref<4xi32, #tpu.memory_space<smem>>
    %5 = arith.index_cast %arg0 : i32 to index
    %6 = memref.load %arg3[%5] : memref<4xi32, #tpu.memory_space<smem>>
    %c0 = arith.constant 0 : index
    %c0_0 = arith.constant 0 : index
    %7 = vector.load %arg4[%c0, %c0_0] : memref<128x128xbf16, #tpu.memory_space<vmem>>, vector<128x128xbf16>
    %c0_1 = arith.constant 0 : index
    %c0_2 = arith.constant 0 : index
    %8 = vector.load %arg7[%c0_1, %c0_2] : memref<1x512xi32, #tpu.memory_space<vmem>>, vector<1x512xi32>
    %c0_3 = arith.constant 0 : index
    %c0_4 = arith.constant 0 : index
    %9 = vector.load %arg8[%c0_3, %c0_4] : memref<128x1xi32, #tpu.memory_space<vmem>>, vector<128x1xi32>
    %c0_5 = arith.constant 0 : index
    %c0_6 = arith.constant 0 : index
    %10 = vector.load %arg5[%c0_5, %c0_6] : memref<128x512xbf16, #tpu.memory_space<vmem>>, vector<128x512xbf16>
    %cst = arith.constant dense<0.000000e+00> : vector<128x512xf32>
    %11 = tpu.matmul %7, %10, %cst {dimension_numbers = #tpu.dot_dimension_numbers<[1], [0], [0], [1], [0, 0, 1, 1], [], []>} : vector<128x128xbf16>, vector<128x512xbf16>, vector<128x512xf32> -> vector<128x512xf32>
    %cst_7 = arith.constant 2.000000e+00 : f32
    %12 = vector.broadcast %cst_7 : f32 to vector<128x512xf32>
    %13 = arith.mulf %11, %12 : vector<128x512xf32>
    %cst_8 = arith.constant dense<0xFF800000> : vector<128xf32>
    %14 = vector.multi_reduction <maximumf>, %13, %cst_8 [1] : vector<128x512xf32> to vector<128xf32>
    %15 = vector.shape_cast %14 : vector<128xf32> to vector<128x1xf32>
    %16 = vector.broadcast %15 : vector<128x1xf32> to vector<128x512xf32>
    %17 = arith.subf %13, %16 : vector<128x512xf32>
    %18 = math.exp %17 : vector<128x512xf32>
    %19 = vector.broadcast %9 : vector<128x1xi32> to vector<128x512xi32>
    %20 = vector.broadcast %8 : vector<1x512xi32> to vector<128x512xi32>
    %21 = arith.cmpi ne, %19, %20 : vector<128x512xi32>
    %c0_i32 = arith.constant 0 : i32
    %22 = vector.broadcast %c0_i32 : i32 to vector<1x512xi32>
    %23 = arith.cmpi sge, %8, %22 : vector<1x512xi32>
    %24 = vector.broadcast %23 : vector<1x512xi1> to vector<128x512xi1>
    %25 = arith.andi %21, %24 : vector<128x512xi1>
    %cst_9 = arith.constant 0.000000e+00 : f32
    %26 = vector.broadcast %cst_9 : f32 to vector<128x512xf32>
    %27 = arith.select %25, %18, %26 : vector<128x512xi1>, vector<128x512xf32>
    %cst_10 = arith.constant dense<0.000000e+00> : vector<128xf32>
    %28 = vector.multi_reduction <add>, %27, %cst_10 [1] : vector<128x512xf32> to vector<128xf32>
    %29 = vector.shape_cast %28 : vector<128xf32> to vector<128x1xf32>
    %30 = arith.index_cast %2 : i32 to index
    %c0_11 = arith.constant 0 : index
    %31 = vector.load %arg6[%30, %c0_11] : memref<512x128xbf16, #tpu.memory_space<vmem>>, vector<512x128xbf16>
    %cst_12 = arith.constant dense<0.000000e+00> : vector<128x512xf32>
    %32 = tpu.matmul %7, %31, %cst_12 {dimension_numbers = #tpu.dot_dimension_numbers<[1], [1], [0], [0], [0, 0, 1, 0], [], []>} : vector<128x128xbf16>, vector<512x128xbf16>, vector<128x512xf32> -> vector<128x512xf32>
    %cst_13 = arith.constant 2.000000e+00 : f32
    %33 = vector.broadcast %cst_13 : f32 to vector<128x512xf32>
    %34 = arith.mulf %32, %33 : vector<128x512xf32>
    %35 = vector.broadcast %15 : vector<128x1xf32> to vector<128x512xf32>
    %36 = arith.subf %34, %35 : vector<128x512xf32>
    %37 = math.exp %36 : vector<128x512xf32>
    %38 = vector.broadcast %29 : vector<128x1xf32> to vector<128x512xf32>
    %39 = arith.addf %37, %38 : vector<128x512xf32>
    %40 = math.log %39 : vector<128x512xf32>
    %41 = arith.subf %36, %40 : vector<128x512xf32>
    %42 = tpu.iota {dimensions = array<i32: 1>} : vector<1x512xi32>
    %43 = vector.broadcast %2 : i32 to vector<1x512xi32>
    %44 = arith.addi %42, %43 : vector<1x512xi32>
    %45 = tpu.iota {dimensions = array<i32: 0>} : vector<128x1xi32>
    %c128_i32 = arith.constant 128 : i32
    %46 = arith.muli %arg0, %c128_i32 : i32
    %47 = vector.broadcast %46 : i32 to vector<128x1xi32>
    %48 = arith.addi %45, %47 : vector<128x1xi32>
    %49 = vector.broadcast %4 : i32 to vector<1x512xi32>
    %50 = arith.cmpi sge, %44, %49 : vector<1x512xi32>
    %51 = arith.addi %4, %6 : i32
    %52 = vector.broadcast %51 : i32 to vector<1x512xi32>
    %53 = arith.cmpi slt, %44, %52 : vector<1x512xi32>
    %54 = arith.andi %50, %53 : vector<1x512xi1>
    %55 = vector.broadcast %44 : vector<1x512xi32> to vector<128x512xi32>
    %56 = vector.broadcast %48 : vector<128x1xi32> to vector<128x512xi32>
    %57 = arith.cmpi ne, %55, %56 : vector<128x512xi32>
    %58 = vector.broadcast %54 : vector<1x512xi1> to vector<128x512xi1>
    %59 = arith.andi %58, %57 : vector<128x512xi1>
    %cst_14 = arith.constant 0.000000e+00 : f32
    %60 = vector.broadcast %cst_14 : f32 to vector<128x512xf32>
    %61 = arith.select %59, %41, %60 : vector<128x512xi1>, vector<128x512xf32>
    %cst_15 = arith.constant dense<0.000000e+00> : vector<128xf32>
    %62 = vector.multi_reduction <add>, %61, %cst_15 [1] : vector<128x512xf32> to vector<128xf32>
    %63 = vector.shape_cast %62 : vector<128xf32> to vector<128x1xf32>
    %c1_i32 = arith.constant 1 : i32
    %64 = arith.subi %6, %c1_i32 : i32
    %c1_i32_16 = arith.constant 1 : i32
    %65 = arith.maxsi %64, %c1_i32_16 : i32
    %66 = arith.sitofp %65 : i32 to f32
    %c1_i32_17 = arith.constant 1 : i32
    %67 = arith.cmpi sgt, %6, %c1_i32_17 : i32
    %c0_i32_18 = arith.constant 0 : i32
    %68 = vector.broadcast %c0_i32_18 : i32 to vector<128x1xi32>
    %69 = arith.cmpi sge, %9, %68 : vector<128x1xi32>
    %70 = vector.broadcast %67 : i1 to vector<128x1xi1>
    %71 = arith.andi %69, %70 : vector<128x1xi1>
    %72 = vector.broadcast %66 : f32 to vector<128x1xf32>
    %73 = arith.divf %63, %72 : vector<128x1xf32>
    %cst_19 = arith.constant 0.000000e+00 : f32
    %74 = vector.broadcast %cst_19 : f32 to vector<128x1xf32>
    %75 = arith.subf %74, %73 : vector<128x1xf32>
    %cst_20 = arith.constant 0.000000e+00 : f32
    %76 = vector.broadcast %cst_20 : f32 to vector<128x1xf32>
    %77 = arith.select %71, %75, %76 : vector<128x1xi1>, vector<128x1xf32>
    %78 = vector.shape_cast %77 : vector<128x1xf32> to vector<1x128x1xf32>
    %cst_21 = arith.constant dense<0.000000e+00> : vector<1xf32>
    %79 = vector.multi_reduction <add>, %78, %cst_21 [1, 2] : vector<1x128x1xf32> to vector<1xf32>
    %80 = vector.shape_cast %79 : vector<1xf32> to vector<1x1x1xf32>
    %81 = vector.extract %80[0, 0, 0] : f32 from vector<1x1x1xf32>
    %82 = vector.broadcast %81 : f32 to vector<1x8x128xf32>
    %c0_22 = arith.constant 0 : index
    %c0_23 = arith.constant 0 : index
    %c0_24 = arith.constant 0 : index
    %83 = vector.load %arg9[%c0_22, %c0_23, %c0_24] : memref<1x8x128xf32, #tpu.memory_space<vmem>>, vector<1x8x128xf32>
    tpu.vector_store %arg9[%c0_22, %c0_23, %c0_24], %82 {strides = array<i32>} : memref<1x8x128xf32, #tpu.memory_space<vmem>>, vector<1x8x128xf32>,
    return
  }
  func.func @transform_0(%arg0: i32, %arg1: memref<4xi32, #tpu.memory_space<smem>>, %arg2: memref<4xi32, #tpu.memory_space<smem>>, %arg3: memref<4xi32, #tpu.memory_space<smem>>) -> (i32, i32) {
    %c0_i32 = arith.constant 0 : i32
    %c0_i32_0 = arith.constant 0 : i32
    return %arg0, %c0_i32 : i32, i32
  }
  func.func @transform_1(%arg0: i32, %arg1: memref<4xi32, #tpu.memory_space<smem>>, %arg2: memref<4xi32, #tpu.memory_space<smem>>, %arg3: memref<4xi32, #tpu.memory_space<smem>>) -> (i32, i32) {
    %c0_i32 = arith.constant 0 : i32
    %c0_i32_0 = arith.constant 0 : i32
    %c0_i32_1 = arith.constant 0 : i32
    return %c0_i32, %c0_i32_0 : i32, i32
  }
  func.func @transform_2(%arg0: i32, %arg1: memref<4xi32, #tpu.memory_space<smem>>, %arg2: memref<4xi32, #tpu.memory_space<smem>>, %arg3: memref<4xi32, #tpu.memory_space<smem>>) -> (i32, i32) {
    %c0_i32 = arith.constant 0 : i32
    %c0_i32_0 = arith.constant 0 : i32
    %c0_i32_1 = arith.constant 0 : i32
    return %c0_i32, %c0_i32_0 : i32, i32
  }
  func.func @transform_3(%arg0: i32, %arg1: memref<4xi32, #tpu.memory_space<smem>>, %arg2: memref<4xi32, #tpu.memory_space<smem>>, %arg3: memref<4xi32, #tpu.memory_space<smem>>) -> (i32, i32) {
    %c0_i32 = arith.constant 0 : i32
    %c0_i32_0 = arith.constant 0 : i32
    %c0_i32_1 = arith.constant 0 : i32
    return %c0_i32, %c0_i32_0 : i32, i32
  }
  func.func @transform_4(%arg0: i32, %arg1: memref<4xi32, #tpu.memory_space<smem>>, %arg2: memref<4xi32, #tpu.memory_space<smem>>, %arg3: memref<4xi32, #tpu.memory_space<smem>>) -> (i32, i32) {
    %c0_i32 = arith.constant 0 : i32
    %c0_i32_0 = arith.constant 0 : i32
    return %arg0, %c0_i32 : i32, i32
  }
  func.func @transform_5(%arg0: i32, %arg1: memref<4xi32, #tpu.memory_space<smem>>, %arg2: memref<4xi32, #tpu.memory_space<smem>>, %arg3: memref<4xi32, #tpu.memory_space<smem>>) -> (i32, i32, i32) {
    %c0_i32 = arith.constant 0 : i32
    %c0_i32_0 = arith.constant 0 : i32
    %c0_i32_1 = arith.constant 0 : i32
    return %arg0, %c0_i32, %c0_i32_0 : i32, i32, i32
  }
}

</mosaic_0001>

<bundles_post_ra>
// kernel: tpu_custom_call.1
= control target key start
LH: loop header
LB: loop body
LE: loop exit
PB: predicated region body
PF: predicated region fallthrough
CT: control target
= control target key end

     0   :  { %s7361_s0 = inlined_call_operand.hbm [shape: s32[4], index: 0, kind: input, shape index: {}]   ;;  %s7362_s3 = inlined_call_operand.vmem [shape: bf16[512,128], index: 3, kind: input, shape index: {}]   ;;  %s7363_s4 = inlined_call_operand.vmem [shape: bf16[128,512], index: 4, kind: input, shape index: {}]   ;;  %s7364_s5 = inlined_call_operand.hbm [shape: bf16[512,128], index: 5, kind: input, shape index: {}]   ;;  %s7365_s6 = inlined_call_operand.vmem [shape: s32[1,512], index: 6, kind: input, shape index: {}]   ;;  %s7366_s7 = inlined_call_operand.vmem [shape: s32[512,1], index: 7, kind: input, shape index: {}]   ;;  %s7367_s8 = inlined_call_operand.hbm [shape: f32[4,8,128], index: 8, kind: output, shape index: {}]   ;;  %s7368_s1 = inlined_call_operand.hbm [shape: s32[4], index: 1, kind: input, shape index: {}]   ;;  %s7369_s2 = inlined_call_operand.vmem [shape: s32[4], index: 2, kind: input, shape index: {}]  }
   0x1   :  { %s3746_s29 = scalar_lea.hbm %s7361_s0, 16 }
   0x2   :  { %p3747_p0 = scmp.ne.s32.totalorder %s7361_s0, %s3746_s29  ;;  %p3750_p1 = scmp.lt.u32.totalorder %s3746_s29, %s7361_s0 }
   0x4   :  { %p3752_p2 = pnand %p3750_p1, %p3747_p0 }
   0x6   :  { %3755 = shalt.err (!%p3752_p2)  }
   0x7   :  { %s3876_s12 = smov [#allocation3]   ;;  %s3756_s17 = scalar_lea.hbm %s7368_s1, 16 }
   0x8   :  { %14 = dma.hbm_to_smem %s7361_s0, 16, %s3876_s12, [#allocation2] }
   0x9   :  { %p3757_p3 = scmp.ne.s32.totalorder %s7368_s1, %s3756_s17  ;;  %p3760_p4 = scmp.lt.u32.totalorder %s3756_s17, %s7368_s1 }
   0xb   :  { %p3762_p5 = pnand %p3760_p4, %p3757_p3 }
   0xd   :  { %3765 = shalt.err (!%p3762_p5)  }
   0xe   :  { %s3877_s22 = smov [#allocation4]   ;;  %s17_s26 = sshll.u32 %s7369_s2, 4  ;;  %s18_s26 = int_to_ptr.vmem [resolvable:$true] %s17_s26 }
   0xf   :  { %16 = dma.hbm_to_smem %s7368_s1, 16, %s3877_s22, [#allocation2] }
  0x10   :  { %s3766_s27 = scalar_lea.vmem %s18_s26, 16  ;;  %p3771_p7 = scmp.lt.s32.totalorder %s18_s26, %s18_s26 }
  0x11   :  { %p3767_p6 = scmp.ne.s32.totalorder %s18_s26, %s3766_s27  ;;  %p3772_p8 = scmp.lt.s32.totalorder %s3766_s27, %s3766_s27 }
  0x13   :  { %p3773_p9 = por %p3772_p8, %p3771_p7 }
  0x15   :  { %p3774_p10 = pnand %p3773_p9, %p3767_p6 }
  0x17   :  { %3777 = shalt.err (!%p3774_p10)  }
  0x18   :  { %s3878_s28 = smov [#allocation5]  }
  0x19   :  { %20 = dma.vmem_to_smem %s18_s26, 16, %s3878_s28, [#allocation2] }
  0x1a   :  { %3850 = dma.done.wait [#allocation2], 48 }
  0x1b   :  { %3851 = vsyncadd [#allocation2], 4294967248 }
  0x1c   :  { %22 = sfence }
  0x1d   :  { %23 = vsyncpa [#allocation7], 0 }
  0x1e   :  { %24 = vsyncpa [#allocation8], 0 }
  0x1f   :  { %26 = vsyncpa [#allocation8 + $0x1], 0  ;;  %s3956_s1 = smov 0   ;;  %s3958_s29 = smov 0  }
  0x20   :  { %s3960_s2 = smov 0   ;;  %s3962_s30 = smov 0  }
  0x21 LB: > { %s3977_s9 = sadd.s32 4294967295, %s3874_s30   ;;  %s3042_s10 = sadd.s32 4294967294, %s3874_s30   ;;  %s3874_s30 = sphi %s3962_s30, %s8138_s30   ;;  %s3870_s2 = sphi %s3960_s2, %s8137_s2   ;;  %s3866_s29 = sphi %s3958_s29, %s8136_s29   ;;  %s3862_s1 = sphi %s3956_s1, %s8135_s1  }
  0x22   : > { %s3981_s11 = sadd.s32 1, %s3874_s30   ;;  %s154_s12 = sadd.s32 1, %s3870_s2 }
  0x23   : > { %s151_s13 = ssub.s32 %s3874_s30, %s3981_s11  ;;  %p164_p11 = scmp.ne.s32.totalorder %s3870_s2, %s3866_s29 }
  0x24   : > { %p152_p12 = scmp.eq.s32.totalorder %s151_s13, 0  ;;  %p165_p13 = scmp.eq.s32.totalorder %s3977_s9, 3 }
  0x25   : > { %p170_p0 = scmp.ne.s32.totalorder %s3866_s29, %s3862_s1  ;;  %p171_p1 = scmp.eq.s32.totalorder %s3042_s10, 3 }
  0x26   : > { %s3992_s14 = scalar_select %p152_p12, %s3870_s2, %s154_s12  }
  0x27   : > { %p3994_p2 = por %p165_p13, %p164_p11  ;;  %p3998_p3 = por %p171_p1, %p170_p0 }
  0x28   : > { %p3043_p4 = scmp.ge.s32.totalorder %s3874_s30, 1  ;;  %p178_p5 = scmp.lt.s32.totalorder %s3874_s30, 5 }
  0x29   : > { %s7488_s15 = scalar_select %p3994_p2, 1, 0 }
  0x2a   : > { %s7489_s16 = scalar_select %p3998_p3, 1, 0 }
  0x2b   : > { %p7370_p6 = scmp.eq.s32.totalorder %s3977_s9, 0  ;;  %p4005_p7 = pnand %p3043_p4, %p178_p5 }
  0x2c   : > { %s3879_s18 = smov [#allocation6]   ;;  %s3778_s23 = scalar_lea.hbm %s7364_s5, 4096 }
  0x2d   : > { %s7490_s17 = scalar_select %p4005_p7, 1, 0 }
  0x2e   : > { %s193_s19 = sshll.u32 %s3879_s18, 4  ;;  %p3204_p8 = pneg %p4005_p7  ;;  %s194_s19 = int_to_ptr.vmem [resolvable:$true] %s193_s19 }
  0x2f   : > { %p3779_p10 = scmp.ne.s32.totalorder %s7364_s5, %s3778_s23  ;;  %p3785_p0 = scmp.lt.u32.totalorder %s3778_s23, %s7364_s5 }
  0x30   : > { %p4013_p9 = pnand %p7370_p6, %p3204_p8 }
  0x32   : > { %p3780_p11 = pneg %p4013_p9 }
  0x34   : > { %p3781_p12 = pnand %p3780_p11, %p3779_p10 }
  0x36   : > { %p3782_p13 = pneg %p3781_p12 }
  0x38   : > { %p3787_p1 = pnand %p3785_p0, %p3782_p13 }
  0x3a   : > { %3790 = shalt.err (!%p3787_p1)
}
  0x3b   : > { %s3791_s27 = scalar_lea.vmem %s194_s19, 4096  ;;  %p3799_p6 = scmp.lt.s32.totalorder %s194_s19, %s194_s19 }
  0x3c   : > { %p3792_p4 = scmp.ne.s32.totalorder %s194_s19, %s3791_s27  ;;  %p3800_p3 = scmp.lt.s32.totalorder %s3791_s27, %s3791_s27 }
  0x3e   : > { %p3794_p5 = pnand %p3792_p4, %p3780_p11  ;;  %p3801_p2 = por %p3800_p3, %p3799_p6 }
  0x40   : > { %p3795_p8 = pneg %p3794_p5 }
  0x42   : > { %p3802_p7 = pnand %p3801_p2, %p3795_p8 }
  0x44   : > { %3805 = shalt.err (!%p3802_p7)
}
  0x45   : > { %s3880_s28 = smov 64   ;;  %s3881_s10 = smov 4  }
  0x46   : > { %3207 = dma.hbm_to_vmem [thread:$0]  (!%p4013_p9), %s7364_s5, 4096, %s194_s19, [#allocation7], %s3880_s28, %s3880_s28, %s3881_s10  }
  0x47   : > { %p7492_p10 = scmp.ne.s32.totalorder %s7490_s17, 0 }
  0x49   : > { %230 = sbr.rel (%p7492_p10) target bundleno = 1136 (0x470), region = 40 }
  0x50   : > { %p7493_p12 = scmp.eq.s32.totalorder %s3977_s9, 0 }
  0x52   : > { %3853 = dma.done.wait (%p7493_p12), [#allocation7], 4096   ;;  %p7494_p11 = pmov %p7493_p12 }
  0x53   : > { %v7373_v0 = vmov 0   ;;  %v3256_v1 = vld [vmem:[%s7363_s4 + $0x4] ss:$16 sps:$4 sm:$0xff]   ;;  %v3258_v2 = vld [vmem:[%s7363_s4 + $0xc] ss:$16 sps:$4 sm:$0xff]   ;;  %s3049_s17 = sshll.u32 %s3977_s9, 4 }
  0x54   : > { %3855 = vsyncadd (%p7494_p11), [#allocation7], 4294963200  ;;  %584 = vmatprep.mubr.bf16.mxu0 %v7373_v0  ;;  %697 = vmatprep.mubr.bf16.mxu1 %v7373_v0  ;;  %v3260_v3 = vld [vmem:[%s7363_s4] ss:$16 sps:$4 sm:$0xff]   ;;  %v3261_v4 = vld [vmem:[%s7363_s4 + $0x8] ss:$16 sps:$4 sm:$0xff]  }
  0x55   : > { %3255 = vset.pattern.permute.xlu1 %v7373_v0  ;;  %3254 = vset.pattern.permute.xlu0 %v7373_v0  ;;  %v3262_v5 = vld [vmem:[%s7363_s4 + $0x24] ss:$16 sps:$4 sm:$0xff]   ;;  %v3264_v6 = vld [vmem:[%s7363_s4 + $0x2c] ss:$16 sps:$4 sm:$0xff]   ;;  %v3266_v7 = vld [vmem:[%s7363_s4 + $0x20] ss:$16 sps:$4 sm:$0xff]  }
  0x56   : > { %552 = vmatprep.subr.bf16.mxu0 %v3256_v1  ;;  %665 = vmatprep.subr.bf16.mxu1 %v3258_v2  ;;  %v3267_v8 = vld [vmem:[%s7363_s4 + $0x28] ss:$16 sps:$4 sm:$0xff]   ;;  %v3268_v9 = vld [vmem:[%s7363_s4 + $0x44] ss:$16 sps:$4 sm:$0xff]   ;;  %v3270_v10 = vld [vmem:[%s7363_s4 + $0x4c] ss:$16 sps:$4 sm:$0xff]  }
  0x57   : > { %553 = vmatpush1.bf16.msra.mxu0 %v3260_v3  ;;  %666 = vmatpush1.bf16.msra.mxu1 %v3261_v4  ;;  %v3272_v11 = vld [vmem:[%s7363_s4 + $0x40] ss:$16 sps:$4 sm:$0xff]   ;;  %v3273_v12 = vld [vmem:[%s7363_s4 + $0x48] ss:$16 sps:$4 sm:$0xff]   ;;  %v3274_v13 = vld [vmem:[%s7363_s4 + $0x64] ss:$16 sps:$4 sm:$0xff]  }
  0x58   : > { %554 = vmatprep.subr.bf16.mxu0 %v3262_v5  ;;  %667 = vmatprep.subr.bf16.mxu1 %v3264_v6  ;;  %v3276_v14 = vld [vmem:[%s7363_s4 + $0x6c] ss:$16 sps:$4 sm:$0xff]   ;;  %p264_p2 = scmp.lt.s32.totalorder %s3049_s17, 63  ;;  %s4087_s10 = sld [smem:[#allocation3 + %s3977_s9]]  ;;  %v3278_v15 = vld [vmem:[%s7363_s4 + $0x60] ss:$16 sps:$4 sm:$0xff]  }
  0x59   : > { %v3279_v16 = vld [vmem:[%s7363_s4 + $0x68] ss:$16 sps:$4 sm:$0xff]   ;;  %v3280_v17 = vld [vmem:[%s7363_s4 + $0x84] ss:$16 sps:$4 sm:$0xff]   ;;  %v3282_v18 = vld [vmem:[%s7363_s4 + $0x8c] ss:$16 sps:$4 sm:$0xff]  }
  0x5a   : > { %s8140_s17 = smov (!%p264_p2, %s3049_s17), 63  ;;  %v3284_v19 = vld [vmem:[%s7363_s4 + $0x80] ss:$16 sps:$4 sm:$0xff]   ;;  %v3285_v20 = vld [vmem:[%s7363_s4 + $0x88] ss:$16 sps:$4 sm:$0xff]   ;;  %s5989_s24 = sld [smem:[#allocation4 + %s3977_s9]] }
  0x5b   : > { %555 = vmatpush1.bf16.msra.mxu0 %v3266_v7  ;;  %668 = vmatpush1.bf16.msra.mxu1 %v3267_v8  ;;  %v3286_v21 = vld [vmem:[%s7363_s4 + $0xa4] ss:$16 sps:$4 sm:$0xff]   ;;  %v3288_v22 = vld [vmem:[%s7363_s4 + $0xac] ss:$16 sps:$4 sm:$0xff]   ;;  %s3050_s18 = sshll.u32 %s8140_s17, 2  ;;  %s260_s12 = sand.u32 1, %s3866_s29  }
  0x5c   : > { %556 = vmatprep.subr.bf16.mxu0 %v3268_v9  ;;  %669 = vmatprep.subr.bf16.mxu1 %v3270_v10  ;;  %v3290_v23 = vld [vmem:[%s7363_s4 + $0xa0] ss:$16 sps:$4 sm:$0xff]   ;;  %v3291_v24 = vld [vmem:[%s7363_s4 + $0xa8] ss:$16 sps:$4 sm:$0xff]   ;;  %v3292_v25 = vld [vmem:[%s7363_s4 + $0xc4] ss:$16 sps:$4 sm:$0xff]   ;;  %s4129_s27 = scalar_lea.vmem %s7362_s3, %s3050_s18 }
  0x5d   : > { %v3294_v26 = vld [vmem:[%s7363_s4 + $0xcc] ss:$16 sps:$4 sm:$0xff]   ;;  %v3296_v27 = vld [vmem:[%s7363_s4 + $0xc0] ss:$16 sps:$4 sm:$0xff]   ;;  %v3297_v28 = vld [vmem:[%s7363_s4 + $0xc8] ss:$16 sps:$4 sm:$0xff]  }
  0x5e   : > { %s1472_s19 = sshra.s32 %s4087_s10, 3  ;;  %v3298_v29 = vld [vmem:[%s7363_s4 + $0xe4] ss:$16 sps:$4 sm:$0xff]   ;;  %v3300_v30 = vld [vmem:[%s7363_s4 + $0xec] ss:$16 sps:$4 sm:$0xff]   ;;  %s3126_s18 = sshll.u32 %s3977_s9, 7 }
  0x5f   : > { %557 = vmatpush1.bf16.msra.mxu0 %v3272_v11  ;;  %670 = vmatpush1.bf16.msra.mxu1 %v3273_v12  ;;  %s3093_s28 = sshll.u32 %s1472_s19, 2  ;;  %v3302_v31 = vld [vmem:[%s7363_s4 + $0xe0] ss:$16 sps:$4 sm:$0xff]   ;;  %v3303_v32 = vld [vmem:[%s7363_s4 + $0xe8] ss:$16 sps:$4 sm:$0xff]   ;;  %s3048_s13 = sshll.u32 %s260_s12, 3 }
  0x60   : > { %558 = vmatprep.subr.bf16.mxu0 %v3274_v13  ;;  %671 = vmatprep.subr.bf16.mxu1 %v3276_v14  ;;  %v4153_v33 = vld [vmem:[%s4129_s27] sm:$0xff]   ;;  %s4155_s20 = scalar_lea.vmem [#allocation6], %s3093_s28  ;;  %v4168_v40 = vld [vmem:[%s4129_s27 + $0x8] sm:$0xff]   ;;  %v4179_v45 = vld [vmem:[%s4129_s27 + $0x10] sm:$0xff]   ;;  %s3052_s28 = sshll.u32 %s8140_s17, 3 }
  0x61   : > { %v3312_v34 = vld [vmem:[%s4155_s20 + $0x40] sm:$0xff]   ;;  %v3316_v38 = vld [vmem:[%s4155_s20 + $0x48] sm:$0xff]   ;;  %v3320_v43 = vld [vmem:[%s4155_s20 + $0x50] sm:$0xff]   ;;  %s4196_s23 = scalar_lea.vmem %s7366_s7, %s3052_s28  ;;  %s7321_s17 = scalar_lea.hbm %s7367_s8, %s3126_s18 }
  0x62   : > { %v3313_v35 = vld [vmem:[%s4155_s20 + $0xc0] sm:$0xff]   ;;  %v3317_v39 = vld [vmem:[%s4155_s20 + $0xc8] sm:$0xff]   ;;  %v3321_v44 = vld [vmem:[%s4155_s20 + $0xd0] sm:$0xff]   ;;  %p8133_p9 = scmp.ne.s32.totalorder %s7488_s15, 0 }
  0x63   : > { %559 = vmatpush1.bf16.msra.mxu0 %v3278_v15  ;;  %672 = vmatpush1.bf16.msra.mxu1 %v3279_v16  ;;  %v3314_v36 = vld [vmem:[%s4155_s20] sm:$0xff]   ;;  %v3318_v41 = vld [vmem:[%s4155_s20 + $0x8] sm:$0xff]   ;;  %v3322_v46 = vld [vmem:[%s4155_s20 + $0x10] sm:$0xff]  }
  0x64   : > { %560 = vmatprep.subr.bf16.mxu0 %v3280_v17  ;;  %673 = vmatprep.subr.bf16.mxu1 %v3282_v18  ;;  %v3315_v37 = vld [vmem:[%s4155_s20 + $0x80] sm:$0xff]   ;;  %v3319_v42 = vld [vmem:[%s4155_s20 + $0x88] sm:$0xff]   ;;  %v3323_v47 = vld [vmem:[%s4155_s20 + $0x90] sm:$0xff]  }
  0x65   : > { %v3324_v48 = vld [vmem:[%s4155_s20 + $0x58] sm:$0xff]   ;;  %v297_v51 = vld [vmem:[%s4196_s23 + $0x8] sm:$0xff]  ;;  %v3328_v54 = vld [vmem:[%s4155_s20 + $0x60] sm:$0xff]  }
  0x66   : > { %v3325_v49 = vld [vmem:[%s4155_s20 + $0xd8] sm:$0xff]   ;;  %1118 = vperm.xlu1 %3255, %v297_v51   ;;  %v3329_v55 = vld [vmem:[%s4155_s20 + $0xe0] sm:$0xff]   ;;  %v3332_v61 = vld [vmem:[%s4155_s20 + $0x68] sm:$0xff]  }
  0x67   : > { %561 = vmatpush1.bf16.msra.mxu0 %v3284_v19  ;;  %674 = vmatpush1.bf16.msra.mxu1 %v3285_v20  ;;  %v4191_v50 = vld [vmem:[%s4129_s27 + $0x18] sm:$0xff]   ;;  %v4208_v56 = vld [vmem:[%s4129_s27 + $0x20] sm:$0xff]   ;;  %v3333_v62 = vld [vmem:[%s4155_s20 + $0xe8] sm:$0xff]  }
  0x68   : > { %562 = vmatprep.subr.bf16.mxu0 %v3286_v21  ;;  %675 = vmatprep.subr.bf16.mxu1 %v3288_v22  ;;  %v3326_v52 = vld [vmem:[%s4155_s20 + $0x18] sm:$0xff]   ;;  %v296_v58 = vld [vmem:[%s4196_s23] sm:$0xff]  ;;  %v4221_v63 = vld [vmem:[%s4129_s27 + $0x28] sm:$0xff]  }
  0x69   : > { %v3327_v53 = vld [vmem:[%s4155_s20 + $0x98] sm:$0xff]   ;;  %v3330_v59 = vld [vmem:[%s4155_s20 + $0x20] sm:$0xff]   ;;  %1115 = vperm.xlu0 %3254, %v296_v58   ;;  %v301_v1 = vld [vmem:[%s4196_s23 + $0x28] sm:$0xff] }
  0x6a   : > { %v299_v57 = vld [vmem:[%s4196_s23 + $0x18] sm:$0xff]  ;;  %v3331_v60 = vld [vmem:[%s4155_s20 + $0xa0] sm:$0xff]   ;;  %v298_v2 = vld [vmem:[%s4196_s23 + $0x10] sm:$0xff] }
  0x6b   : > { %563 = vmatpush1.bf16.msra.mxu0 %v3290_v23  ;;  %676 = vmatpush1.bf16.msra.mxu1 %v3291_v24  ;;  %v3334_v3 = vld [vmem:[%s4155_s20 + $0x28] sm:$0xff]   ;;  %v3336_v5 = vld [vmem:[%s4155_s20 + $0x70] sm:$0xff]   ;;  %v300_v9 = vld [vmem:[%s4196_s23 + $0x20] sm:$0xff] }
  0x6c   : > { %564 = vmatprep.subr.bf16.mxu0 %v3292_v25  ;;  %677 = vmatprep.subr.bf16.mxu1 %v3294_v26  ;;  %v3335_v4 = vld [vmem:[%s4155_s20 + $0xa8] sm:$0xff]   ;;  %v3337_v6 = vld [vmem:[%s4155_s20 + $0xf0] sm:$0xff]   ;;  %v3340_v12 = vld [vmem:[%s4155_s20 + $0x78] sm:$0xff]  }
  0x6d   : > { %1124 = vperm.xlu1 %3255, %v299_v57   ;;  %1121 = vperm.xlu0 %3254, %v298_v2   ;;  %v4234_v7 = vld [vmem:[%s4129_s27 + $0x30] sm:$0xff]   ;;  %v3341_v13 = vld [vmem:[%s4155_s20 + $0xf8] sm:$0xff]   ;;  %v305_v16 = vld [vmem:[%s4196_s23 + $0x48] sm:$0xff] }
  0x6e   : > { %v302_v8 = vld [vmem:[%s4196_s23 + $0x30] sm:$0xff]  ;;  %v3311_v14 = vld [vmem:[%s4129_s27 + $0x38] sm:$0xff]   ;;  %v304_v19 = vld [vmem:[%s4196_s23 + $0x40] sm:$0xff]  ;;  %s2944_s27 = scalar_lea.sflag [#allocation8], %s260_s12 }
  0x6f   : > { %565 = vmatpush1.bf16.msra.mxu0 %v3296_v27  ;;  %678 = vmatpush1.bf16.msra.mxu1 %v3297_v28  ;;  %v3338_v10 = vld [vmem:[%s4155_s20 + $0x30] sm:$0xff]   ;;  %v303_v15 = vld [vmem:[%s4196_s23 + $0x38] sm:$0xff]  ;;  %v308_v22 = vld [vmem:[%s4196_s23 + $0x60] sm:$0xff] }
  0x70   : > { %566 = vmatprep.subr.bf16.mxu0 %v3298_v29  ;;  %679 = vmatprep.subr.bf16.mxu1 %v3300_v30  ;;  %v3339_v11 = vld [vmem:[%s4155_s20 + $0xb0] sm:$0xff]   ;;  %v3342_v17 = vld [vmem:[%s4155_s20 + $0x38] sm:$0xff]   ;;  %v309_v23 = vld [vmem:[%s4196_s23 + $0x68] sm:$0xff] }
  0x71   : > { %1130 = vperm.xlu1 %3255, %v301_v1   ;;  %1127 = vperm.xlu0 %3254, %v300_v9   ;;  %v3343_v18 = vld [vmem:[%s4155_s20 + $0xb8] sm:$0xff]   ;;  %v306_v20 = vld [vmem:[%s4196_s23 + $0x50] sm:$0xff]  ;;  %s262_s20 = scalar_lea.vmem [#allocation9], %s3048_s13 }
  0x72   : > { %v307_v21 = vld [vmem:[%s4196_s23 + $0x58] sm:$0xff]  ;;  %s2957_s28 = sshll.u32 %s262_s20, 4  ;;  %s7314_s28 = int_to_ptr.vmem [resolvable:$true] %s2957_s28 }
  0x73   : > { %567 = vmatpush1.bf16.msra.mxu0 %v3302_v31  ;;  %680 = vmatpush1.bf16.msra.mxu1 %v3303_v32 }
  0x74   : > { %3132 = vmatprep.subr.bf16.mxu0 %v3312_v34  ;;  %3164 = vmatprep.subr.bf16.mxu1 %v3313_v35 }
  0x75   : > { %1133 = vperm.xlu1 %3255, %v302_v8   ;;  %1142 = vperm.xlu0 %3254, %v305_v16  }
  0x76   : > { %585 = vmatmul.mubr.bf16.vlgmr.msra.gmra.mrb[0].mxu0 %v4153_v33  ;;  %698 = vmatmul.mubr.bf16.vlgmr.msra.gmra.mrb[0].mxu1 %v4153_v33 }
  0x77   : > { %594 = vmatprep.mubr.bf16.mxu0 %v7373_v0  ;;  %707 = vmatprep.mubr.bf16.mxu1 %v7373_v0 }
  0x79   : > { %1136 = vperm.xlu1 %3255, %v303_v15  }
  0x7c   : > { %3133 = vmatpush3.bf16.xpose.msra.mxu0 %v3314_v36  ;;  %3165 = vmatpush3.bf16.xpose.msra.mxu1 %v3315_v37 }
  0x7d   : > { %3134 = vmatprep.subr.bf16.mxu0 %v3316_v38  ;;  %3166 = vmatprep.subr.bf16.mxu1 %v3317_v39 }
  0x7e   : > { %595 = vmatmul.mubr.bf16.gmra.mrb[4].mxu0 %v4168_v40  ;;  %708 = vmatmul.mubr.bf16.gmra.mrb[4].mxu1 %v4168_v40 }
  0x7f   : > { %604 = vmatprep.mubr.bf16.mxu0 %v7373_v0  ;;  %717 = vmatprep.mubr.bf16.mxu1 %v7373_v0 }
  0x80   : > { %1139 = vperm.xlu1 %3255, %v304_v19  }
  0x84   : > { %3135 = vmatpush3.bf16.xpose.msra.mxu0 %v3318_v41  ;;  %3167 = vmatpush3.bf16.xpose.msra.mxu1 %v3319_v42 }
  0x85   : > { %3136 = vmatprep.subr.bf16.mxu0 %v3320_v43  ;;  %3168 = vmatprep.subr.bf16.mxu1 %v3321_v44 }
  0x86   : > { %605 = vmatmul.mubr.bf16.gmra.mrb[8].mxu0 %v4179_v45  ;;  %718 = vmatmul.mubr.bf16.gmra.mrb[8].mxu1 %v4179_v45 }
  0x87   : > { %614 = vmatprep.mubr.bf16.mxu0 %v7373_v0  ;;  %727 = vmatprep.mubr.bf16.mxu1 %v7373_v0 }
  0x88   : > { %1145 = vperm.xlu1 %3255, %v306_v20  }
  0x8c   : > { %3137 = vmatpush3.bf16.xpose.msra.mxu0 %v3322_v46  ;;  %3169 = vmatpush3.bf16.xpose.msra.mxu1 %v3323_v47 }
  0x8d   : > { %3138 = vmatprep.subr.bf16.mxu0 %v3324_v48  ;;  %3170 = vmatprep.subr.bf16.mxu1 %v3325_v49 }
  0x8e   : > { %615 = vmatmul.mubr.bf16.gmra.mrb[12].mxu0 %v4191_v50  ;;  %728 = vmatmul.mubr.bf16.gmra.mrb[12].mxu1 %v4191_v50 }
  0x8f   : > { %624 = vmatprep.mubr.bf16.mxu0 %v7373_v0  ;;  %737 = vmatprep.mubr.bf16.mxu1 %v7373_v0 }
  0x90   : > { %1148 = vperm.xlu1 %3255, %v307_v21  }
  0x94   : > { %3139 = vmatpush3.bf16.xpose.msra.mxu0 %v3326_v52  ;;  %3171 = vmatpush3.bf16.xpose.msra.mxu1 %v3327_v53 }
  0x95   : > { %3140 = vmatprep.subr.bf16.mxu0 %v3328_v54  ;;  %3172 = vmatprep.subr.bf16.mxu1 %v3329_v55 }
  0x96   : > { %625 = vmatmul.mubr.bf16.gmra.mrb[16].mxu0 %v4208_v56  ;;  %738 = vmatmul.mubr.bf16.gmra.mrb[16].mxu1 %v4208_v56 }
  0x97   : > { %634 = vmatprep.mubr.bf16.mxu0 %v7373_v0  ;;  %747 = vmatprep.mubr.bf16.mxu1 %v7373_v0 }
  0x98   : > { %1151 = vperm.xlu1 %3255, %v308_v22  }
  0x9c   : > { %3141 = vmatpush3.bf16.xpose.msra.mxu0 %v3330_v59  ;;  %3173 = vmatpush3.bf16.xpose.msra.mxu1 %v3331_v60 }
  0x9d   : > { %3142 = vmatprep.subr.bf16.mxu0 %v3332_v61  ;;  %3174 = vmatprep.subr.bf16.mxu1 %v3333_v62 }
  0x9e   : > { %635 = vmatmul.mubr.bf16.gmra.mrb[20].mxu0 %v4221_v63  ;;  %748 = vmatmul.mubr.bf16.gmra.mrb[20].mxu1 %v4221_v63 }
  0x9f   : > { %644 = vmatprep.mubr.bf16.mxu0 %v7373_v0  ;;  %757 = vmatprep.mubr.bf16.mxu1 %v7373_v0 }
  0xa0   : > { %1154 = vperm.xlu1 %3255, %v309_v23  }
  0xa4   : > { %3143 = vmatpush3.bf16.xpose.msra.mxu0 %v3334_v3  ;;  %3175 = vmatpush3.bf16.xpose.msra.mxu1 %v3335_v4 }
  0xa5   : > { %3144 = vmatprep.subr.bf16.mxu0 %v3336_v5  ;;  %3176 = vmatprep.subr.bf16.mxu1 %v3337_v6 }
  0xa6   : > { %645 = vmatmul.mubr.bf16.gmra.mrb[24].mxu0 %v4234_v7  ;;  %758 = vmatmul.mubr.bf16.gmra.mrb[24].mxu1 %v4234_v7 }
  0xa7   : > { %654 = vmatprep.mubr.bf16.mxu0 %v7373_v0  ;;  %767 = vmatprep.mubr.bf16.mxu1 %v7373_v0 }
  0xac   : > { %3145 = vmatpush3.bf16.xpose.msra.mxu0 %v3338_v10  ;;  %3177 = vmatpush3.bf16.xpose.msra.mxu1 %v3339_v11 }
  0xad   : > { %3146 = vmatprep.subr.bf16.mxu0 %v3340_v12  ;;  %3178 = vmatprep.subr.bf16.mxu1 %v3341_v13 }
  0xae   : > { %655 = vmatmul.mubr.bf16.gmra.mrb[28].mxu0 %v3311_v14  ;;  %768 = vmatmul.mubr.bf16.gmra.mrb[28].mxu1 %v3311_v14 }
  0xaf   : > { %3148 = vmatprep.mubr.bf16.mxu0 %v4153_v33  ;;  %3180 = vmatprep.mubr.bf16.mxu1 %v4153_v33 }
  0xb4   : > { %3147 = vmatpush3.bf16.xpose.msra.mxu0 %v3342_v17  ;;  %3179 = vmatpush3.bf16.xpose.msra.mxu1 %v3343_v18 }
  0xbb   : > { %3149 = vmatmul.mubr.bf16.vlgmr.msra.gmra.mrb[32].mxu0 %v4153_v33  ;;  %3181 = vmatmul.mubr.bf16.vlgmr.msra.gmra.mrb[32].mxu1 %v4153_v33 }
  0xbc   : > { %3150 = vmatprep.mubr.bf16.mxu0 %v4168_v40  ;;  %3182 = vmatprep.mubr.bf16.mxu1 %v4168_v40 }
  0xc3   : > { %3151 = vmatmul.mubr.bf16.gmra.mrb[36].mxu0 %v4168_v40  ;;  %3183 = vmatmul.mubr.bf16.gmra.mrb[36].mxu1 %v4168_v40 }
  0xc4   : > { %3152 = vmatprep.mubr.bf16.mxu0 %v4179_v45  ;;  %3184 = vmatprep.mubr.bf16.mxu1 %v4179_v45 }
  0xcb   : > { %3153 = vmatmul.mubr.bf16.gmra.mrb[40].mxu0 %v4179_v45  ;;  %3185 = vmatmul.mubr.bf16.gmra.mrb[40].mxu1 %v4179_v45 }
  0xcc   : > { %3154 = vmatprep.mubr.bf16.mxu0 %v4191_v50  ;;  %3186 = vmatprep.mubr.bf16.mxu1 %v4191_v50 }
  0xd3   : > { %3155 = vmatmul.mubr.bf16.gmra.mrb[44].mxu0 %v4191_v50  ;;  %3187 = vmatmul.mubr.bf16.gmra.mrb[44].mxu1 %v4191_v50 }
  0xd4   : > { %3156 = vmatprep.mubr.bf16.mxu0 %v4208_v56  ;;  %3188 = vmatprep.mubr.bf16.mxu1 %v4208_v56 }
  0xdb   : > { %3157 = vmatmul.mubr.bf16.gmra.mrb[48].mxu0 %v4208_v56  ;;  %3189 = vmatmul.mubr.bf16.gmra.mrb[48].mxu1 %v4208_v56 }
  0xdc   : > { %3158 = vmatprep.mubr.bf16.mxu0 %v4221_v63  ;;  %3190 = vmatprep.mubr.bf16.mxu1 %v4221_v63 }
  0xe3   : > { %3159 = vmatmul.mubr.bf16.gmra.mrb[52].mxu0 %v4221_v63  ;;  %3191 = vmatmul.mubr.bf16.gmra.mrb[52].mxu1 %v4221_v63 }
  0xe4   : > { %3160 = vmatprep.mubr.bf16.mxu0 %v4234_v7  ;;  %3192 = vmatprep.mubr.bf16.mxu1 %v4234_v7 }
  0xeb   : > { %3161 = vmatmul.mubr.bf16.gmra.mrb[56].mxu0 %v4234_v7  ;;  %3193 = vmatmul.mubr.bf16.gmra.mrb[56].mxu1 %v4234_v7 }
  0xec   : > { %3162 = vmatprep.mubr.bf16.mxu0 %v3311_v14  ;;  %3194 = vmatprep.mubr.bf16.mxu1 %v3311_v14 }
  0xf3   : > { %3163 = vmatmul.mubr.bf16.gmra.mrb[60].mxu0 %v3311_v14  ;;  %3195 = vmatmul.mubr.bf16.gmra.mrb[60].mxu1 %v3311_v14 }
 0x149   : > { %v586_v24 = vpop.f32.mrb[0].mxu0  ;;  %v699_v25 = vpop.f32.mrb[0].mxu1 }
 0x14a   : > { %v4284_v26 = vmul.f32 2.0, %v586_v24  ;;  %v588_v27 = vpop.f32.mrb[1].mxu0  ;;  %v701_v28 = vpop.f32.mrb[1].mxu1  ;;  %v4286_v29 = vmul.f32 2.0, %v699_v25 }
 0x14b   : > { %v4288_v30 = vmul.f32 2.0, %v588_v27  ;;  %v590_v31 = vpop.f32.mrb[2].mxu0  ;;  %v703_v32 = vpop.f32.mrb[2].mxu1  ;;  %v4296_v38 = vmul.f32 2.0, %v701_v28 }
 0x14c   : > { %v4290_v33 = vmul.f32 2.0, %v590_v31  ;;  %v592_v34 = vpop.f32.mrb[3].mxu0  ;;  %v705_v35 = vpop.f32.mrb[3].mxu1  ;;  %v4298_v39 = vmul.f32 2.0, %v703_v32 }
 0x14d   : > { %v842_v36 = vmax.f32 %v4284_v26, %v4288_v30  ;;  %v4294_v37 = vmul.f32 2.0, %v592_v34  ;;  %v4307_v49 = vmul.f32 2.0, %v705_v35 }
 0x14f   : > { %v847_v40 = vmax.f32 %v4290_v33, %v4294_v37  ;;  %v843_v41 = vmax.f32 %v842_v36, %v4286_v29 }
 0x151   : > { %v596_v42 = vpop.f32.mrb[4].mxu0  ;;  %v709_v43 = vpop.f32.mrb[4].mxu1  ;;  %v844_v44 = vmax.f32 %v843_v41, %v4296_v38  ;;  %v848_v45 = vmax.f32 %v847_v40, %v4298_v39 }
 0x152   : > { %v4305_v46 = vmul.f32 2.0, %v596_v42  ;;  %v598_v47 = vpop.f32.mrb[5].mxu0  ;;  %v711_v48 = vpop.f32.mrb[5].mxu1  ;;  %v4309_v50 = vmul.f32 2.0, %v709_v43 }
 0x153   : > { %v4311_v51 = vmul.f32 2.0, %v598_v47  ;;  %v713_v52 = vpop.f32.mrb[6].mxu1  ;;  %845 = vmax.xlane.f32.xlu0 %v844_v44  ;;  %v600_v53 = vpop.f32.mrb[6].mxu0  ;;  %v849_v59 = vmax.f32 %v848_v45, %v4307_v49  ;;  %v4320_v60 = vmul.f32 2.0, %v711_v48 }
 0x154   : > { %v4313_v54 = vmul.f32 2.0, %v600_v53  ;;  %v602_v55 = vpop.f32.mrb[7].mxu0  ;;  %v715_v56 = vpop.f32.mrb[7].mxu1  ;;  %v4322_v61 = vmul.f32 2.0, %v713_v52 }
 0x155   : > { %v852_v57 = vmax.f32 %v4305_v46, %v4311_v51  ;;  %v4317_v58 = vmul.f32 2.0, %v602_v55  ;;  %v4331_v8 = vmul.f32 2.0, %v715_v56 }
 0x157   : > { %v857_v62 = vmax.f32 %v4313_v54, %v4317_v58  ;;  %850 = vmax.xlane.f32.xlu0 %v849_v59  ;;  %v853_v63 = vmax.f32 %v852_v57, %v4309_v50 }
 0x159   : > { %v606_v1 = vpop.f32.mrb[8].mxu0  ;;  %v719_v2 = vpop.f32.mrb[8].mxu1  ;;  %v854_v3 = vmax.f32 %v853_v63, %v4320_v60  ;;  %v858_v4 = vmax.f32 %v857_v62, %v4322_v61 }
 0x15a   : > { %v4329_v5 = vmul.f32 2.0, %v606_v1  ;;  %v608_v6 = vpop.f32.mrb[9].mxu0  ;;  %v721_v7 = vpop.f32.mrb[9].mxu1  ;;  %v4333_v9 = vmul.f32 2.0, %v719_v2 }
 0x15b   : > { %v4335_v10 = vmul.f32 2.0, %v608_v6  ;;  %v723_v11 = vpop.f32.mrb[10].mxu1  ;;  %855 = vmax.xlane.f32.xlu1 %v854_v3  ;;  %v610_v12 = vpop.f32.mrb[10].mxu0  ;;  %v859_v18 = vmax.f32 %v858_v4, %v4331_v8  ;;  %v4344_v19 = vmul.f32 2.0, %v721_v7 }
 0x15c   : > { %v4337_v13 = vmul.f32 2.0, %v610_v12  ;;  %v612_v14 = vpop.f32.mrb[11].mxu0  ;;  %v725_v15 = vpop.f32.mrb[11].mxu1  ;;  %v4346_v20 = vmul.f32 2.0, %v723_v11 }
 0x15d   : > { %v862_v16 = vmax.f32 %v4329_v5, %v4335_v10  ;;  %v4341_v17 = vmul.f32 2.0, %v612_v14  ;;  %v4351_v23 = vmul.f32 2.0, %v725_v15 }
 0x15f   : > { %v867_v21 = vmax.f32 %v4337_v13, %v4341_v17  ;;  %860 = vmax.xlane.f32.xlu1 %v859_v18  ;;  %v863_v22 = vmax.f32 %v862_v16, %v4333_v9 }
 0x161   : > { %v616_v24 = vpop.f32.mrb[12].mxu0  ;;  %v729_v25 = vpop.f32.mrb[12].mxu1  ;;  %v864_v27 = vmax.f32 %v863_v22, %v4344_v19  ;;  %v868_v28 = vmax.f32 %v867_v21, %v4346_v20 }
 0x162   : > { %v4355_v31 = vmul.f32 2.0, %v616_v24  ;;  %v618_v32 = vpop.f32.mrb[13].mxu0  ;;  %v731_v34 = vpop.f32.mrb[13].mxu1  ;;  %v4357_v35 = vmul.f32 2.0, %v729_v25 }
 0x163   : > { %v4359_v36 = vmul.f32 2.0, %v618_v32  ;;  %v733_v40 = vpop.f32.mrb[14].mxu1  ;;  %865 = vmax.xlane.f32.xlu0 %v864_v27  ;;  %v620_v41 = vpop.f32.mrb[14].mxu0  ;;  %v869_v42 = vmax.f32 %v868_v28, %v4351_v23  ;;  %v4368_v52 = vmul.f32 2.0, %v731_v34 }
 0x164   : > { %v4362_v43 = vmul.f32 2.0, %v620_v41  ;;  %v622_v44 = vpop.f32.mrb[15].mxu0  ;;  %v735_v45 = vpop.f32.mrb[15].mxu1  ;;  %v4370_v53 = vmul.f32 2.0, %v733_v40 }
 0x165   : > { %v872_v47 = vmax.f32 %v4355_v31, %v4359_v36  ;;  %v4366_v48 = vmul.f32 2.0, %v622_v44  ;;  %870 = vmax.xlane.f32.xlu1 %v869_v42  ;;  %v4375_v57 = vmul.f32 2.0, %v735_v45 }
 0x166   : > { %7495 = vst [vmem:[#allocation13_spill] sm:$0xff] %v4362_v43  ;;  %7497 = vst [vmem:[#allocation15_spill] sm:$0xff] %v4370_v53 }
 0x167   : > { %7496 = vst [vmem:[#allocation14_spill] sm:$0xff] %v4366_v48  ;;  %v877_v55 = vmax.f32 %v4362_v43, %v4366_v48  ;;  %v873_v56 = vmax.f32 %v872_v47, %v4357_v35  ;;  %7498 = vst [vmem:[#allocation16_spill] sm:$0xff] %v4375_v57 }
 0x169   : > { %v626_v59 = vpop.f32.mrb[16].mxu0  ;;  %v739_v62 = vpop.f32.mrb[16].mxu1  ;;  %v874_v63 = vmax.f32 %v873_v56, %v4368_v52  ;;  %v878_v1 = vmax.f32 %v877_v55, %v4370_v53 }
 0x16a   : > { %v4379_v2 = vmul.f32 2.0, %v626_v59  ;;  %v628_v3 = vpop.f32.mrb[17].mxu0  ;;  %v741_v4 = vpop.f32.mrb[17].mxu1  ;;  %v4381_v6 = vmul.f32 2.0, %v739_v62 }
 0x16b   : > { %v4383_v7 = vmul.f32 2.0, %v628_v3  ;;  %v743_v11 = vpop.f32.mrb[18].mxu1  ;;  %875 = vmax.xlane.f32.xlu0 %v874_v63  ;;  %v630_v12 = vpop.f32.mrb[18].mxu0  ;;  %v879_v14 = vmax.f32 %v878_v1, %v4375_v57  ;;  %v4392_v24 = vmul.f32 2.0, %v741_v4 }
 0x16c   : > { %7499 = vst [vmem:[#allocation17_spill] sm:$0xff] %v4379_v2  ;;  %7500 = vst [vmem:[#allocation18_spill] sm:$0xff] %v4381_v6  ;;  %v4386_v15 = vmul.f32 2.0, %v630_v12  ;;  %v632_v16 = vpop.f32.mrb[19].mxu0  ;;  %v745_v18 = vpop.f32.mrb[19].mxu1  ;;  %v4394_v25 = vmul.f32 2.0, %v743_v11 }
 0x16d   : > { %7501 = vst [vmem:[#allocation19_spill] sm:$0xff] %v4383_v7  ;;  %v882_v21 = vmax.f32 %v4379_v2, %v4383_v7  ;;  %v4390_v22 = vmul.f32 2.0, %v632_v16  ;;  %880 = vmax.xlane.f32.xlu1 %v879_v14  ;;  %7504 = vst [vmem:[#allocation22_spill] sm:$0xff] %v4392_v24  ;;  %v4399_v32 = vmul.f32 2.0, %v745_v18 }
 0x16e   : > { %7502 = vst [vmem:[#allocation20_spill] sm:$0xff] %v4386_v15  ;;  %7505 = vst [vmem:[#allocation23_spill] sm:$0xff] %v4394_v25 }
 0x16f   : > { %7503 = vst [vmem:[#allocation21_spill] sm:$0xff] %v4390_v22  ;;  %v887_v27 = vmax.f32 %v4386_v15, %v4390_v22  ;;  %v883_v28 = vmax.f32 %v882_v21, %v4381_v6  ;;  %7506 = vst [vmem:[#allocation24_spill] sm:$0xff] %v4399_v32  ;;  %v7594_v22 = vmov 0  }
 0x171   : > { %v636_v34 = vpop.f32.mrb[20].mxu0  ;;  %v749_v40 = vpop.f32.mrb[20].mxu1  ;;  %v884_v41 = vmax.f32 %v883_v28, %v4392_v24  ;;  %v888_v42 = vmax.f32 %v887_v27, %v4394_v25 }
 0x172   : > { %v4403_v44 = vmul.f32 2.0, %v636_v34  ;;  %v638_v45 = vpop.f32.mrb[21].mxu0  ;;  %v751_v47 = vpop.f32.mrb[21].mxu1  ;;  %v4405_v55 = vmul.f32 2.0, %v749_v40 }
 0x173   : > { %v4407_v56 = vmul.f32 2.0, %v638_v45  ;;  %v753_v59 = vpop.f32.mrb[22].mxu1  ;;  %885 = vmax.xlane.f32.xlu0 %v884_v41  ;;  %v640_v62 = vpop.f32.mrb[22].mxu0  ;;  %v889_v63 = vmax.f32 %v888_v42, %v4399_v32  ;;  %v4416_v14 = vmul.f32 2.0, %v751_v47 }
 0x174   : > { %7507 = vst [vmem:[#allocation25_spill] sm:$0xff] %v4403_v44  ;;  %7508 = vst [vmem:[#allocation26_spill] sm:$0xff] %v4405_v55  ;;  %v4410_v1 = vmul.f32 2.0, %v640_v62  ;;  %v642_v3 = vpop.f32.mrb[23].mxu0  ;;  %v755_v4 = vpop.f32.mrb[23].mxu1  ;;  %v4418_v16 = vmul.f32 2.0, %v753_v59 }
 0x175   : > { %7509 = vst [vmem:[#allocation27_spill] sm:$0xff] %v4407_v56  ;;  %v892_v11 = vmax.f32 %v4403_v44, %v4407_v56  ;;  %v4414_v12 = vmul.f32 2.0, %v642_v3  ;;  %890 = vmax.xlane.f32.xlu1 %v889_v63  ;;  %7512 = vst [vmem:[#allocation30_spill] sm:$0xff] %v4416_v14  ;;  %v4423_v27 = vmul.f32 2.0, %v755_v4 }
 0x176   : > { %7510 = vst [vmem:[#allocation28_spill] sm:$0xff] %v4410_v1  ;;  %7513 = vst [vmem:[#allocation31_spill] sm:$0xff] %v4418_v16 }
 0x177   : > { %7511 = vst [vmem:[#allocation29_spill] sm:$0xff] %v4414_v12  ;;  %v897_v18 = vmax.f32 %v4410_v1, %v4414_v12  ;;  %v893_v21 = vmax.f32 %v892_v11, %v4405_v55  ;;  %7514 = vst [vmem:[#allocation32_spill] sm:$0xff] %v4423_v27 }
 0x179   : > { %v646_v28 = vpop.f32.mrb[24].mxu0  ;;  %v759_v34 = vpop.f32.mrb[24].mxu1  ;;  %v894_v40 = vmax.f32 %v893_v21, %v4416_v14  ;;  %v898_v41 = vmax.f32 %v897_v18, %v4418_v16 }
 0x17a   : > { %v4427_v42 = vmul.f32 2.0, %v646_v28  ;;  %v648_v45 = vpop.f32.mrb[25].mxu0  ;;  %v761_v47 = vpop.f32.mrb[25].mxu1  ;;  %v4429_v62 = vmul.f32 2.0, %v759_v34 }
 0x17b   : > { %v4431_v59 = vmul.f32 2.0, %v648_v45  ;;  %v763_v63 = vpop.f32.mrb[26].mxu1  ;;  %895 = vmax.xlane.f32.xlu0 %v894_v40  ;;  %v650_v3 = vpop.f32.mrb[26].mxu0  ;;  %v899_v4 = vmax.f32 %v898_v41, %v4423_v27  ;;  %v4440_v28 = vmul.f32 2.0, %v761_v47 }
 0x17c   : > { %7515 = vst [vmem:[#allocation33_spill] sm:$0xff] %v4427_v42  ;;  %7516 = vst [vmem:[#allocation34_spill] sm:$0xff] %v4429_v62  ;;  %v4434_v11 = vmul.f32 2.0, %v650_v3  ;;  %v652_v0 = vpop.f32.mrb[27].mxu0  ;;  %v765_v12 = vpop.f32.mrb[27].mxu1  ;;  %v4442_v34 = vmul.f32 2.0, %v763_v63 }
 0x17d   : > { %7517 = vst [vmem:[#allocation35_spill] sm:$0xff] %v4431_v59  ;;  %v902_v18 = vmax.f32 %v4427_v42, %v4431_v59  ;;  %v4438_v21 = vmul.f32 2.0, %v652_v0  ;;  %900 = vmax.xlane.f32.xlu1 %v899_v4  ;;  %7520 = vst [vmem:[#allocation38_spill] sm:$0xff] %v4440_v28  ;;  %v4447_v41 = vmul.f32 2.0, %v765_v12 }
 0x17e   : > { %7518 = vst [vmem:[#allocation36_spill] sm:$0xff] %v4434_v11  ;;  %7521 = vst [vmem:[#allocation39_spill] sm:$0xff] %v4442_v34 }
 0x17f   : > { %7519 = vst [vmem:[#allocation37_spill] sm:$0xff] %v4438_v21  ;;  %v907_v40 = vmax.f32 %v4434_v11, %v4438_v21  ;;  %v903_v45 = vmax.f32 %v902_v18, %v4429_v62  ;;  %7522 = vst [vmem:[#allocation40_spill] sm:$0xff] %v4447_v41 }
 0x181   : > { %v656_v3 = vpop.f32.mrb[28].mxu0  ;;  %v769_v27 = vpop.f32.mrb[28].mxu1  ;;  %v904_v16 = vmax.f32 %v903_v45, %v4440_v28  ;;  %v908_v59 = vmax.f32 %v907_v40, %v4442_v34 }
 0x182   : > { %v4451_v0 = vmul.f32 2.0, %v656_v3  ;;  %v658_v4 = vpop.f32.mrb[29].mxu0  ;;  %v771_v47 = vpop.f32.mrb[29].mxu1  ;;  %v4453_v42 = vmul.f32 2.0, %v769_v27 }
 0x183   : > { %v4455_v63 = vmul.f32 2.0, %v658_v4  ;;  %v773_v1 = vpop.f32.mrb[30].mxu1  ;;  %905 = vmax.xlane.f32.xlu1 %v904_v16  ;;  %v660_v21 = vpop.f32.mrb[30].mxu0  ;;  %v909_v12 = vmax.f32 %v908_v59, %v4447_v41  ;;  %v4464_v3 = vmul.f32 2.0, %v771_v47 }
 0x184   : > { %7523 = vst [vmem:[#allocation41_spill] sm:$0xff] %v4451_v0  ;;  %7524 = vst [vmem:[#allocation42_spill] sm:$0xff] %v4453_v42  ;;  %v4458_v18 = vmul.f32 2.0, %v660_v21  ;;  %v662_v11 = vpop.f32.mrb[31].mxu0  ;;  %v775_v62 = vpop.f32.mrb[31].mxu1  ;;  %v4466_v27 = vmul.f32 2.0, %v773_v1 }
 0x185   : > { %7525 = vst [vmem:[#allocation43_spill] sm:$0xff] %v4455_v63  ;;  %v912_v40 = vmax.f32 %v4451_v0, %v4455_v63  ;;  %v4462_v45 = vmul.f32 2.0, %v662_v11  ;;  %910 = vmax.xlane.f32.xlu0 %v909_v12  ;;  %7528 = vst [vmem:[#allocation46_spill] sm:$0xff] %v4464_v3  ;;  %v4471_v59 = vmul.f32 2.0, %v775_v62 }
 0x186   : > { %7526 = vst [vmem:[#allocation44_spill] sm:$0xff] %v4458_v18  ;;  %7529 = vst [vmem:[#allocation47_spill] sm:$0xff] %v4466_v27 }
 0x187   : > { %7527 = vst [vmem:[#allocation45_spill] sm:$0xff] %v4462_v45  ;;  %v917_v16 = vmax.f32 %v4458_v18, %v4462_v45  ;;  %v913_v4 = vmax.f32 %v912_v40, %v4453_v42  ;;  %7530 = vst [vmem:[#allocation48_spill] sm:$0xff] %v4471_v59 }
 0x189   : > { %v914_v21 = vmax.f32 %v913_v4, %v4464_v3  ;;  %v918_v41 = vmax.f32 %v917_v16, %v4466_v27  ;;  %v310_v3 = vld [vmem:[%s4196_s23 + $0x70] sm:$0xff] }
 0x18b   : > { %915 = vmax.xlane.f32.xlu1 %v914_v21  ;;  %v919_v11 = vmax.f32 %v918_v41, %v4471_v59 }
 0x18d   : > { %920 = vmax.xlane.f32.xlu0 %v919_v11 }
 0x18e   : > { %v4476_v47 = vpop.f32.mrb[32].mxu0  ;;  %v4478_v1 = vpop.f32.mrb[32].mxu1 }
 0x18f   : > { %v4480_v12 = vpop.f32.mrb[33].mxu0  ;;  %v4482_v45 = vpop.f32.mrb[33].mxu1  ;;  %v1960_v24 = vmul.f32 2.0, %v4478_v1 }
 0x190   : > { %v4484_v40 = vpop.f32.mrb[34].mxu0  ;;  %v4486_v62 = vpop.f32.mrb[34].mxu1  ;;  %v1961_v6 = vmul.f32 2.0, %v4482_v45 }
 0x191   : > { %v4488_v4 = vpop.f32.mrb[35].mxu0  ;;  %v4490_v16 = vpop.f32.mrb[35].mxu1 }
 0x196   : > { %v4492_v41 = vpop.f32.mrb[36].mxu0  ;;  %v4494_v21 = vpop.f32.mrb[36].mxu1 }
 0x197   : > { %7531 = vst [vmem:[#allocation49_spill] sm:$0xff] %v4492_v41  ;;  %7532 = vst [vmem:[#allocation50_spill] sm:$0xff] %v4494_v21  ;;  %v4496_v11 = vpop.f32.mrb[37].mxu0  ;;  %v4498_v59 = vpop.f32.mrb[37].mxu1 }
 0x198   : > { %7533 = vst [vmem:[#allocation51_spill] sm:$0xff] %v4496_v11  ;;  %7534 = vst [vmem:[#allocation52_spill] sm:$0xff] %v4498_v59  ;;  %v4500_v27 = vpop.f32.mrb[38].mxu0  ;;  %v4502_v18 = vpop.f32.mrb[38].mxu1  ;;  %v311_v11 = vld [vmem:[%s4196_s23 + $0x78] sm:$0xff] }
 0x199   : > { %7535 = vst [vmem:[#allocation53_spill] sm:$0xff] %v4500_v27  ;;  %7536 = vst [vmem:[#allocation54_spill] sm:$0xff] %v4502_v18  ;;  %v4505_v42 = vpop.f32.mrb[39].mxu0  ;;  %v4507_v63 = vpop.f32.mrb[39].mxu1 }
 0x19a   : > { %7537 = vst [vmem:[#allocation55_spill] sm:$0xff] %v4505_v42  ;;  %7538 = vst [vmem:[#allocation56_spill] sm:$0xff] %v4507_v63  ;;  %v4526_v63 = vpop.permute.xlu1 %1118 }
 0x19c   : > { %1157 = vperm.xlu1 %3255, %v310_v3  }
 0x19e   : > { %v4509_v0 = vpop.f32.mrb[40].mxu0  ;;  %v4511_v34 = vpop.f32.mrb[40].mxu1 }
 0x19f   : > { %7539 = vst [vmem:[#allocation57_spill] sm:$0xff] %v4509_v0  ;;  %7540 = vst [vmem:[#allocation58_spill] sm:$0xff] %v4511_v34  ;;  %v4513_v41 = vpop.f32.mrb[41].mxu0  ;;  %v4515_v21 = vpop.f32.mrb[41].mxu1 }
 0x1a0   : > { %7541 = vst [vmem:[#allocation59_spill] sm:$0xff] %v4513_v41  ;;  %7542 = vst [vmem:[#allocation60_spill] sm:$0xff] %v4515_v21  ;;  %v4518_v59 = vpop.f32.mrb[42].mxu0  ;;  %v4520_v27 = vpop.f32.mrb[42].mxu1 }
 0x1a1   : > { %7543 = vst [vmem:[#allocation61_spill] sm:$0xff] %v4518_v59  ;;  %7544 = vst [vmem:[#allocation62_spill] sm:$0xff] %v4520_v27  ;;  %v4522_v18 = vpop.f32.mrb[43].mxu0  ;;  %v4524_v28 = vpop.f32.mrb[43].mxu1 }
 0x1a2   : > { %7545 = vst [vmem:[#allocation63_spill] sm:$0xff] %v4522_v18  ;;  %7546 = vst [vmem:[#allocation64_spill] sm:$0xff] %v4524_v28  ;;  %v4544_v28 = vpop.permute.xlu1 %1124 }
 0x1a3   : > { %1160 = vperm.xlu0 %3254, %v311_v11  }
 0x1a6   : > { %v4528_v3 = vpop.f32.mrb[44].mxu0  ;;  %v4530_v0 = vpop.f32.mrb[44].mxu1 }
 0x1a7   : > { %7547 = vst [vmem:[#allocation65_spill] sm:$0xff] %v4528_v3  ;;  %7548 = vst [vmem:[#allocation66_spill] sm:$0xff] %v4530_v0  ;;  %v4532_v34 = vpop.f32.mrb[45].mxu0  ;;  %v4534_v41 = vpop.f32.mrb[45].mxu1 }
 0x1a8   : > { %7549 = vst [vmem:[#allocation67_spill] sm:$0xff] %v4532_v34  ;;  %7550 = vst [vmem:[#allocation68_spill] sm:$0xff] %v4534_v41  ;;  %v4536_v21 = vpop.f32.mrb[46].mxu0  ;;  %v4538_v59 = vpop.f32.mrb[46].mxu1 }
 0x1a9   : > { %7551 = vst [vmem:[#allocation69_spill] sm:$0xff] %v4536_v21  ;;  %7552 = vst [vmem:[#allocation70_spill] sm:$0xff] %v4538_v59  ;;  %v4540_v27 = vpop.f32.mrb[47].mxu0  ;;  %v4542_v18 = vpop.f32.mrb[47].mxu1 }
 0x1aa   : > { %7553 = vst [vmem:[#allocation71_spill] sm:$0xff] %v4540_v27  ;;  %7554 = vst [vmem:[#allocation72_spill] sm:$0xff] %v4542_v18  ;;  %v4562_v27 = vpop.permute.xlu1 %1130 }
 0x1ae   : > { %v4546_v11 = vpop.f32.mrb[48].mxu0  ;;  %v4548_v42 = vpop.f32.mrb[48].mxu1 }
 0x1af   : > { %7555 = vst [vmem:[#allocation73_spill] sm:$0xff] %v4546_v11  ;;  %7556 = vst [vmem:[#allocation74_spill] sm:$0xff] %v4548_v42  ;;  %v4550_v3 = vpop.f32.mrb[49].mxu0  ;;  %v4552_v0 = vpop.f32.mrb[49].mxu1 }
 0x1b0   : > { %7557 = vst [vmem:[#allocation75_spill] sm:$0xff] %v4550_v3  ;;  %7558 = vst [vmem:[#allocation76_spill] sm:$0xff] %v4552_v0  ;;  %v4554_v34 = vpop.f32.mrb[50].mxu0  ;;  %v4556_v41 = vpop.f32.mrb[50].mxu1 }
 0x1b1   : > { %7559 = vst [vmem:[#allocation77_spill] sm:$0xff] %v4554_v34  ;;  %7560 = vst [vmem:[#allocation78_spill] sm:$0xff] %v4556_v41  ;;  %v4558_v21 = vpop.f32.mrb[51].mxu0  ;;  %v4560_v59 = vpop.f32.mrb[51].mxu1 }
 0x1b2   : > { %7561 = vst [vmem:[#allocation79_spill] sm:$0xff] %v4558_v21  ;;  %7562 = vst [vmem:[#allocation80_spill] sm:$0xff] %v4560_v59  ;;  %v4580_v21 = vpop.permute.xlu1 %1133 }
 0x1b3   : > { %7571 = vst [vmem:[#allocation89_spill] sm:$0xff] %v4580_v21 }
 0x1b6   : > { %v4564_v18 = vpop.f32.mrb[52].mxu0  ;;  %v4566_v14 = vpop.f32.mrb[52].mxu1 }
 0x1b7   : > { %7563 = vst [vmem:[#allocation81_spill] sm:$0xff] %v4564_v18  ;;  %7564 = vst [vmem:[#allocation82_spill] sm:$0xff] %v4566_v14  ;;  %v4568_v11 = vpop.f32.mrb[53].mxu0  ;;  %v4570_v42 = vpop.f32.mrb[53].mxu1 }
 0x1b8   : > { %7565 = vst [vmem:[#allocation83_spill] sm:$0xff] %v4568_v11  ;;  %7566 = vst [vmem:[#allocation84_spill] sm:$0xff] %v4570_v42  ;;  %v4572_v3 = vpop.f32.mrb[54].mxu0  ;;  %v4574_v0 = vpop.f32.mrb[54].mxu1 }
 0x1b9   : > { %7567 = vst [vmem:[#allocation85_spill] sm:$0xff] %v4572_v3  ;;  %7568 = vst [vmem:[#allocation86_spill] sm:$0xff] %v4574_v0  ;;  %v4576_v34 = vpop.f32.mrb[55].mxu0  ;;  %v4578_v41 = vpop.f32.mrb[55].mxu1 }
 0x1ba   : > { %7569 = vst [vmem:[#allocation87_spill] sm:$0xff] %v4576_v34  ;;  %7570 = vst [vmem:[#allocation88_spill] sm:$0xff] %v4578_v41  ;;  %v4598_v34 = vpop.permute.xlu1 %1136 }
 0x1bb   : > { %7580 = vst [vmem:[#allocation98_spill] sm:$0xff] %v4598_v34 }
 0x1be   : > { %v4582_v59 = vpop.f32.mrb[56].mxu0  ;;  %v4584_v55 = vpop.f32.mrb[56].mxu1 }
 0x1bf   : > { %7572 = vst [vmem:[#allocation90_spill] sm:$0xff] %v4582_v59  ;;  %7573 = vst [vmem:[#allocation91_spill] sm:$0xff] %v4584_v55  ;;  %v4586_v18 = vpop.f32.mrb[57].mxu0  ;;  %v4588_v14 = vpop.f32.mrb[57].mxu1 }
 0x1c0   : > { %7574 = vst [vmem:[#allocation92_spill] sm:$0xff] %v4586_v18  ;;  %7575 = vst [vmem:[#allocation93_spill] sm:$0xff] %v4588_v14  ;;  %v4590_v11 = vpop.f32.mrb[58].mxu0  ;;  %v4592_v42 = vpop.f32.mrb[58].mxu1 }
 0x1c1   : > { %7576 = vst [vmem:[#allocation94_spill] sm:$0xff] %v4590_v11  ;;  %7577 = vst [vmem:[#allocation95_spill] sm:$0xff] %v4592_v42  ;;  %v4594_v3 = vpop.f32.mrb[59].mxu0  ;;  %v4596_v0 = vpop.f32.mrb[59].mxu1 }
 0x1c2   : > { %7578 = vst [vmem:[#allocation96_spill] sm:$0xff] %v4594_v3  ;;  %7579 = vst [vmem:[#allocation97_spill] sm:$0xff] %v4596_v0  ;;  %v4616_v3 = vpop.permute.xlu0 %1115  ;;  %v4618_v0 = vpop.permute.xlu1 %1139 }
 0x1c3   : > { %7589 = vst [vmem:[#allocation107_spill] sm:$0xff] %v4618_v0  ;;  %v1958_v0 = vmul.f32 2.0, %v4476_v47 }
 0x1c6   : > { %v4600_v41 = vpop.f32.mrb[60].mxu0  ;;  %v4602_v56 = vpop.f32.mrb[60].mxu1 }
 0x1c7   : > { %7581 = vst [vmem:[#allocation99_spill] sm:$0xff] %v4600_v41  ;;  %7582 = vst [vmem:[#allocation100_spill] sm:$0xff] %v4602_v56  ;;  %v4604_v59 = vpop.f32.mrb[61].mxu0  ;;  %v4606_v55 = vpop.f32.mrb[61].mxu1  ;;  %v7402_v56 = vlaneseq }
 0x1c8   : > { %7583 = vst [vmem:[#allocation101_spill] sm:$0xff] %v4604_v59  ;;  %7584 = vst [vmem:[#allocation102_spill] sm:$0xff] %v4606_v55  ;;  %v4608_v18 = vpop.f32.mrb[62].mxu0  ;;  %v4610_v14 = vpop.f32.mrb[62].mxu1 }
 0x1c9   : > { %7585 = vst [vmem:[#allocation103_spill] sm:$0xff] %v4608_v18  ;;  %7586 = vst [vmem:[#allocation104_spill] sm:$0xff] %v4610_v14  ;;  %v4612_v11 = vpop.f32.mrb[63].mxu0  ;;  %v4614_v42 = vpop.f32.mrb[63].mxu1  ;;  %v4627_v55 = vshrl.u32 %v7402_v56, 7 }
 0x1ca   : > { %7587 = vst [vmem:[#allocation105_spill] sm:$0xff] %v4612_v11  ;;  %7588 = vst [vmem:[#allocation106_spill] sm:$0xff] %v4614_v42  ;;  %v4620_v44 = vpop.permute.xlu0 %1121  ;;  %v4622_v41 = vpop.permute.xlu1 %1145  ;;  %v295_v11 = vld [vmem:[%s7365_s6] sm:$0xf] }
 0x1cb   : > { %7590 = vst [vmem:[#allocation108_spill] sm:$0xff] %v4622_v41  ;;  %7591 = vst [vmem:[#allocation109_spill] sm:$0xff] %v4627_v55  ;;  %vm1242_vm0 = vcmp.ge.s32.totalorder %v295_v11, 0  ;;  %v1164_v42 = vsub.s32 0, %v4627_v55  ;;  %v1168_v18 = vsub.s32 1, %v4627_v55  ;;  %v1172_v32 = vsub.s32 2, %v4627_v55 }
 0x1cc   : > { %v1176_v25 = vsub.s32 3, %v4627_v55  ;;  %v1243_v56 = vsel %vm1242_vm0, 1, %v7594_v22 }
 0x1cd   : > { %v4647_v7 = vrot.slane %v295_v11, %v1164_v42  ;;  %v4649_v2 = vrot.slane %v295_v11, %v1168_v18  ;;  %v4651_v34 = vrot.slane %v295_v11, %v1172_v32  ;;  %v4655_v55 = vrot.slane %v1243_v56, %v1168_v18 }
 0x1ce   : > { %v4624_v59 = vpop.permute.xlu0 %1127  ;;  %v4632_v14 = vpop.permute.xlu1 %1148  ;;  %v4671_v43 = vrot.slane %v1243_v56, %v1172_v32 }
 0x1cf   : > { %7592 = vst [vmem:[#allocation110_spill] sm:$0xff] %v4632_v14  ;;  %v1959_v14 = vmul.f32 2.0, %v4480_v12  ;;  %vm1178_vm1 = vcmp.ne.s32.totalorder %v4616_v3, %v4647_v7  ;;  %vm1179_vm2 = vcmp.ne.s32.totalorder %v4616_v3, %v4649_v2  ;;  %vm1180_vm4 = vcmp.ne.s32.totalorder %v4616_v3, %v4651_v34 }
 0x1d0   : > { %vm1261_vm5 = vcmp.eq.s32.totalorder %v4655_v55, 1  ;;  %vm1182_vm6 = vcmp.ne.s32.totalorder %v4526_v63, %v4647_v7  ;;  %vm1183_vm7 = vcmp.ne.s32.totalorder %v4526_v63, %v4649_v2  ;;  %vm1184_vm8 = vcmp.ne.s32.totalorder %v4526_v63, %v4651_v34  ;;  %v7745_v55 = vld [vmem:[#allocation50_spill] sm:$0xff] }
 0x1d1   : > { %vm1186_vm9 = vcmp.ne.s32.totalorder %v4620_v44, %v4647_v7  ;;  %vm1262_vm10 = vcmp.eq.s32.totalorder %v4671_v43, 1  ;;  %vm4755_vm12 = vmand %vm1179_vm2, %vm1261_vm5  ;;  %vm1191_vm13 = vcmp.ne.s32.totalorder %v4544_v28, %v4649_v2 }
 0x1d2   : > { %v4637_v41 = vpop.permute.xlu0 %1142  ;;  %v4641_v15 = vpop.permute.xlu1 %1151  ;;  %vm4772_vm2 = vmand %vm1180_vm4, %vm1262_vm10 }
 0x1d3   : > { %7593 = vst [vmem:[#allocation111_spill] sm:$0xff] %v4637_v41  ;;  %7595 = vst [vmem:[#allocation112_spill] sm:$0xff] %v4641_v15  ;;  %v4653_v41 = vrot.slane %v1243_v56, %v1164_v42  ;;  %v4657_v15 = vrot.slane %v295_v11, %v1176_v25 }
 0x1d5   : > { %vm1260_vm3 = vcmp.eq.s32.totalorder %v4653_v41, 1  ;;  %vm1185_vm11 = vcmp.ne.s32.totalorder %v4526_v63, %v4657_v15  ;;  %vm1181_vm14 = vcmp.ne.s32.totalorder %v4616_v3, %v4657_v15 }
 0x1d6   : > { %vm4744_vm0 = vmand %vm1178_vm1, %vm1260_vm3  ;;  %vm1189_vm1 = vcmp.ne.s32.totalorder %v4620_v44, %v4657_v15 }
 0x1e0   : > { %v846_v22 = vpop.xlane.xlu0 %845 }
 0x1e1   : > { %v922_v47 = vsub.f32 %v4284_v26, %v846_v22  ;;  %v923_v1 = vsub.f32 %v4288_v30, %v846_v22  ;;  %v924_v12 = vsub.f32 %v4286_v29, %v846_v22  ;;  %v925_v45 = vsub.f32 %v4296_v38, %v846_v22  ;;  %v4673_v26 = vpop.permute.xlu1 %1154 }
 0x1e2   : > { %v4663_v57 = vsub.f32 %v1958_v0, %v846_v22  ;;  %v4665_v53 = vsub.f32 %v1959_v14, %v846_v22  ;;  %v4667_v48 = vsub.f32 %v1960_v24, %v846_v22  ;;  %v4669_v42 = vsub.f32 %v1961_v6, %v846_v22 }
 0x1e3   : > { %v986_v18 = vmul.f32 1.442695, %v922_v47  ;;  %v988_v21 = vmul.f32 1.442695, %v923_v1  ;;  %v990_v11 = vmul.f32 1.442695, %v924_v12  ;;  %v4679_v24 = vrot.slane %v1243_v56, %v1176_v25 }
 0x1e4   : > { %v1962_v29 = vmul.f32 2.0, %v4484_v40  ;;  %v1963_v30 = vmul.f32 2.0, %v4488_v4  ;;  %v851_v38 = vpop.xlane.xlu0 %850  ;;  %v992_v14 = vmul.f32 1.442695, %v925_v45  ;;  %v1964_v40 = vmul.f32 2.0, %v4486_v62 }
 0x1e5   : > { %3344 = vpow2.f32 %v986_v18  ;;  %v926_v6 = vsub.f32 %v4290_v33, %v851_v38  ;;  %v927_v32 = vsub.f32 %v4294_v37, %v851_v38  ;;  %v928_v0 = vsub.f32 %v4298_v39, %v851_v38 }
 0x1e6   : > { %v1965_v25 = vmul.f32 2.0, %v4490_v16  ;;  %3346 = vpow2.f32 %v988_v21  ;;  %v929_v56 = vsub.f32 %v4307_v49, %v851_v38  ;;  %v4697_v47 = vsub.f32 %v1962_v29, %v851_v38 }
 0x1e7   : > { %3348 = vpow2.f32 %v990_v11  ;;  %v994_v33 = vmul.f32 1.442695, %v926_v6  ;;  %v996_v4 = vmul.f32 1.442695, %v927_v32  ;;  %v998_v37 = vmul.f32 1.442695, %v928_v0 }
 0x1e8   : > { %v4695_v39 = vpop.xlane.xlu1 %855  ;;  %3350 = vpow2.f32 %v992_v14  ;;  %v1000_v22 = vmul.f32 1.442695, %v929_v56  ;;  %v4699_v62 = vsub.f32 %v1963_v30, %v851_v38  ;;  %v4713_v12 = vsub.f32 %v1964_v40, %v851_v38 }
 0x1e9   : > { %3352 = vpow2.f32 %v994_v33  ;;  %v930_v49 = vsub.f32 %v4305_v46, %v4695_v39  ;;  %v931_v16 = vsub.f32 %v4311_v51, %v4695_v39  ;;  %v932_v21 = vsub.f32 %v4309_v50, %v4695_v39 }
 0x1ea   : > { %3354 = vpow2.f32 %v996_v4  ;;  %v933_v1 = vsub.f32 %v4320_v60, %v4695_v39  ;;  %7596 = vst [vmem:[#allocation113_spill] sm:$0xff] %v4713_v12  ;;  %v4715_v45 = vsub.f32 %v1965_v25, %v851_v38  ;;  %vm1263_vm15 = vcmp.eq.s32.totalorder %v4679_v24, 1 }
 0x1eb   : > { %3356 = vpow2.f32 %v998_v37  ;;  %v1002_v18 = vmul.f32 1.442695, %v930_v49  ;;  %v1004_v46 = vmul.f32 1.442695, %v931_v16  ;;  %v1006_v11 = vmul.f32 1.442695, %v932_v21  ;;  %vm4789_vm4 = vmand %vm1181_vm14, %vm1263_vm15 }
 0x1ec   : > { %7597 = vst [vmem:[#allocation114_spill] sm:$0xff] %v4715_v45  ;;  %v4719_v51 = vpop.xlane.xlu1 %860  ;;  %3358 = vpow2.f32 %v1000_v22  ;;  %v1008_v50 = vmul.f32 1.442695, %v933_v1  ;;  %vm1193_vm14 = vcmp.ne.s32.totalorder %v4544_v28, %v4657_v15  ;;  %v2088_v43 = vmul.f32 1.442695, %v4665_v53 }
 0x1ed   : > { %3360 = vpow2.f32 %v1002_v18  ;;  %v934_v60 = vsub.f32 %v4313_v54, %v4719_v51  ;;  %v935_v29 = vsub.f32 %v4317_v58, %v4719_v51  ;;  %v936_v30 = vsub.f32 %v4322_v61, %v4719_v51 }
 0x1ee   : > { %3362 = vpow2.f32 %v1004_v46  ;;  %v937_v38 = vsub.f32 %v4331_v8, %v4719_v51 }
 0x1ef   : > { %v3345_v14 = vpop.eup %3344  ;;  %3364 = vpow2.f32 %v1006_v11  ;;  %v1010_v58 = vmul.f32 1.442695, %v934_v60  ;;  %v1012_v61 = vmul.f32 1.442695, %v935_v29  ;;  %v1014_v6 = vmul.f32 1.442695, %v936_v30 }
 0x1f0   : > { %v3347_v32 = vpop.eup %3346  ;;  %v4759_v0 = vpop.xlane.xlu0 %865  ;;  %v1328_v40 = vsel %vm4744_vm0, %v3345_v14, 0.0  ;;  %3366 = vpow2.f32 %v1008_v50  ;;  %v1016_v25 = vmul.f32 1.442695, %v937_v38  ;;  %vm1192_vm0 = vcmp.ne.s32.totalorder %v4544_v28, %v4651_v34 }
 0x1f1   : > { %v3349_v56 = vpop.eup %3348  ;;  %v1329_v4 = vsel %vm4755_vm12, %v3347_v32, 0.0  ;;  %3368 = vpow2.f32 %v1010_v58  ;;  %v938_v37 = vsub.f32 %v4329_v5, %v4759_v0  ;;  %v939_v22 = vsub.f32 %v4335_v10, %v4759_v0  ;;  %vm4802_vm12 = vmand %vm1182_vm6, %vm1260_vm3 }
 0x1f2   : > { %v3351_v49 = vpop.eup %3350  ;;  %v1330_v21 = vsel %vm4772_vm2, %v3349_v56, 0.0  ;;  %v1392_v5 = vadd.f32 %v1329_v4, %v1328_v40  ;;  %3370 = vpow2.f32 %v1012_v61  ;;  %v940_v10 = vsub.f32 %v4333_v9, %v4759_v0  ;;  %vm4817_vm6 = vmand %vm1183_vm7, %vm1261_vm5  ;;  %v4823_v60 = vpop.xlane.xlu1 %870 }
 0x1f3   : > { %v3353_v1 = vpop.eup %3352  ;;  %v1331_v18 = vsel %vm4789_vm4, %v3351_v49, 0.0  ;;  %3372 = vpow2.f32 %v1014_v6  ;;  %v941_v9 = vsub.f32 %v4344_v19, %v4759_v0  ;;  %v1018_v46 = vmul.f32 1.442695, %v938_v37  ;;  %vm4834_vm7 = vmand %vm1184_vm8, %vm1262_vm10 }
 0x1f4   : > { %v3355_v11 = vpop.eup %3354  ;;  %vm1194_vm2 = vcmp.ne.s32.totalorder %v4624_v59, %v4647_v7  ;;  %v1393_v29 = vadd.f32 %v1392_v5, %v1330_v21  ;;  %v1332_v19 = vsel %vm4802_vm12, %v3353_v1, 0.0  ;;  %3374 = vpow2.f32 %v1016_v25  ;;  %vm4847_vm8 = vmand %vm1185_vm11, %vm1263_vm15 }
 0x1f5   : > { %v1020_v30 = vmul.f32 1.442695, %v939_v22  ;;  %v3357_v38 = vpop.eup %3356  ;;  %vm1195_vm4 = vcmp.ne.s32.totalorder %v4624_v59, %v4649_v2  ;;  %v1333_v54 = vsel %vm4817_vm6, %v3355_v11, 0.0  ;;  %3376 = vpow2.f32 %v1018_v46  ;;  %vm4858_vm6 = vmand %vm1186_vm9, %vm1260_vm3 }
 0x1f6   : > { %v1022_v58 = vmul.f32 1.442695, %v940_v10  ;;  %v1024_v61 = vmul.f32 1.442695, %v941_v9  ;;  %v3359_v6 = vpop.eup %3358  ;;  %vm1196_vm12 = vcmp.ne.s32.totalorder %v4624_v59, %v4651_v34  ;;  %v1394_v32 = vadd.f32 %v1393_v29, %v1331_v18  ;;  %v7636_v10 = vld [vmem:[#allocation89_spill] sm:$0xff] }
 0x1f7   : > { %v1334_v40 = vsel %vm4834_vm7, %v3357_v38, 0.0  ;;  %v1397_v25 = vadd.f32 %v1333_v54, %v1332_v19  ;;  %3378 = vpow2.f32 %v1020_v30  ;;  %v3361_v56 = vpop.eup %3360  ;;  %v1335_v63 = vsel %vm4847_vm8, %v3359_v6, 0.0 }
 0x1f8   : > { %3380 = vpow2.f32 %v1022_v58  ;;  %vm1197_vm11 = vcmp.ne.s32.totalorder %v4624_v59, %v4657_v15  ;;  %v942_v4 = vsub.f32 %v4337_v13, %v4823_v60  ;;  %v943_v37 = vsub.f32 %v4341_v17, %v4823_v60  ;;  %v3363_v22 = vpop.eup %3362  ;;  %1395 = vadd.xlane.f32.xlu1 %v1394_v32  ;;  %v4879_v16 = vpop.xlane.xlu0 %875 }
 0x1f9   : > { %vm7616_vm9 = vcmp.ne.s32.totalorder %v4620_v44, %v4649_v2  ;;  %v1398_v21 = vadd.f32 %v1397_v25, %v1334_v40  ;;  %v1336_v13 = vsel %vm4858_vm6, %v3361_v56, 0.0  ;;  %3382 = vpow2.f32 %v1024_v61  ;;  %v3365_v5 = vpop.eup %3364  ;;  %v7646_v40 = vld [vmem:[#allocation98_spill] sm:$0xff] }
 0x1fa   : > { %vm4875_vm7 = vmand %vm7616_vm9, %vm1261_vm5  ;;  %v944_v17 = vsub.f32 %v4346_v20, %v4823_v60  ;;  %vm7619_vm8 = vcmp.ne.s32.totalorder %v4620_v44, %v4651_v34  ;;  %v945_v3 = vsub.f32 %v4351_v23, %v4823_v60  ;;  %v1026_v18 = vmul.f32 1.442695, %v942_v4  ;;  %v3367_v46 = vpop.eup %3366  ;;  %v4937_v61 = vpop.xlane.xlu1 %880 }
 0x1fb   : > { %vm4890_vm9 = vmand %vm7619_vm8, %vm1262_vm10  ;;  %v1337_v1 = vsel %vm4875_vm7, %v3363_v22, 0.0  ;;  %v1028_v9 = vmul.f32 1.442695, %v943_v37  ;;  %v1399_v20 = vadd.f32 %v1398_v21, %v1335_v63  ;;  %v3369_v19 = vpop.eup %3368  ;;  %vm7624_vm7 = vcmp.ne.s32.totalorder %v4544_v28, %v4647_v7 }
 0x1fc   : > { %vm4905_vm8 = vmand %vm1189_vm1, %vm1263_vm15  ;;  %v1338_v50 = vsel %vm4890_vm9, %v3365_v5, 0.0  ;;  %v1402_v23 = vadd.f32 %v1337_v1, %v1336_v13  ;;  %v1030_v29 = vmul.f32 1.442695, %v944_v17  ;;  %vm1199_vm1 = vcmp.ne.s32.totalorder %v4562_v27, %v4649_v2  ;;  %v3371_v54 = vpop.eup %3370  ;;  %v7635_v13 = vld [vmem:[#allocation13_spill] sm:$0xff] }
 0x1fd   : > { %vm4916_vm6 = vmand %vm7624_vm7, %vm1260_vm3  ;;  %v1339_v44 = vsel %vm4905_vm8, %v3367_v46, 0.0  ;;  %3384 = vpow2.f32 %v1026_v18  ;;  %v1032_v38 = vmul.f32 1.442695, %v945_v3  ;;  %v946_v14 = vsub.f32 %v4355_v31, %v4879_v16  ;;  %1400 = vadd.xlane.f32.xlu0 %v1399_v20  ;;  %v3373_v8 = vpop.eup %3372 }
 0x1fe   : > { %vm4931_vm9 = vmand %vm1191_vm13, %vm1261_vm5  ;;  %vm1200_vm7 = vcmp.ne.s32.totalorder %v4562_v27, %v4651_v34  ;;  %v1403_v6 = vadd.f32 %v1402_v23, %v1338_v50  ;;  %v1340_v31 = vsel %vm4916_vm6, %v3369_v19, 0.0  ;;  %3386 = vpow2.f32 %v1028_v9  ;;  %v3375_v33 = vpop.eup %3374  ;;  %v7641_v23 = vld [vmem:[#allocation14_spill] sm:$0xff]  ;;  %v7642_v19 = vld [vmem:[#allocation15_spill] sm:$0xff] }
 0x1ff   : > { %v947_v32 = vsub.f32 %v4359_v36, %v4879_v16  ;;  %vm4948_vm13 = vmand %vm1192_vm0, %vm1262_vm10  ;;  %v1341_v25 = vsel %vm4931_vm9, %v3371_v54, 0.0  ;;  %3388 = vpow2.f32 %v1030_v29  ;;  %vm1201_vm6 = vcmp.ne.s32.totalorder %v4562_v27, %v4657_v15 }
 0x200   : > { %v948_v36 = vsub.f32 %v4357_v35, %v4879_v16  ;;  %v949_v56 = vsub.f32 %v4368_v52, %v4879_v16  ;;  %v1404_v63 = vadd.f32 %v1403_v6, %v1339_v44  ;;  %vm4965_vm0 = vmand %vm1193_vm14, %vm1263_vm15  ;;  %v1342_v37 = vsel %vm4948_vm13, %v3373_v8, 0.0  ;;  %v3377_v35 = vpop.eup %3376 }
 0x201   : > { %v1407_v22 = vadd.f32 %v1341_v25, %v1340_v31  ;;  %3390 = vpow2.f32 %v1032_v38  ;;  %vm4976_vm8 = vmand %vm1194_vm2, %vm1260_vm3  ;;  %v1343_v28 = vsel %vm4965_vm0, %v3375_v33, 0.0  ;;  %v1034_v49 = vmul.f32 1.442695, %v946_v14  ;;  %v3379_v5 = vpop.eup %3378  ;;  %v5016_v38 = vpop.xlane.xlu0 %885 }
 0x202   : > { %v1036_v21 = vmul.f32 1.442695, %v947_v32  ;;  %v950_v17 = vsub.f32 %v7635_v13, %v4937_v61  ;;  %vm1202_vm14 = vcmp.ne.s32.totalorder %v7636_v10, %v4647_v7  ;;  %vm4991_vm2 = vmand %vm1195_vm4, %vm1261_vm5  ;;  %1405 = vadd.xlane.f32.xlu0 %v1404_v63  ;;  %v1344_v18 = vsel %vm4976_vm8, %v3377_v35, 0.0  ;;  %v3381_v20 = vpop.eup %3380  ;;  %v7645_v32 = vld [vmem:[#allocation16_spill] sm:$0xff]  ;;  %v7651_v35 = vld [vmem:[#allocation19_spill] sm:$0xff] }
 0x203   : > { %v1408_v3 = vadd.f32 %v1407_v22, %v1342_v37  ;;  %v1038_v9 = vmul.f32 1.442695, %v948_v36  ;;  %v1040_v46 = vmul.f32 1.442695, %v949_v56  ;;  %vm1203_vm9 = vcmp.ne.s32.totalorder %v7636_v10, %v4649_v2  ;;  %vm5004_vm4 = vmand %vm1196_vm12, %vm1262_vm10  ;;  %v3383_v44 = vpop.eup %3382  ;;  %v7650_v37 = vld [vmem:[#allocation17_spill] sm:$0xff]  ;;  %v7666_v63 = vld [vmem:[#allocation24_spill] sm:$0xff] }
 0x204   : > { %v1345_v50 = vsel %vm4991_vm2, %v3379_v5, 0.0  ;;  %3392 = vpow2.f32 %v1034_v49  ;;  %v951_v29 = vsub.f32 %v7641_v23, %v4937_v61  ;;  %v952_v30 = vsub.f32 %v7642_v19, %v4937_v61  ;;  %vm5023_vm12 = vmand %vm1197_vm11, %vm1263_vm15  ;;  %v7658_v23 = vld [vmem:[#allocation107_spill] sm:$0xff] }
 0x205   : > { %vm1204_vm13 = vcmp.ne.s32.totalorder %v7636_v10, %v4651_v34  ;;  %v1409_v14 = vadd.f32 %v1408_v3, %v1343_v28  ;;  %v1346_v58 = vsel %vm5004_vm4, %v3381_v20, 0.0  ;;  %v1412_v6 = vadd.f32 %v1345_v50, %v1344_v18  ;;  %v5067_v3 = vpop.xlane.xlu1 %890 }
 0x206   : > { %3394 = vpow2.f32 %v1036_v21  ;;  %v1347_v31 = vsel %vm5023_vm12, %v3383_v44, 0.0  ;;  %vm1205_vm0 = vcmp.ne.s32.totalorder %v7636_v10, %v4657_v15  ;;  %v953_v8 = vsub.f32 %v7645_v32, %v4937_v61  ;;  %vm5057_vm12 = vmand %vm1199_vm1, %vm1261_vm5  ;;  %v7678_v10 = vld [vmem:[#allocation108_spill] sm:$0xff] }
 0x207   : > { %3396 = vpow2.f32 %v1038_v9  ;;  %v1042_v59 = vmul.f32 1.442695, %v950_v17  ;;  %vm1206_vm11 = vcmp.ne.s32.totalorder %v7646_v40, %v4647_v7  ;;  %1410 = vadd.xlane.f32.xlu1 %v1409_v14  ;;  %v1413_v25 = vadd.f32 %v1412_v6, %v1346_v58  ;;  %v3385_v33 = vpop.eup %3384  ;;  %v7654_v17 = vld [vmem:[#allocation18_spill] sm:$0xff]  ;;  %vm5074_vm1 = vmand %vm1200_vm7, %vm1262_vm10 }
 0x208   : > { %3398 = vpow2.f32 %v1040_v46  ;;  %v1044_v36 = vmul.f32 1.442695, %v951_v29  ;;  %v1046_v56 = vmul.f32 1.442695, %v952_v30  ;;  %vm7647_vm8 = vcmp.ne.s32.totalorder %v4562_v27, %v4647_v7  ;;  %v3387_v28 = vpop.eup %3386  ;;  %v7657_v46 = vld [vmem:[#allocation22_spill] sm:$0xff]  ;;  %v5086_v29 = vpop.xlane.xlu0 %895  ;;  %vm5093_vm7 = vmand %vm1201_vm6, %vm1263_vm15 }
 0x209   : > { %vm5042_vm2 = vmand %vm7647_vm8, %vm1260_vm3  ;;  %vm1207_vm4 = vcmp.ne.s32.totalorder %v7646_v40, %v4649_v2  ;;  %3400 = vpow2.f32 %v1042_v59  ;;  %v1048_v4 = vmul.f32 1.442695, %v953_v8  ;;  %v954_v22 = vsub.f32 %v7650_v37, %v5016_v38  ;;  %v3389_v1 = vpop.eup %3388  ;;  %v7662_v8 = vld [vmem:[#allocation21_spill] sm:$0xff] }
 0x20a   : > { %v955_v52 = vsub.f32 %v7651_v35, %v5016_v38  ;;  %v1414_v21 = vadd.f32 %v1413_v25, %v1347_v31  ;;  %v1348_v13 = vsel %vm5042_vm2, %v3385_v33, 0.0  ;;  %3402 = vpow2.f32 %v1044_v36  ;;  %v7661_v31 = vld [vmem:[#allocation20_spill] sm:$0xff]  ;;  %v7667_v37 = vld [vmem:[#allocation25_spill] sm:$0xff]  ;;  %vm5144_vm6 = vmand %vm1204_vm13, %vm1262_vm10 }
 0x20b   : > { %v956_v5 = vsub.f32 %v7654_v17, %v5016_v38  ;;  %v1349_v9 = vsel %vm5057_vm12, %v3387_v28, 0.0  ;;  %3404 = vpow2.f32 %v1046_v56  ;;  %vm1209_vm2 = vcmp.ne.s32.totalorder %v7646_v40, %v4657_v15  ;;  %v3391_v50 = vpop.eup %3390  ;;  %v7665_v56 = vld [vmem:[#allocation23_spill] sm:$0xff]  ;;  %vm5159_vm13 = vmand %vm1205_vm0, %vm1263_vm15 }
 0x20c   : > { %v957_v20 = vsub.f32 %v7657_v46, %v5016_v38  ;;  %v1050_v11 = vmul.f32 1.442695, %v954_v22  ;;  %vm1210_vm8 = vcmp.ne.s32.totalorder %v7658_v23, %v4647_v7  ;;  %1415 = vadd.xlane.f32.xlu0 %v1414_v21  ;;  %v1350_v30 = vsel %vm5074_vm1, %v3389_v1, 0.0  ;;  %vm5114_vm1 = vmand %vm1202_vm14, %vm1260_vm3  ;;  %v7670_v17 = vld [vmem:[#allocation111_spill] sm:$0xff] }
 0x20d   : > { %v1417_v44 = vadd.f32 %v1349_v9, %v1348_v13  ;;  %3406 = vpow2.f32 %v1048_v4  ;;  %v1052_v14 = vmul.f32 1.442695, %v955_v52  ;;  %vm1211_vm12 = vcmp.ne.s32.totalorder %v7658_v23, %v4649_v2  ;;  %vm5131_vm14 = vmand %vm1203_vm9, %vm1261_vm5  ;;  %v7673_v46 = vld [vmem:[#allocation27_spill] sm:$0xff] }
 0x20e   : > { %v1351_v54 = vsel %vm5093_vm7, %v3391_v50, 0.0  ;;  %3408 = vpow2.f32 %v1050_v11  ;;  %v1054_v58 = vmul.f32 1.442695, %v956_v5  ;;  %v1056_v6 = vmul.f32 1.442695, %v957_v20  ;;  %v3393_v25 = vpop.eup %3392 }
 0x20f   : > { %v1418_v27 = vadd.f32 %v1417_v44, %v1350_v30  ;;  %3410 = vpow2.f32 %v1052_v14  ;;  %v958_v32 = vsub.f32 %v7661_v31, %v5067_v3  ;;  %v959_v59 = vsub.f32 %v7662_v8, %v5067_v3  ;;  %v7680_v31 = vld [vmem:[#allocation30_spill] sm:$0xff] }
 0x210   : > { %3412 = vpow2.f32 %v1054_v58  ;;  %v960_v33 = vsub.f32 %v7665_v56, %v5067_v3  ;;  %v961_v4 = vsub.f32 %v7666_v63, %v5067_v3  ;;  %v962_v22 = vsub.f32 %v7667_v37, %v5086_v29  ;;  %v3395_v35 = vpop.eup %3394 }
 0x211   : > { %v1419_v28 = vadd.f32 %v1418_v27, %v1351_v54  ;;  %v1352_v49 = vsel %vm5114_vm1, %v3393_v25, 0.0  ;;  %3414 = vpow2.f32 %v1056_v6  ;;  %v1058_v21 = vmul.f32 1.442695, %v958_v32  ;;  %v3397_v13 = vpop.eup %3396  ;;  %vm5170_vm1 = vmand %vm1206_vm11, %vm1260_vm3  ;;  %v7679_v6 = vld [vmem:[#allocation26_spill] sm:$0xff]  ;;  %v5193_v25 = vpop.xlane.xlu1 %900 }
 0x212   : > { %vm1214_vm7 = vcmp.ne.s32.totalorder %v7670_v17, %v4647_v7  ;;  %v1353_v1 = vsel %vm5131_vm14, %v3395_v35, 0.0  ;;  %v1060_v18 = vmul.f32 1.442695, %v959_v59  ;;  %v1062_v9 = vmul.f32 1.442695, %v960_v33  ;;  %v3399_v11 = vpop.eup %3398  ;;  %vm5187_vm11 = vmand %vm1207_vm4, %vm1261_vm5 }
 0x213   : > { %v963_v20 = vsub.f32 %v7673_v46, %v5086_v29  ;;  %vm1215_vm9 = vcmp.ne.s32.totalorder %v7670_v17, %v4649_v2  ;;  %1420 = vadd.xlane.f32.xlu1 %v1419_v28  ;;  %v1354_v19 = vsel %vm5144_vm6, %v3397_v13, 0.0  ;;  %v1422_v30 = vadd.f32 %v1353_v1, %v1352_v49  ;;  %v3401_v14 = vpop.eup %3400  ;;  %v7706_v1 = vld [vmem:[#allocation35_spill] sm:$0xff] }
 0x214   : > { %3416 = vpow2.f32 %v1058_v21  ;;  %v1064_v44 = vmul.f32 1.442695, %v961_v4  ;;  %vm1218_vm0 = vcmp.ne.s32.totalorder %v7678_v10, %v4647_v7  ;;  %v1355_v58 = vsel %vm5159_vm13, %v3399_v11, 0.0  ;;  %v3403_v8 = vpop.eup %3402 }
 0x215   : > { %3418 = vpow2.f32 %v1060_v18  ;;  %v964_v27 = vsub.f32 %v7679_v6, %v5086_v29  ;;  %v965_v32 = vsub.f32 %v7680_v31, %v5086_v29  ;;  %vm1216_vm6 = vcmp.ne.s32.totalorder %v7670_v17, %v4651_v34  ;;  %v3405_v63 = vpop.eup %3404  ;;  %v5247_v50 = vpop.xlane.xlu1 %905 }
 0x216   : > { %v1423_v36 = vadd.f32 %v1422_v30, %v1354_v19  ;;  %v1356_v56 = vsel %vm5170_vm1, %v3401_v14, 0.0  ;;  %3420 = vpow2.f32 %v1062_v9  ;;  %v1066_v33 = vmul.f32 1.442695, %v962_v22  ;;  %v7690_v9 = vld [vmem:[#allocation28_spill] sm:$0xff] }
 0x217   : > { %vm7683_vm4 = vcmp.ne.s32.totalorder %v7646_v40, %v4651_v34  ;;  %v1357_v37 = vsel %vm5187_vm11, %v3403_v8, 0.0  ;;  %3422 = vpow2.f32 %v1064_v44  ;;  %vm1217_vm13 = vcmp.ne.s32.totalorder %v7670_v17, %v4657_v15  ;;  %v3407_v22 = vpop.eup %3406  ;;  %vm5228_vm11 = vmand %vm1210_vm8, %vm1260_vm3  ;;  %v7693_v44 = vld [vmem:[#allocation29_spill] sm:$0xff] }
 0x218   : > { %vm5202_vm14 = vmand %vm7683_vm4, %vm1262_vm10  ;;  %v1068_v35 = vmul.f32 1.442695, %v963_v20  ;;  %v1070_v52 = vmul.f32 1.442695, %v964_v27  ;;  %vm1219_vm1 = vcmp.ne.s32.totalorder %v7678_v10, %v4649_v2  ;;  %v1424_v28 = vadd.f32 %v1423_v36, %v1355_v58  ;;  %v3409_v5 = vpop.eup %3408  ;;  %v7697_v27 = vld [vmem:[#allocation31_spill] sm:$0xff] }
 0x219   : > { %vm5217_vm4 = vmand %vm1209_vm2, %vm1263_vm15  ;;  %v1358_v21 = vsel %vm5202_vm14, %v3405_v63, 0.0  ;;  %v1427_v13 = vadd.f32 %v1357_v37, %v1356_v56  ;;  %3424 = vpow2.f32 %v1066_v33  ;;  %v1072_v18 = vmul.f32 1.442695, %v965_v32  ;;  %v3411_v20 = vpop.eup %3410  ;;  %v7698_v32 = vld [vmem:[#allocation32_spill] sm:$0xff]  ;;  %v7702_v37 = vld [vmem:[#allocation110_spill] sm:$0xff] }
 0x21a   : > { %v1359_v40 = vsel %vm5217_vm4, %v3407_v22, 0.0  ;;  %3426 = vpow2.f32 %v1068_v35  ;;  %v966_v46 = vsub.f32 %v7690_v9, %v5193_v25  ;;  %vm5241_vm2 = vmand %vm1211_vm12, %vm1261_vm5  ;;  %vm1220_vm8 = vcmp.ne.s32.totalorder %v7678_v10, %v4651_v34  ;;  %1425 = vadd.xlane.f32.xlu0 %v1424_v28  ;;  %v3413_v54 = vpop.eup %3412  ;;  %v7703_v28 = vld [vmem:[#allocation33_spill] sm:$0xff] }
 0x21b   : > { %v1428_v19 = vadd.f32 %v1427_v13, %v1358_v21  ;;  %v1360_v30 = vsel %vm5228_vm11, %v3409_v5, 0.0  ;;  %3428 = vpow2.f32 %v1070_v52  ;;  %v967_v14 = vsub.f32 %v7693_v44, %v5193_v25  ;;  %v3415_v59 = vpop.eup %3414 }
 0x21c   : > { %vm7694_vm12 = vcmp.ne.s32.totalorder %v7658_v23, %v4651_v34  ;;  %v1361_v6 = vsel %vm5241_vm2, %v3411_v20, 0.0  ;;  %3430 = vpow2.f32 %v1072_v18  ;;  %vm1221_vm4 = vcmp.ne.s32.totalorder %v7678_v10, %v4657_v15  ;;  %v7709_v20 = vld [vmem:[#allocation34_spill] sm:$0xff] }
 0x21d   : > { %vm5258_vm14 = vmand %vm7694_vm12, %vm1262_vm10  ;;  %v968_v31 = vsub.f32 %v7697_v27, %v5193_v25  ;;  %v969_v8 = vsub.f32 %v7698_v32, %v5193_v25  ;;  %v1429_v36 = vadd.f32 %v1428_v19, %v1359_v40  ;;  %vm7699_vm11 = vcmp.ne.s32.totalorder %v7658_v23, %v4657_v15  ;;  %v7710_v19 = vld [vmem:[#allocation38_spill] sm:$0xff] }
 0x21e   : > { %vm5275_vm12 = vmand %vm7699_vm11, %vm1263_vm15  ;;  %v1362_v33 = vsel %vm5258_vm14, %v3413_v54, 0.0  ;;  %v1432_v63 = vadd.f32 %v1361_v6, %v1360_v30  ;;  %v1074_v4 = vmul.f32 1.442695, %v966_v46  ;;  %vm1222_vm2 = vcmp.ne.s32.totalorder %v7702_v37, %v4647_v7  ;;  %v3417_v49 = vpop.eup %3416 }
 0x21f   : > { %v1363_v35 = vsel %vm5275_vm12, %v3415_v59, 0.0  ;;  %v1076_v52 = vmul.f32 1.442695, %v967_v14  ;;  %v1078_v22 = vmul.f32 1.442695, %v968_v31  ;;  %v970_v23 = vsub.f32 %v7703_v28, %v5247_v50  ;;  %vm5292_vm14 = vmand %vm1214_vm7, %vm1260_vm3  ;;  %1430 = vadd.xlane.f32.xlu1 %v1429_v36  ;;  %v3419_v18 = vpop.eup %3418  ;;  %v5326_v31 = vpop.xlane.xlu0 %910 }
 0x220   : > { %v1433_v13 = vadd.f32 %v1432_v63, %v1362_v33  ;;  %3432 = vpow2.f32 %v1074_v4  ;;  %v1080_v5 = vmul.f32 1.442695, %v969_v8  ;;  %v971_v40 = vsub.f32 %v7706_v1, %v5247_v50  ;;  %vm5303_vm11 = vmand %vm1215_vm9, %vm1261_vm5  ;;  %v3421_v44 = vpop.eup %3420  ;;  %v5365_v1 = vpop.xlane.xlu1 %915 }
 0x221   : > { %v1364_v46 = vsel %vm5292_vm14, %v3417_v49, 0.0  ;;  %3434 = vpow2.f32 %v1076_v52  ;;  %v972_v11 = vsub.f32 %v7709_v20, %v5247_v50  ;;  %v973_v30 = vsub.f32 %v7710_v19, %v5247_v50  ;;  %vm5318_vm7 = vmand %vm1218_vm0, %vm1260_vm3  ;;  %v3423_v27 = vpop.eup %3422  ;;  %v7717_v49 = vld [vmem:[#allocation36_spill] sm:$0xff]  ;;  %v7721_v20 = vld [vmem:[#allocation37_spill] sm:$0xff] }
 0x222   : > { %v1434_v54 = vadd.f32 %v1433_v13, %v1363_v35  ;;  %v1365_v58 = vsel %vm5303_vm11, %v3419_v18, 0.0  ;;  %3436 = vpow2.f32 %v1078_v22  ;;  %v1082_v6 = vmul.f32 1.442695, %v970_v23  ;;  %vm1302_vm0 = vmand %vm1216_vm6, %vm1262_vm10  ;;  %v7722_v19 = vld [vmem:[#allocation39_spill] sm:$0xff] }
 0x223   : > { %vm1223_vm9 = vcmp.ne.s32.totalorder %v7702_v37, %v4649_v2  ;;  %v1437_v32 = vadd.f32 %v1365_v58, %v1364_v46  ;;  %3438 = vpow2.f32 %v1080_v5  ;;  %v1084_v8 = vmul.f32 1.442695, %v971_v40  ;;  %v3425_v59 = vpop.eup %3424  ;;  %vm5338_vm12 = vmand %vm1217_vm13, %vm1263_vm15  ;;  %v7718_v5 = vld [vmem:[#allocation112_spill] sm:$0xff] }
 0x224   : > { %1435 = vadd.xlane.f32.xlu0 %v1434_v54  ;;  %v1366_v56 = vsel %vm1302_vm0, %v3421_v44, 0.0  ;;  %3440 = vpow2.f32 %v1082_v6  ;;  %v1086_v33 = vmul.f32 1.442695, %v972_v11  ;;  %v1088_v63 = vmul.f32 1.442695, %v973_v30  ;;  %v3427_v4 = vpop.eup %3426  ;;  %vm5347_vm6 = vmand %vm1219_vm1, %vm1261_vm5  ;;  %v7723_v54 = vld [vmem:[#allocation40_spill] sm:$0xff] }
 0x225   : > { %vm1224_vm13 = vcmp.ne.s32.totalorder %v7702_v37, %v4651_v34  ;;  %v1367_v17 = vsel %vm5338_vm12, %v3423_v27, 0.0  ;;  %v1438_v52 = vadd.f32 %v1437_v32, %v1366_v56  ;;  %vm1225_vm14 = vcmp.ne.s32.totalorder %v7702_v37, %v4657_v15  ;;  %v3429_v22 = vpop.eup %3428  ;;  %vm1306_vm11 = vmand %vm1220_vm8, %vm1262_vm10  ;;  %v7727_v56 = vld [vmem:[#allocation43_spill] sm:$0xff] }
 0x226   : > { %v1368_v28 = vsel %vm5318_vm7, %v3425_v59, 0.0  ;;  %v1369_v23 = vsel %vm5347_vm6, %v3427_v4, 0.0  ;;  %3442 = vpow2.f32 %v1084_v8  ;;  %v974_v21 = vsub.f32 %v7717_v49, %v5326_v31  ;;  %v3431_v13 = vpop.eup %3430  ;;  %vm5377_vm7 = vmand %vm1221_vm4, %vm1263_vm15  ;;  %v7726_v59 = vld [vmem:[#allocation41_spill] sm:$0xff] }
 0x227   : > { %vm1226_vm1 = vcmp.ne.s32.totalorder %v7718_v5, %v4647_v7  ;;  %v1439_v40 = vadd.f32 %v1438_v52, %v1367_v17  ;;  %v1442_v18 = vadd.f32 %v1369_v23, %v1368_v28  ;;  %3444 = vpow2.f32 %v1086_v33  ;;  %vm5394_vm8 = vmand %vm1222_vm2, %vm1260_vm3  ;;  %v7728_v17 = vld [vmem:[#allocation42_spill] sm:$0xff] }
 0x228   : > { %v1370_v46 = vsel %vm1306_vm11, %v3429_v22, 0.0  ;;  %3446 = vpow2.f32 %v1088_v63  ;;  %v975_v11 = vsub.f32 %v7721_v20, %v5326_v31  ;;  %v976_v30 = vsub.f32 %v7722_v19, %v5326_v31  ;;  %vm1309_vm4 = vmand %vm1223_vm9, %vm1261_vm5 }
 0x229   : > { %1440 = vadd.xlane.f32.xlu1 %v1439_v40  ;;  %v1371_v44 = vsel %vm5377_vm7, %v3431_v13, 0.0  ;;  %v1443_v14 = vadd.f32 %v1442_v18, %v1370_v46  ;;  %v977_v10 = vsub.f32 %v7723_v54, %v5326_v31  ;;  %v1090_v58 = vmul.f32 1.442695, %v974_v21  ;;  %v5415_v21 = vpop.xlane.xlu0 %920  ;;  %vm1310_vm9 = vmand %vm1224_vm13, %vm1262_vm10  ;;  %v7729_v40 = vld [vmem:[#allocation46_spill] sm:$0xff] }
 0x22a   : > { %v3433_v6 = vpop.eup %3432  ;;  %v1092_v32 = vmul.f32 1.442695, %v975_v11  ;;  %v1094_v8 = vmul.f32 1.442695, %v976_v30  ;;  %v978_v36 = vsub.f32 %v7726_v59, %v5365_v1  ;;  %v979_v33 = vsub.f32 %v7727_v56, %v5365_v1  ;;  %vm5431_vm6 = vmand %vm1226_vm1, %vm1260_vm3  ;;  %v7733_v59 = vld [vmem:[#allocation45_spill] sm:$0xff] }
 0x22b   : > { %v3435_v63 = vpop.eup %3434  ;;  %vm1227_vm2 = vcmp.ne.s32.totalorder %v7718_v5, %v4649_v2  ;;  %v1444_v4 = vadd.f32 %v1443_v14, %v1371_v44  ;;  %v1372_v35 = vsel %vm5394_vm8, %v3433_v6, 0.0  ;;  %v980_v52 = vsub.f32 %v7728_v17, %v5365_v1  ;;  %vm1311_vm13 = vmand %vm1225_vm14, %vm1263_vm15  ;;  %v7732_v6 = vld [vmem:[#allocation44_spill] sm:$0xff] }
 0x22c   : > { %v3437_v22 = vpop.eup %3436  ;;  %vm1228_vm0 = vcmp.ne.s32.totalorder %v7718_v5, %v4651_v34  ;;  %v1373_v28 = vsel %vm1309_vm4, %v3435_v63, 0.0  ;;  %3448 = vpow2.f32 %v1090_v58  ;;  %v1096_v23 = vmul.f32 1.442695, %v977_v10  ;;  %vm1313_vm1 = vmand %vm1227_vm2, %vm1261_vm5  ;;  %v7734_v63 = vld [vmem:[#allocation47_spill] sm:$0xff]  ;;  %v7735_v17 = vld [vmem:[#allocation48_spill] sm:$0xff] }
 0x22d   : > { %v3439_v49 = vpop.eup %3438  ;;  %1445 = vadd.xlane.f32.xlu0 %v1444_v4  ;;  %v1447_v13 = vadd.f32 %v1373_v28, %v1372_v35  ;;  %vm1229_vm12 = vcmp.ne.s32.totalorder %v7718_v5, %v4657_v15  ;;  %3450 = vpow2.f32 %v1092_v32  ;;  %v981_v18 = vsub.f32 %v7729_v40, %v5365_v1  ;;  %vm1314_vm11 = vmand %vm1228_vm0, %vm1262_vm10  ;;  %v1158_v28 = vpop.permute.xlu1 %1157 }
 0x22e   : > { %v3441_v9 = vpop.eup %3440  ;;  %v1374_v20 = vsel %vm1310_vm9, %v3437_v22, 0.0  ;;  %3452 = vpow2.f32 %v1094_v8  ;;  %v1098_v11 = vmul.f32 1.442695, %v978_v36  ;;  %v1100_v19 = vmul.f32 1.442695, %v979_v33  ;;  %vm1315_vm8 = vmand %vm1229_vm12, %vm1263_vm15 }
 0x22f   : > { %v1448_v30 = vadd.f32 %v1447_v13, %v1374_v20  ;;  %v1376_v44 = vsel %vm5431_vm6, %v3441_v9, 0.0  ;;  %3454 = vpow2.f32 %v1096_v23  ;;  %v1102_v14 = vmul.f32 1.442695, %v980_v52 }
 0x230   : > { %v3443_v54 = vpop.eup %3442  ;;  %v1375_v10 = vsel %vm1311_vm13, %v3439_v49, 0.0  ;;  %3456 = vpow2.f32 %v1098_v11  ;;  %v1104_v58 = vmul.f32 1.442695, %v981_v18  ;;  %v982_v37 = vsub.f32 %v7732_v6, %v5415_v21 }
 0x231   : > { %v3445_v27 = vpop.eup %3444  ;;  %v1449_v32 = vadd.f32 %v1448_v30, %v1375_v10  ;;  %v1377_v8 = vsel %vm1313_vm1, %v3443_v54, 0.0  ;;  %3458 = vpow2.f32 %v1100_v19  ;;  %v983_v36 = vsub.f32 %v7733_v59, %v5415_v21  ;;  %v1161_v30 = vpop.permute.xlu0 %1160  ;;  %v7749_v54 = vld [vmem:[#allocation54_spill] sm:$0xff] }
 0x232   : > { %v3447_v56 = vpop.eup %3446  ;;  %vm1230_vm14 = vcmp.ne.s32.totalorder %v4673_v26, %v4647_v7  ;;  %v1452_v33 = vadd.f32 %v1377_v8, %v1376_v44  ;;  %3460 = vpow2.f32 %v1102_v14  ;;  %v984_v4 = vsub.f32 %v7734_v63, %v5415_v21  ;;  %v7755_v63 = vld [vmem:[#allocation59_spill] sm:$0xff] }
 0x233   : > { %1450 = vadd.xlane.f32.xlu1 %v1449_v32  ;;  %v1378_v35 = vsel %vm1314_vm11, %v3445_v27, 0.0  ;;  %3462 = vpow2.f32 %v1104_v58  ;;  %v985_v52 = vsub.f32 %v7735_v17, %v5415_v21  ;;  %v1106_v22 = vmul.f32 1.442695, %v982_v37  ;;  %vm5476_vm2 = vmand %vm1230_vm14, %vm1260_vm3 }
 0x234   : > { %vm1231_vm7 = vcmp.ne.s32.totalorder %v4673_v26, %v4649_v2  ;;  %v1453_v23 = vadd.f32 %v1452_v33, %v1378_v35  ;;  %v1108_v49 = vmul.f32 1.442695, %v983_v36  ;;  %v1110_v13 = vmul.f32 1.442695, %v984_v4 }
 0x235   : > { %vm1232_vm4 = vcmp.ne.s32.totalorder %v4673_v26, %v4651_v34  ;;  %v1379_v40 = vsel %vm1315_vm8, %v3447_v56, 0.0  ;;  %3464 = vpow2.f32 %v1106_v22  ;;  %v1112_v18 = vmul.f32 1.442695, %v985_v52  ;;  %vm1317_vm9 = vmand %vm1231_vm7, %vm1261_vm5 }
 0x236   : > { %v3449_v9 = vpop.eup %3448  ;;  %v1454_v5 = vadd.f32 %v1453_v23, %v1379_v40  ;;  %vm1233_vm0 = vcmp.ne.s32.totalorder %v4673_v26, %v4657_v15  ;;  %3466 = vpow2.f32 %v1108_v49  ;;  %vm1234_vm12 = vcmp.ne.s32.totalorder %v1158_v28, %v4647_v7  ;;  %vm1318_vm13 = vmand %vm1232_vm4, %vm1262_vm10  ;;  %v7744_v40 = vld [vmem:[#allocation49_spill] sm:$0xff] }
 0x237   : > { %v3451_v20 = vpop.eup %3450  ;;  %v1380_v11 = vsel %vm5476_vm2, %v3449_v9, 0.0  ;;  %3468 = vpow2.f32 %v1110_v13  ;;  %vm1235_vm6 = vcmp.ne.s32.totalorder %v1158_v28, %v4649_v2  ;;  %vm5501_vm1 = vmand %vm1233_vm0, %vm1263_vm15  ;;  %vm1236_vm14 = vcmp.ne.s32.totalorder %v1158_v28, %v4651_v34 }
 0x238   : > { %v3453_v19 = vpop.eup %3452  ;;  %1455 = vadd.xlane.f32.xlu0 %v1454_v5  ;;  %v1381_v44 = vsel %vm1317_vm9, %v3451_v20, 0.0  ;;  %3470 = vpow2.f32 %v1112_v18  ;;  %vm5510_vm11 = vmand %vm1234_vm12, %vm1260_vm3  ;;  %vm1238_vm8 = vcmp.ne.s32.totalorder %v1161_v30, %v4647_v7  ;;  %vm1237_vm4 = vcmp.ne.s32.totalorder %v1158_v28, %v4657_v15  ;;  %v7746_v20 = vld [vmem:[#allocation51_spill] sm:$0xff] }
 0x239   : > { %v3455_v14 = vpop.eup %3454  ;;  %v1457_v10 = vadd.f32 %v1381_v44, %v1380_v11  ;;  %v1382_v37 = vsel %vm1318_vm13, %v3453_v19, 0.0  ;;  %vm1321_vm7 = vmand %vm1235_vm6, %vm1261_vm5  ;;  %vm1239_vm2 = vcmp.ne.s32.totalorder %v1161_v30, %v4649_v2  ;;  %vm1240_vm12 = vcmp.ne.s32.totalorder %v1161_v30, %v4651_v34  ;;  %v7747_v11 = vld [vmem:[#allocation52_spill] sm:$0xff]  ;;  %v7748_v44 = vld [vmem:[#allocation53_spill] sm:$0xff] }
 0x23a   : > { %v3457_v58 = vpop.eup %3456  ;;  %v1383_v59 = vsel %vm5501_vm1, %v3455_v14, 0.0  ;;  %vm1322_vm0 = vmand %vm1236_vm14, %vm1262_vm10  ;;  %v1966_v18 = vmul.f32 2.0, %v7744_v40  ;;  %v1968_v9 = vmul.f32 2.0, %v7745_v55  ;;  %v2086_v5 = vmul.f32 1.442695, %v4663_v57 }
 0x23b   : > { %v3459_v27 = vpop.eup %3458  ;;  %v1458_v26 = vadd.f32 %v1457_v10, %v1382_v37  ;;  %v1384_v32 = vsel %vm5510_vm11, %v3457_v58, 0.0  ;;  %vm5529_vm9 = vmand %vm1238_vm8, %vm1260_vm3  ;;  %vm1241_vm3 = vcmp.ne.s32.totalorder %v1161_v30, %v4657_v15  ;;  %v1967_v15 = vmul.f32 2.0, %v7746_v20  ;;  %v7750_v37 = vld [vmem:[#allocation55_spill] sm:$0xff] }
 0x23c   : > { %v3461_v8 = vpop.eup %3460  ;;  %v1385_v36 = vsel %vm1321_vm7, %v3459_v27, 0.0  ;;  %vm1323_vm6 = vmand %vm1237_vm4, %vm1263_vm15  ;;  %v1969_v19 = vmul.f32 2.0, %v7747_v11  ;;  %v1970_v14 = vmul.f32 2.0, %v7748_v44  ;;  %v1972_v10 = vmul.f32 2.0, %v7749_v54  ;;  %v7751_v27 = vld [vmem:[#allocation56_spill] sm:$0xff]  ;;  %v7769_v54 = vld [vmem:[#allocation66_spill] sm:$0xff] }
 0x23d   : > { %v3463_v56 = vpop.eup %3462  ;;  %v1459_v33 = vadd.f32 %v1458_v26, %v1383_v59  ;;  %v1462_v7 = vadd.f32 %v1385_v36, %v1384_v32  ;;  %v1386_v4 = vsel %vm1322_vm0, %v3461_v8, 0.0  ;;  %vm1325_vm13 = vmand %vm1239_vm2, %vm1261_vm5  ;;  %v2090_v6 = vmul.f32 1.442695, %v4667_v48  ;;  %v7752_v32 = vld [vmem:[#allocation57_spill] sm:$0xff]  ;;  %v7753_v36 = vld [vmem:[#allocation58_spill] sm:$0xff] }
 0x23e   : > { %v1387_v52 = vsel %vm1323_vm6, %v3463_v56, 0.0  ;;  %vm1326_vm1 = vmand %vm1240_vm12, %vm1262_vm10  ;;  %v1971_v24 = vmul.f32 2.0, %v7750_v37  ;;  %v1973_v26 = vmul.f32 2.0, %v7751_v27  ;;  %v1974_v8 = vmul.f32 2.0, %v7752_v32 }
 0x23f   : > { %v3465_v35 = vpop.eup %3464  ;;  %1460 = vadd.xlane.f32.xlu1 %v1459_v33  ;;  %v1463_v2 = vadd.f32 %v1462_v7, %v1386_v4  ;;  %vm1327_vm5 = vmand %vm1241_vm3, %vm1263_vm15  ;;  %v2092_v59 = vmul.f32 1.442695, %v4669_v42  ;;  %v1976_v56 = vmul.f32 2.0, %v7753_v36  ;;  %3472 = vpow2.f32 %v2086_v5 }
 0x240   : > { %v3467_v17 = vpop.eup %3466  ;;  %v1388_v41 = vsel %vm5529_vm9, %v3465_v35, 0.0  ;;  %v2094_v33 = vmul.f32 1.442695, %v4697_v47  ;;  %v5561_v7 = vsub.f32 %v1966_v18, %v4695_v39  ;;  %v1975_v4 = vmul.f32 2.0, %v7755_v63  ;;  %v7775_v63 = vld [vmem:[#allocation69_spill] sm:$0xff] }
 0x241   : > { %v3469_v22 = vpop.eup %3468  ;;  %v1464_v28 = vadd.f32 %v1463_v2, %v1387_v52  ;;  %v1389_v23 = vsel %vm1325_vm13, %v3467_v17, 0.0  ;;  %3474 = vpow2.f32 %v2088_v43  ;;  %v2096_v35 = vmul.f32 1.442695, %v4699_v62  ;;  %v7757_v17 = vld [vmem:[#allocation60_spill] sm:$0xff] }
 0x242   : > { %v3471_v49 = vpop.eup %3470  ;;  %v1467_v34 = vadd.f32 %v1389_v23, %v1388_v41  ;;  %v1390_v13 = vsel %vm1326_vm1, %v3469_v22, 0.0  ;;  %7754 = vst [vmem:[#allocation13_spill] sm:$0xff] %v5561_v7  ;;  %v5566_v2 = vsub.f32 %v1967_v15, %v4695_v39  ;;  %v1977_v52 = vmul.f32 2.0, %v7757_v17  ;;  %v7765_v15 = vld [vmem:[#allocation64_spill] sm:$0xff] }
 0x243   : > { %1465 = vadd.xlane.f32.xlu0 %v1464_v28  ;;  %v1391_v30 = vsel %vm1327_vm5, %v3471_v49, 0.0  ;;  %3476 = vpow2.f32 %v2090_v6  ;;  %v2098_v41 = vmul.f32 1.442695, %v4713_v12  ;;  %v5571_v22 = vsub.f32 %v1968_v9, %v4695_v39  ;;  %v7759_v28 = vld [vmem:[#allocation61_spill] sm:$0xff]  ;;  %v7825_v12 = vld [vmem:[#allocation94_spill] sm:$0xff] }
 0x244   : > { %v1468_v46 = vadd.f32 %v1467_v34, %v1390_v13  ;;  %7756 = vst [vmem:[#allocation89_spill] sm:$0xff] %v5566_v2  ;;  %v1978_v23 = vmul.f32 2.0, %v7759_v28  ;;  %3478 = vpow2.f32 %v2092_v59  ;;  %v2100_v49 = vmul.f32 1.442695, %v4715_v45  ;;  %v7761_v13 = vld [vmem:[#allocation62_spill] sm:$0xff]  ;;  %v7819_v45 = vld [vmem:[#allocation92_spill] sm:$0xff] }
 0x245   : > { %7758 = vst [vmem:[#allocation14_spill] sm:$0xff] %v5571_v22  ;;  %v5576_v34 = vsub.f32 %v1969_v19, %v4695_v39  ;;  %v1980_v40 = vmul.f32 2.0, %v7761_v13  ;;  %3480 = vpow2.f32 %v2094_v33  ;;  %v2102_v18 = vmul.f32 1.442695, %v5561_v7  ;;  %v7777_v28 = vld [vmem:[#allocation70_spill] sm:$0xff]  ;;  %v7817_v7 = vld [vmem:[#allocation91_spill] sm:$0xff] }
 0x246   : > { %v1469_v58 = vadd.f32 %v1468_v46, %v1391_v30  ;;  %v5581_v55 = vsub.f32 %v1970_v14, %v4719_v51  ;;  %v7763_v46 = vld [vmem:[#allocation63_spill] sm:$0xff]  ;;  %3482 = vpow2.f32 %v2096_v35  ;;  %v2104_v9 = vmul.f32 1.442695, %v5566_v2  ;;  %v7767_v30 = vld [vmem:[#allocation65_spill] sm:$0xff]  ;;  %v7815_v2 = vld [vmem:[#allocation90_spill] sm:$0xff] }
 0x247   : > { %7760 = vst [vmem:[#allocation15_spill] sm:$0xff] %v5576_v34  ;;  %v1979_v5 = vmul.f32 2.0, %v7763_v46  ;;  %v5586_v20 = vsub.f32 %v1971_v24, %v4719_v51  ;;  %v1981_v11 = vmul.f32 2.0, %v7765_v15  ;;  %3484 = vpow2.f32 %v2098_v41  ;;  %v7771_v24 = vld [vmem:[#allocation67_spill] sm:$0xff] }
 0x248   : > { %1470 = vadd.xlane.f32.xlu1 %v1469_v58  ;;  %7762 = vst [vmem:[#allocation16_spill] sm:$0xff] %v5581_v55  ;;  %v2106_v39 = vmul.f32 1.442695, %v5571_v22  ;;  %v5591_v19 = vsub.f32 %v1972_v10, %v4719_v51  ;;  %v1982_v43 = vmul.f32 2.0, %v7767_v30  ;;  %3486 = vpow2.f32 %v2100_v49  ;;  %v7779_v46 = vld [vmem:[#allocation71_spill] sm:$0xff] }
 0x249   : > { %7764 = vst [vmem:[#allocation98_spill] sm:$0xff] %v5586_v20  ;;  %v2108_v44 = vmul.f32 1.442695, %v5576_v34  ;;  %v5596_v14 = vsub.f32 %v1973_v26, %v4719_v51  ;;  %v1984_v58 = vmul.f32 2.0, %v7769_v54  ;;  %3488 = vpow2.f32 %v2102_v18  ;;  %v5608_v59 = vpop.eup %3472  ;;  %v7773_v51 = vld [vmem:[#allocation68_spill] sm:$0xff]  ;;  %v7809_v34 = vld [vmem:[#allocation86_spill] sm:$0xff] }
 0x24a   : > { %7766 = vst [vmem:[#allocation17_spill] sm:$0xff] %v5591_v19  ;;  %v2110_v6 = vmul.f32 1.442695, %v5581_v55  ;;  %v5601_v37 = vsub.f32 %v1974_v8, %v4759_v0  ;;  %v1983_v27 = vmul.f32 2.0, %v7771_v24  ;;  %3490 = vpow2.f32 %v2104_v9  ;;  %v7807_v55 = vld [vmem:[#allocation85_spill] sm:$0xff]  ;;  %v7811_v22 = vld [vmem:[#allocation87_spill] sm:$0xff] }
 0x24b   : > { %7768 = vst [vmem:[#allocation19_spill] sm:$0xff] %v5596_v14  ;;  %v2112_v10 = vmul.f32 1.442695, %v5586_v20  ;;  %v5606_v32 = vsub.f32 %v1975_v4, %v4759_v0  ;;  %v1985_v26 = vmul.f32 2.0, %v7773_v51  ;;  %3492 = vpow2.f32 %v2106_v39  ;;  %v5615_v8 = vpop.eup %3474  ;;  %v7781_v39 = vld [vmem:[#allocation72_spill] sm:$0xff]  ;;  %v7803_v20 = vld [vmem:[#allocation83_spill] sm:$0xff] }
 0x24c   : > { %7770 = vst [vmem:[#allocation18_spill] sm:$0xff] %v5601_v37  ;;  %v2114_v36 = vmul.f32 1.442695, %v5591_v19  ;;  %v5613_v33 = vsub.f32 %v1976_v56, %v4759_v0  ;;  %v1986_v35 = vmul.f32 2.0, %v7775_v63  ;;  %3494 = vpow2.f32 %v2108_v44  ;;  %v7785_v63 = vld [vmem:[#allocation74_spill] sm:$0xff] }
 0x24d   : > { %7772 = vst [vmem:[#allocation22_spill] sm:$0xff] %v5606_v32  ;;  %v2116_v17 = vmul.f32 1.442695, %v5596_v14  ;;  %v5620_v4 = vsub.f32 %v1977_v52, %v4759_v0  ;;  %v5622_v41 = vpop.eup %3476  ;;  %v1988_v49 = vmul.f32 2.0, %v7777_v28  ;;  %3496 = vpow2.f32 %v2110_v6  ;;  %v7783_v6 = vld [vmem:[#allocation73_spill] sm:$0xff]  ;;  %v7801_v19 = vld [vmem:[#allocation82_spill] sm:$0xff] }
 0x24e   : > { %7774 = vst [vmem:[#allocation107_spill] sm:$0xff] %v5613_v33  ;;  %v2118_v13 = vmul.f32 1.442695, %v5601_v37  ;;  %v5627_v56 = vsub.f32 %v1978_v23, %v4823_v60  ;;  %v5629_v18 = vpop.eup %3478  ;;  %v1987_v9 = vmul.f32 2.0, %v7779_v46  ;;  %3498 = vpow2.f32 %v2112_v10  ;;  %v7795_v37 = vld [vmem:[#allocation79_spill] sm:$0xff]  ;;  %v7799_v14 = vld [vmem:[#allocation81_spill] sm:$0xff] }
 0x24f   : > { %7776 = vst [vmem:[#allocation20_spill] sm:$0xff] %v5620_v4  ;;  %v2120_v15 = vmul.f32 1.442695, %v5606_v32  ;;  %v5634_v0 = vsub.f32 %v1979_v5, %v4823_v60  ;;  %v5636_v52 = vpop.eup %3480  ;;  %v1989_v30 = vmul.f32 2.0, %v7781_v39  ;;  %3500 = vpow2.f32 %v2114_v36  ;;  %v7787_v39 = vld [vmem:[#allocation75_spill] sm:$0xff]  ;;  %v7793_v32 = vld [vmem:[#allocation78_spill] sm:$0xff] }
 0x250   : > { %7778 = vst [vmem:[#allocation21_spill] sm:$0xff] %v5627_v56  ;;  %v2122_v44 = vmul.f32 1.442695, %v5613_v33  ;;  %v5641_v23 = vsub.f32 %v1980_v40, %v4823_v60  ;;  %v5643_v54 = vpop.eup %3482  ;;  %v1990_v24 = vmul.f32 2.0, %v7783_v6  ;;  %3502 = vpow2.f32 %v2116_v17  ;;  %v7791_v33 = vld [vmem:[#allocation77_spill] sm:$0xff] }
 0x251   : > { %7780 = vst [vmem:[#allocation23_spill] sm:$0xff] %v5634_v0  ;;  %v2124_v10 = vmul.f32 1.442695, %v5620_v4  ;;  %v5648_v5 = vsub.f32 %v1981_v11, %v4823_v60  ;;  %v5650_v51 = vpop.eup %3484  ;;  %v1992_v28 = vmul.f32 2.0, %v7785_v63  ;;  %3504 = vpow2.f32 %v2118_v13  ;;  %v7789_v4 = vld [vmem:[#allocation76_spill] sm:$0xff] }
 0x252   : > { %7782 = vst [vmem:[#allocation24_spill] sm:$0xff] %v5641_v23  ;;  %v2126_v36 = vmul.f32 1.442695, %v5627_v56  ;;  %v5655_v40 = vsub.f32 %v1982_v43, %v4879_v16  ;;  %v5657_v46 = vpop.eup %3486  ;;  %v1991_v6 = vmul.f32 2.0, %v7787_v39  ;;  %3506 = vpow2.f32 %v2120_v15 }
 0x253   : > { %7784 = vst [vmem:[#allocation25_spill] sm:$0xff] %v5648_v5  ;;  %v2128_v17 = vmul.f32 1.442695, %v5634_v0  ;;  %v5662_v60 = vsub.f32 %v1983_v27, %v4879_v16  ;;  %v5664_v11 = vpop.eup %3488  ;;  %v1993_v63 = vmul.f32 2.0, %v7789_v4  ;;  %3508 = vpow2.f32 %v2122_v44 }
 0x254   : > { %7786 = vst [vmem:[#allocation111_spill] sm:$0xff] %v5655_v40  ;;  %v2130_v13 = vmul.f32 1.442695, %v5641_v23  ;;  %v5669_v43 = vsub.f32 %v1984_v58, %v4879_v16  ;;  %v5671_v56 = vpop.eup %3490  ;;  %v1994_v39 = vmul.f32 2.0, %v7791_v33  ;;  %3510 = vpow2.f32 %v2124_v10 }
 0x255   : > { %7788 = vst [vmem:[#allocation27_spill] sm:$0xff] %v5662_v60  ;;  %v2132_v15 = vmul.f32 1.442695, %v5648_v5  ;;  %v5676_v27 = vsub.f32 %v1985_v26, %v4879_v16  ;;  %v5678_v0 = vpop.eup %3492  ;;  %v1996_v4 = vmul.f32 2.0, %v7793_v32  ;;  %3512 = vpow2.f32 %v2126_v36  ;;  %v7797_v5 = vld [vmem:[#allocation80_spill] sm:$0xff] }
 0x256   : > { %7790 = vst [vmem:[#allocation108_spill] sm:$0xff] %v5669_v43  ;;  %v2134_v44 = vmul.f32 1.442695, %v5655_v40  ;;  %v5683_v58 = vsub.f32 %v1986_v35, %v4937_v61  ;;  %v5685_v23 = vpop.eup %3494  ;;  %v1995_v33 = vmul.f32 2.0, %v7795_v37  ;;  %3514 = vpow2.f32 %v2128_v17 }
 0x257   : > { %7792 = vst [vmem:[#allocation26_spill] sm:$0xff] %v5676_v27  ;;  %v2136_v10 = vmul.f32 1.442695, %v5662_v60  ;;  %v5690_v16 = vsub.f32 %v1987_v9, %v4937_v61  ;;  %v5692_v26 = vpop.eup %3496  ;;  %v1997_v32 = vmul.f32 2.0, %v7797_v5  ;;  %3516 = vpow2.f32 %v2130_v13 }
 0x258   : > { %7794 = vst [vmem:[#allocation30_spill] sm:$0xff] %v5683_v58  ;;  %v2138_v36 = vmul.f32 1.442695, %v5669_v43  ;;  %v5697_v35 = vsub.f32 %v1988_v49, %v4937_v61  ;;  %v5699_v40 = vpop.eup %3498  ;;  %v1998_v37 = vmul.f32 2.0, %v7799_v14  ;;  %3518 = vpow2.f32 %v2132_v15 }
 0x259   : > { %7796 = vst [vmem:[#allocation28_spill] sm:$0xff] %v5690_v16  ;;  %v2140_v17 = vmul.f32 1.442695, %v5676_v27  ;;  %v5704_v9 = vsub.f32 %v1989_v30, %v4937_v61  ;;  %v5706_v60 = vpop.eup %3500  ;;  %v2000_v5 = vmul.f32 2.0, %v7801_v19  ;;  %3520 = vpow2.f32 %v2134_v44  ;;  %v7805_v27 = vld [vmem:[#allocation84_spill] sm:$0xff] }
 0x25a   : > { %7798 = vst [vmem:[#allocation29_spill] sm:$0xff] %v5697_v35  ;;  %v2142_v13 = vmul.f32 1.442695, %v5683_v58  ;;  %v5711_v49 = vsub.f32 %v1990_v24, %v5016_v38  ;;  %v5713_v43 = vpop.eup %3502  ;;  %v1999_v14 = vmul.f32 2.0, %v7803_v20  ;;  %3522 = vpow2.f32 %v2136_v10 }
 0x25b   : > { %7800 = vst [vmem:[#allocation31_spill] sm:$0xff] %v5704_v9  ;;  %v2144_v15 = vmul.f32 1.442695, %v5690_v16  ;;  %v5718_v61 = vsub.f32 %v1991_v6, %v5016_v38  ;;  %v5720_v30 = vpop.eup %3504  ;;  %v2001_v19 = vmul.f32 2.0, %v7805_v27  ;;  %3524 = vpow2.f32 %v2138_v36 }
 0x25c   : > { %7802 = vst [vmem:[#allocation32_spill] sm:$0xff] %v5711_v49  ;;  %v2146_v44 = vmul.f32 1.442695, %v5697_v35  ;;  %v5725_v24 = vsub.f32 %v1992_v28, %v5016_v38  ;;  %v5727_v58 = vpop.eup %3506  ;;  %v2002_v20 = vmul.f32 2.0, %v7807_v55  ;;  %3526 = vpow2.f32 %v2140_v17 }
 0x25d   : > { %7804 = vst [vmem:[#allocation110_spill] sm:$0xff] %v5718_v61  ;;  %v2148_v10 = vmul.f32 1.442695, %v5704_v9  ;;  %v5732_v6 = vsub.f32 %v1993_v63, %v5016_v38  ;;  %v5734_v16 = vpop.eup %3508  ;;  %v2004_v27 = vmul.f32 2.0, %v7809_v34  ;;  %3528 = vpow2.f32 %v2142_v13  ;;  %v7813_v9 = vld [vmem:[#allocation88_spill] sm:$0xff] }
 0x25e   : > { %7806 = vst [vmem:[#allocation33_spill] sm:$0xff] %v5725_v24  ;;  %v2150_v36 = vmul.f32 1.442695, %v5711_v49  ;;  %v5739_v28 = vsub.f32 %v1994_v39, %v5067_v3  ;;  %v5741_v35 = vpop.eup %3510  ;;  %v2003_v55 = vmul.f32 2.0, %v7811_v22  ;;  %3530 = vpow2.f32 %v2144_v15 }
 0x25f   : > { %7808 = vst [vmem:[#allocation35_spill] sm:$0xff] %v5732_v6  ;;  %v2152_v17 = vmul.f32 1.442695, %v5718_v61  ;;  %v5746_v38 = vsub.f32 %v1995_v33, %v5067_v3  ;;  %v5748_v63 = vpop.eup %3512  ;;  %v2005_v34 = vmul.f32 2.0, %v7813_v9  ;;  %3532 = vpow2.f32 %v2146_v44 }
 0x260   : > { %7810 = vst [vmem:[#allocation34_spill] sm:$0xff] %v5739_v28  ;;  %v2154_v13 = vmul.f32 1.442695, %v5725_v24  ;;  %v5753_v39 = vsub.f32 %v1996_v4, %v5067_v3  ;;  %v5755_v49 = vpop.eup %3514  ;;  %v2006_v22 = vmul.f32 2.0, %v7815_v2  ;;  %3534 = vpow2.f32 %v2148_v10 }
 0x261   : > { %7812 = vst [vmem:[#allocation38_spill] sm:$0xff] %v5746_v38  ;;  %v2156_v15 = vmul.f32 1.442695, %v5732_v6  ;;  %v5760_v33 = vsub.f32 %v1997_v32, %v5067_v3  ;;  %v5762_v61 = vpop.eup %3516  ;;  %v2008_v9 = vmul.f32 2.0, %v7817_v7  ;;  %3536 = vpow2.f32 %v2150_v36  ;;  %v7822_v6 = vld [vmem:[#allocation93_spill] sm:$0xff] }
 0x262   : > { %7814 = vst [vmem:[#allocation36_spill] sm:$0xff] %v5753_v39  ;;  %v2158_v44 = vmul.f32 1.442695, %v5739_v28  ;;  %v5767_v4 = vsub.f32 %v1998_v37, %v5086_v29  ;;  %v5769_v24 = vpop.eup %3518  ;;  %v2007_v2 = vmul.f32 2.0, %v7819_v45  ;;  %3538 = vpow2.f32 %v2152_v17 }
 0x263   : > { %7816 = vst [vmem:[#allocation112_spill] sm:$0xff] %v5760_v33  ;;  %v2160_v10 = vmul.f32 1.442695, %v5746_v38  ;;  %v5774_v3 = vsub.f32 %v1999_v14, %v5086_v29  ;;  %v5776_v32 = vpop.eup %3520  ;;  %v2009_v7 = vmul.f32 2.0, %v7822_v6  ;;  %3540 = vpow2.f32 %v2154_v13 }
 0x264   : > { %7818 = vst [vmem:[#allocation37_spill] sm:$0xff] %v5767_v4  ;;  %7821 = vst [vmem:[#allocation40_spill] sm:$0xff] %v5776_v32  ;;  %v2162_v36 = vmul.f32 1.442695, %v5753_v39  ;;  %v5781_v37 = vsub.f32 %v2000_v5, %v5086_v29  ;;  %v5783_v28 = vpop.eup %3522  ;;  %v2010_v45 = vmul.f32 2.0, %v7825_v12  ;;  %3542 = vpow2.f32 %v2156_v15  ;;  %v7828_v32 = vld [vmem:[#allocation95_spill] sm:$0xff] }
 0x265   : > { %7820 = vst [vmem:[#allocation39_spill] sm:$0xff] %v5774_v3  ;;  %7824 = vst [vmem:[#allocation43_spill] sm:$0xff] %v5783_v28  ;;  %v2164_v17 = vmul.f32 1.442695, %v5760_v33  ;;  %v5788_v14 = vsub.f32 %v2001_v19, %v5086_v29  ;;  %v5790_v38 = vpop.eup %3524  ;;  %v5793_v6 = vmul.f32 2.0, %v7828_v32  ;;  %3544 = vpow2.f32 %v2158_v44  ;;  %v7831_v12 = vld [vmem:[#allocation96_spill] sm:$0xff] }
 0x266   : > { %7823 = vst [vmem:[#allocation41_spill] sm:$0xff] %v5781_v37  ;;  %7827 = vst [vmem:[#allocation46_spill] sm:$0xff] %v5790_v38  ;;  %v2166_v13 = vmul.f32 1.442695, %v5767_v4  ;;  %v5797_v5 = vsub.f32 %v2002_v20, %v5193_v25  ;;  %v5799_v39 = vpop.eup %3526  ;;  %v2011_v15 = vmul.f32 2.0, %v7831_v12  ;;  %3546 = vpow2.f32 %v2160_v10  ;;  %v7834_v32 = vld [vmem:[#allocation97_spill] sm:$0xff] }
 0x267   : > { %7826 = vst [vmem:[#allocation42_spill] sm:$0xff] %v5788_v14  ;;  %7830 = vst [vmem:[#allocation45_spill] sm:$0xff] %v5799_v39  ;;  %v2168_v33 = vmul.f32 1.442695, %v5774_v3  ;;  %v5804_v29 = vsub.f32 %v2003_v55, %v5193_v25  ;;  %v5806_v19 = vpop.eup %3528  ;;  %v5809_v38 = vmul.f32 2.0, %v7834_v32  ;;  %3548 = vpow2.f32 %v2162_v36  ;;  %v7837_v12 = vld [vmem:[#allocation99_spill] sm:$0xff] }
 0x268   : > { %7829 = vst [vmem:[#allocation44_spill] sm:$0xff] %v5797_v5  ;;  %7833 = vst [vmem:[#allocation48_spill] sm:$0xff] %v5806_v19  ;;  %v2170_v44 = vmul.f32 1.442695, %v5781_v37  ;;  %v5813_v20 = vsub.f32 %v2004_v27, %v5193_v25  ;;  %v5815_v4 = vpop.eup %3530  ;;  %v5818_v10 = vmul.f32 2.0, %v7837_v12  ;;  %3550 = vpow2.f32 %v2164_v17  ;;  %v7840_v32 = vld [vmem:[#allocation100_spill] sm:$0xff] }
 0x269   : > { %7832 = vst [vmem:[#allocation47_spill] sm:$0xff] %v5804_v29  ;;  %7836 = vst [vmem:[#allocation50_spill] sm:$0xff] %v5815_v4  ;;  %v2172_v55 = vmul.f32 1.442695, %v5788_v14  ;;  %v5822_v3 = vsub.f32 %v2005_v34, %v5193_v25  ;;  %v5824_v19 = vpop.eup %3532  ;;  %v5827_v36 = vmul.f32 2.0, %v7840_v32  ;;  %3552 = vpow2.f32 %v2166_v13  ;;  %v7843_v12 = vld [vmem:[#allocation101_spill] sm:$0xff] }
 0x26a   : > { %7835 = vst [vmem:[#allocation49_spill] sm:$0xff] %v5813_v20  ;;  %7839 = vst [vmem:[#allocation52_spill] sm:$0xff] %v5824_v19  ;;  %v2174_v27 = vmul.f32 1.442695, %v5797_v5  ;;  %v5831_v37 = vsub.f32 %v2006_v22, %v5247_v50  ;;  %v5833_v4 = vpop.eup %3534  ;;  %v5836_v17 = vmul.f32 2.0, %v7843_v12  ;;  %v7844_v14 = vld [vmem:[#allocation102_spill] sm:$0xff]  ;;  %3554 = vpow2.f32 %v2168_v33 }
 0x26b   : > { %7838 = vst [vmem:[#allocation51_spill] sm:$0xff] %v5822_v3  ;;  %7842 = vst [vmem:[#allocation54_spill] sm:$0xff] %v5833_v4  ;;  %v5839_v39 = vmul.f32 2.0, %v7844_v14  ;;  %v2176_v25 = vmul.f32 1.442695, %v5804_v29  ;;  %v5842_v34 = vpop.eup %3536  ;;  %v7846_v32 = vlaneseq  ;;  %3556 = vpow2.f32 %v2170_v44  ;;  %v7849_v12 = vld [vmem:[#allocation103_spill] sm:$0xff] }
 0x26c   : > { %7841 = vst [vmem:[#allocation53_spill] sm:$0xff] %v5831_v37  ;;  %7845 = vst [vmem:[#allocation55_spill] sm:$0xff] %v5842_v34  ;;  %v2178_v22 = vmul.f32 1.442695, %v5813_v20  ;;  %v5847_v5 = vsub.f32 %v2007_v2, %v5247_v50  ;;  %v5849_v4 = vpop.eup %3538  ;;  %v5852_v19 = vmul.f32 2.0, %v7849_v12  ;;  %3558 = vpow2.f32 %v2172_v55  ;;  %v7855_v55 = vld [vmem:[#allocation105_spill] sm:$0xff] }
 0x26d   : > { %v2471_v13 = vand.u32 127, %v7846_v32  ;;  %7848 = vst [vmem:[#allocation57_spill] sm:$0xff] %v5849_v4  ;;  %v2180_v33 = vmul.f32 1.442695, %v5822_v3  ;;  %v5856_v14 = vsub.f32 %v2008_v9, %v5247_v50  ;;  %v5858_v29 = vpop.eup %3540  ;;  %v7852_v32 = vld [vmem:[#allocation104_spill] sm:$0xff]  ;;  %3560 = vpow2.f32 %v2174_v27 }
 0x26e   : > { %7847 = vst [vmem:[#allocation56_spill] sm:$0xff] %v5847_v5  ;;  %7851 = vst [vmem:[#allocation59_spill] sm:$0xff] %v5858_v29  ;;  %v5861_v44 = vmul.f32 2.0, %v7852_v32  ;;  %v5864_v2 = vsub.f32 %v2009_v7, %v5247_v50  ;;  %v2182_v20 = vmul.f32 1.442695, %v5831_v37  ;;  %v5867_v12 = vpop.eup %3542  ;;  %v5870_v4 = vmul.f32 2.0, %v7855_v55 }
 0x26f   : > { %7850 = vst [vmem:[#allocation58_spill] sm:$0xff] %v5856_v14  ;;  %7854 = vst [vmem:[#allocation61_spill] sm:$0xff] %v5867_v12  ;;  %v2475_v3 = vstv %s4087_s10  ;;  %3562 = vpow2.f32 %v2176_v25  ;;  %v5874_v9 = vsub.f32 %v2010_v45, %v5326_v31  ;;  %v5876_v29 = vpop.eup %3544  ;;  %v7858_v32 = vld [vmem:[#allocation106_spill] sm:$0xff]  ;;  %v2472_v34 = vadd.s32 128, %v2471_v13  ;;  %s5986_s10 = sld [smem:[#allocation5 + %s3977_s9]] }
 0x270   : > { %7853 = vst [vmem:[#allocation60_spill] sm:$0xff] %v5864_v2  ;;  %7857 = vst [vmem:[#allocation63_spill] sm:$0xff] %v5876_v29  ;;  %v5879_v27 = vmul.f32 2.0, %v7858_v32  ;;  %3564 = vpow2.f32 %v2178_v22  ;;  %v2184_v50 = vmul.f32 1.442695, %v5847_v5  ;;  %v5882_v7 = vpop.eup %3546  ;;  %v2473_v37 = vadd.s32 256, %v2471_v13 }
 0x271   : > { %7856 = vst [vmem:[#allocation62_spill] sm:$0xff] %v5874_v9  ;;  %7859 = vst [vmem:[#allocation64_spill] sm:$0xff] %v5882_v7  ;;  %v2474_v12 = vadd.s32 384, %v2471_v13  ;;  %3566 = vpow2.f32 %v2180_v33  ;;  %v2186_v25 = vmul.f32 1.442695, %v5856_v14  ;;  %v5886_v45 = vpop.eup %3548  ;;  %v5888_v55 = vadd.s32 %v2475_v3, %v2471_v13  ;;  %v7864_v29 = vld [vmem:[#allocation109_spill] sm:$0xff] }
 0x272   : > { %7860 = vst [vmem:[#allocation65_spill] sm:$0xff] %v5886_v45  ;;  %3568 = vpow2.f32 %v2182_v20  ;;  %v2188_v32 = vmul.f32 1.442695, %v5864_v2  ;;  %v5892_v22 = vsub.f32 %v2011_v15, %v5326_v31  ;;  %v5894_v5 = vpop.eup %3550  ;;  %v5898_v7 = vsub.f32 %v5793_v6, %v5326_v31 }
 0x273   : > { %7862 = vst [vmem:[#allocation67_spill] sm:$0xff] %v5894_v5  ;;  %v2190_v33 = vmul.f32 1.442695, %v5874_v9  ;;  %v2492_v14 = vadd.s32 88, %v7864_v29  ;;  %v2493_v45 = vadd.s32 96, %v7864_v29  ;;  %v5903_v13 = vpop.eup %3552  ;;  %v5905_v20 = vadd.s32 %v2475_v3, %v2472_v34 }
 0x274   : > { %7861 = vst [vmem:[#allocation66_spill] sm:$0xff] %v5892_v22  ;;  %7863 = vst [vmem:[#allocation68_spill] sm:$0xff] %v5898_v7  ;;  %v5909_v2 = vstv %s3126_s18  ;;  %3570 = vpow2.f32 %v2184_v50  ;;  %v5913_v15 = vsub.f32 %v5809_v38, %v5326_v31  ;;  %v5915_v6 = vpop.eup %3554  ;;  %v5917_v5 = vadd.s32 %v2475_v3, %v2473_v37 }
 0x275   : > { %7865 = vst [vmem:[#allocation69_spill] sm:$0xff] %v5903_v13  ;;  %3572 = vpow2.f32 %v2186_v25  ;;  %v5920_v9 = vadd.s32 %v5909_v2, %v2492_v14  ;;  %v5923_v13 = vadd.s32 %v5909_v2, %v2493_v45  ;;  %v5925_v34 = vpop.eup %3556  ;;  %v5927_v28 = vadd.s32 %v2475_v3, %v2474_v12  ;;  %s2520_s19 = sadd.s32 %s5986_s10, %s5989_s24  ;;  %s3127_s0 = sadd.s32 4294967295, %s5986_s10 }
 0x276   : > { %7866 = vst [vmem:[#allocation70_spill] sm:$0xff] %v5913_v15  ;;  %3574 = vpow2.f32 %v2188_v32  ;;  %v2494_v50 = vadd.s32 104, %v7864_v29  ;;  %v2495_v31 = vadd.s32 112, %v7864_v29  ;;  %v5931_v38 = vpop.eup %3558  ;;  %v2192_v37 = vmul.f32 1.442695, %v5892_v22  ;;  %p2811_p3 = scmp.gt.s32.totalorder %s3127_s0, 1 }
 0x277   : > { %7867 = vst [vmem:[#allocation71_spill] sm:$0xff] %v5920_v9  ;;  %7868 = vst [vmem:[#allocation72_spill] sm:$0xff] %v5923_v13  ;;  %3576 = vpow2.f32 %v2190_v33  ;;  %v2194_v14 = vmul.f32 1.442695, %v5898_v7  ;;  %v5937_v25 = vsub.f32 %v5818_v10, %v5365_v1  ;;  %v5939_v45 = vpop.eup %3560  ;;  %v2196_v3 = vmul.f32 1.442695, %v5913_v15 }
 0x278   : > { %v5963_v32 = vadd.s32 %v5909_v2, %v2494_v50  ;;  %v5966_v33 = vadd.s32 %v5909_v2, %v2495_v31  ;;  %v2496_v15 = vadd.s32 120, %v7864_v29  ;;  %3578 = vpow2.f32 %v2192_v37  ;;  %s8142_s0 = smov (!%p2811_p3, %s3127_s0), 1  ;;  %p2814_p6 = scmp.gt.s32.totalorder %s5986_s10, 1 }
 0x279   : > { %7869 = vst [vmem:[#allocation73_spill] sm:$0xff] %v5937_v25  ;;  %v5948_v12 = vpop.eup %3562  ;;  %v5973_v22 = vsub.f32 %v5836_v17, %v5365_v1  ;;  %v5977_v9 = vsub.f32 %v5827_v36, %v5365_v1  ;;  %v5981_v50 = vsub.f32 %v5839_v39, %v5365_v1  ;;  %3580 = vpow2.f32 %v2194_v14  ;;  %s2813_s25 = scvt.s32.f32 %s8142_s0  ;;  %s3806_s10 = scalar_lea.vmem %s7314_s28, 128 }
 0x27a   : > { %v5958_v10 = vpop.eup %3564  ;;  %7870 = vst [vmem:[#allocation74_spill] sm:$0xff] %v5963_v32  ;;  %7871 = vst [vmem:[#allocation75_spill] sm:$0xff] %v5966_v33  ;;  %v2198_v39 = vmul.f32 1.442695, %v5937_v25  ;;  %v6012_v36 = vsub.f32 %v5852_v19, %v5415_v21  ;;  %v6015_v17 = vadd.s32 %v5909_v2, %v2496_v15  ;;  %v6023_v14 = vsub.f32 %v5870_v4, %v5415_v21  ;;  %s2831_s26 = scalar_select %p2814_p6, 1, 0 }
 0x27b   : > { %v5969_v7 = vpop.eup %3566  ;;  %7872 = vst [vmem:[#allocation76_spill] sm:$0xff] %v5973_v22  ;;  %7873 = vst [vmem:[#allocation77_spill] sm:$0xff] %v5977_v9  ;;  %v2200_v37 = vmul.f32 1.442695, %v5973_v22  ;;  %v2202_v32 = vmul.f32 1.442695, %v5977_v9  ;;  %v6027_v25 = vsub.f32 %v5861_v44, %v5415_v21  ;;  %3582 = vpow2.f32 %v2196_v3  ;;  %p3807_p7 = scmp.ne.s32.totalorder %s7314_s28, %s3806_s10 }
 0x27c   : > { %7874 = vst [vmem:[#allocation78_spill] sm:$0xff] %v5981_v50  ;;  %v5983_v13 = vpop.eup %3568  ;;  %7875 = vst [vmem:[#allocation79_spill] sm:$0xff] %v6012_v36  ;;  %v2204_v44 = vmul.f32 1.442695, %v5981_v50  ;;  %v6044_v15 = vsub.f32 %v5879_v27, %v5415_v21  ;;  %3584 = vpow2.f32 %v2198_v39  ;;  %v2206_v9 = vmul.f32 1.442695, %v6012_v36 }
 0x27d   : > { %7876 = vst [vmem:[#allocation80_spill] sm:$0xff] %v6015_v17  ;;  %7877 = vst [vmem:[#allocation81_spill] sm:$0xff] %v6023_v14  ;;  %3586 = vpow2.f32 %v2200_v37  ;;  %v2208_v22 = vmul.f32 1.442695, %v6023_v14  ;;  %v2210_v33 = vmul.f32 1.442695, %v6027_v25  ;;  %v6055_v50 = vstv %s5989_s24  ;;  %p3808_p13 = pnand %p3807_p7, %p8133_p9 }
 0x27e   : > { %v6007_v1 = vpop.eup %3570  ;;  %7878 = vst [vmem:[#allocation82_spill] sm:$0xff] %v6027_v25  ;;  %7879 = vst [vmem:[#allocation83_spill] sm:$0xff] %v6044_v15  ;;  %3588 = vpow2.f32 %v2202_v32  ;;  %v2212_v3 = vmul.f32 1.442695, %v6044_v15  ;;  %v6059_v27 = vadd.s32 %v5909_v2, %v7864_v29  ;;  %v6061_v39 = vstv %s2520_s19  ;;  %s3883_s24 = smov [#allocation9]  }
 0x27f   : > { %v6017_v31 = vpop.eup %3572  ;;  %3590 = vpow2.f32 %v2204_v44  ;;  %vm2516_vm13 = vcmp.ge.s32.totalorder %v5888_v55, %v6055_v50  ;;  %vm2517_vm3 = vcmp.ge.s32.totalorder %v5905_v20, %v6055_v50  ;;  %vm2518_vm1 = vcmp.ge.s32.totalorder %v5917_v5, %v6055_v50  ;;  %p3809_p0 = pneg %p3808_p13  ;;  %s3810_s19 = sshll.u32 %s3883_s24, 4  ;;  %s3811_s19 = int_to_ptr.vmem [resolvable:$false] %s3810_s19 }
 0x280   : > { %v6029_v19 = vpop.eup %3574  ;;  %3592 = vpow2.f32 %v2206_v9  ;;  %vm2522_vm5 = vcmp.lt.s32.totalorder %v5888_v55, %v6061_v39  ;;  %vm2523_vm6 = vcmp.lt.s32.totalorder %v5905_v20, %v6061_v39  ;;  %vm2519_vm12 = vcmp.ge.s32.totalorder %v5927_v28, %v6055_v50  ;;  %s3812_s0 = scalar_lea.vmem %s3811_s19, 256  ;;  %p3813_p1 = scmp.lt.s32.totalorder %s7314_s28, %s3811_s19 }
 0x281   : > { %v6039_v4 = vpop.eup %3576  ;;  %3594 = vpow2.f32 %v2208_v22  ;;  %vm2524_vm9 = vcmp.lt.s32.totalorder %v5917_v5, %v6061_v39  ;;  %vm2525_vm0 = vcmp.lt.s32.totalorder %v5927_v28, %v6061_v39  ;;  %vm2530_vm2 = vcmp.ne.s32.totalorder %v5888_v55, %v6059_v27  ;;  %vm6148_vm14 = vmand %vm2516_vm13, %vm2522_vm5  ;;  %p3814_p4 = scmp.lt.s32.totalorder %s3812_s0, %s3806_s10 }
 0x282   : > { %v6051_v17 = vpop.eup %3578  ;;  %3596 = vpow2.f32 %v2210_v33  ;;  %vm2531_vm4 = vcmp.ne.s32.totalorder %v5905_v20, %v6059_v27  ;;  %vm2532_vm8 = vcmp.ne.s32.totalorder %v5917_v5, %v6059_v27  ;;  %vm2533_vm7 = vcmp.ne.s32.totalorder %v5927_v28, %v6059_v27  ;;  %vm6170_vm13 = vmand %vm2517_vm3, %vm2523_vm6 }
 0x283   : > { %v6063_v37 = vpop.eup %3580  ;;  %3598 = vpow2.f32 %v2212_v3  ;;  %vm6183_vm10 = vmand %vm2518_vm1, %vm2524_vm9  ;;  %p3815_p5 = por %p3814_p4, %p3813_p1 }
 0x284   : > { %vm6198_vm3 = vmand %vm2519_vm12, %vm2525_vm0 }
 0x285   : > { %v1396_v21 = vpop.xlane.xlu1 %1395  ;;  %vm6214_vm0 = vmand %vm6148_vm14, %vm2530_vm2  ;;  %p3816_p8 = pnand %p3815_p5, %p3809_p0 }
 0x286   : > { %v2214_v32 = vadd.f32 %v5608_v59, %v1396_v21  ;;  %v2215_v25 = vadd.f32 %v5615_v8, %v1396_v21  ;;  %v2216_v44 = vadd.f32 %v5622_v41, %v1396_v21  ;;  %v2217_v15 = vadd.f32 %v5629_v18, %v1396_v21  ;;  %v6080_v8 = vpop.eup %3582  ;;  %vm6229_vm2 = vmand %vm6170_vm13, %vm2531_vm4 }
 0x287   : > { %v2482_v59 = vadd.s32 8, %v7864_v29  ;;  %v2483_v18 = vadd.s32 16, %v7864_v29  ;;  %v6089_v9 = vpop.eup %3584  ;;  %vm6241_vm12 = vmand %vm6183_vm10, %vm2532_vm8 }
 0x288   : > { %3600 = vlog2.f32 %v2214_v32  ;;  %7880 = vst [vmem:[#allocation84_spill] sm:$0xff] %v6089_v9  ;;  %v6096_v3 = vpop.eup %3586  ;;  %v2484_v32 = vadd.s32 24, %v7864_v29  ;;  %vm6254_vm1 = vmand %vm6198_vm3, %vm2533_vm7 }
 0x289   : > { %3602 = vlog2.f32 %v2215_v25  ;;  %7881 = vst [vmem:[#allocation85_spill] sm:$0xff] %v6096_v3  ;;  %v2488_v3 = vadd.s32 56, %v7864_v29 }
 0x28a   : > { %v1401_v41 = vpop.xlane.xlu0 %1400  ;;  %3604 = vlog2.f32 %v2216_v44  ;;  %v6102_v44 = vpop.eup %3588 }
 0x28b   : > { %v2218_v22 = vadd.f32 %v5636_v52, %v1401_v41  ;;  %v2219_v33 = vadd.f32 %v5643_v54, %v1401_v41  ;;  %v2220_v25 = vadd.f32 %v5650_v51, %v1401_v41  ;;  %3606 = vlog2.f32 %v2217_v15  ;;  %7882 = vst [vmem:[#allocation86_spill] sm:$0xff] %v6102_v44  ;;  %v6110_v51 = vpop.eup %3590 }
 0x28c   : > { %v2221_v21 = vadd.f32 %v5657_v46, %v1401_v41  ;;  %v6107_v52 = vadd.s32 %v5909_v2, %v2482_v59  ;;  %v2485_v54 = vadd.s32 32, %v7864_v29  ;;  %7883 = vst [vmem:[#allocation87_spill] sm:$0xff] %v6110_v51  ;;  %v6115_v15 = vadd.s32 %v5909_v2, %v2483_v18  ;;  %v6119_v14 = vpop.eup %3592 }
 0x28d   : > { %3608 = vlog2.f32 %v2218_v22  ;;  %v2486_v41 = vadd.s32 40, %v7864_v29  ;;  %v2487_v22 = vadd.s32 48, %v7864_v29  ;;  %v6124_v51 = vpop.eup %3594  ;;  %v6128_v18 = vadd.s32 %v5909_v2, %v2484_v32 }
 0x28e   : > { %3610 = vlog2.f32 %v2219_v33  ;;  %7884 = vst [vmem:[#allocation88_spill] sm:$0xff] %v6124_v51  ;;  %v6131_v9 = vpop.eup %3596  ;;  %vm2534_vm11 = vcmp.ne.s32.totalorder %v5888_v55, %v6107_v52  ;;  %vm2535_vm15 = vcmp.ne.s32.totalorder %v5905_v20, %v6107_v52  ;;  %vm2536_vm5 = vcmp.ne.s32.totalorder %v5917_v5, %v6107_v52 }
 0x28f   : > { %v1406_v46 = vpop.xlane.xlu0 %1405  ;;  %3612 = vlog2.f32 %v2220_v25  ;;  %7885 = vst [vmem:[#allocation90_spill] sm:$0xff] %v6131_v9  ;;  %v6140_v25 = vpop.eup %3598  ;;  %v6155_v32 = vadd.s32 %v5909_v2, %v2486_v41  ;;  %vm2537_vm6 = vcmp.ne.s32.totalorder %v5927_v28, %v6107_v52  ;;  %vm2538_vm9 = vcmp.ne.s32.totalorder %v5888_v55, %v6115_v15  ;;  %vm6278_vm7 = vmand %vm6148_vm14, %vm2534_vm11 }
 0x290   : > { %v2222_v59 = vadd.f32 %v5664_v11, %v1406_v46  ;;  %v2223_v36 = vadd.f32 %v5671_v56, %v1406_v46  ;;  %v2224_v33 = vadd.f32 %v5678_v0, %v1406_v46  ;;  %3614 = vlog2.f32 %v2221_v21  ;;  %7886 = vst [vmem:[#allocation91_spill] sm:$0xff] %v6140_v25  ;;  %vm6304_vm11 = vmand %vm6183_vm10, %vm2536_vm5 }
 0x291   : > { %v2225_v44 = vadd.f32 %v5685_v23, %v1406_v46  ;;  %v6136_v56 = vadd.s32 %v5909_v2, %v2485_v54  ;;  %v2489_v0 = vadd.s32 64, %v7864_v29  ;;  %v2490_v11 = vadd.s32 72, %v7864_v29 }
 0x292   : > { %3616 = vlog2.f32 %v2222_v59  ;;  %v6158_v54 = vadd.s32 %v5909_v2, %v2487_v22  ;;  %v3601_v46 = vpop.eup %3600  ;;  %vm2540_vm8 = vcmp.ne.s32.totalorder %v5917_v5, %v6115_v15  ;;  %vm2541_vm4 = vcmp.ne.s32.totalorder %v5927_v28, %v6115_v15 }
 0x293   : > { %3618 = vlog2.f32 %v2223_v36  ;;  %v2491_v36 = vadd.s32 80, %v7864_v29  ;;  %v3603_v29 = vpop.eup %3602  ;;  %v2279_v22 = vmul.f32 0.6931472, %v3601_v46  ;;  %v6206_v46 = vadd.s32 %v5909_v2, %v2490_v11 }
 0x294   : > { %v1411_v23 = vpop.xlane.xlu1 %1410  ;;  %3620 = vlog2.f32 %v2224_v33  ;;  %v3605_v33 = vpop.eup %3604  ;;  %vm2543_vm5 = vcmp.ne.s32.totalorder %v5905_v20, %v6128_v18 }
 0x295   : > { %v2226_v59 = vadd.f32 %v5692_v26, %v1411_v23  ;;  %v2227_v25 = vadd.f32 %v5699_v40, %v1411_v23  ;;  %v2228_v9 = vadd.f32 %v5706_v60, %v1411_v23  ;;  %3622 = vlog2.f32 %v2225_v44 }
 0x296   : > { %v2229_v40 = vadd.f32 %v5713_v43, %v1411_v23  ;;  %v6190_v26 = vadd.s32 %v5909_v2, %v2488_v3  ;;  %v2281_v44 = vmul.f32 0.6931472, %v3603_v29  ;;  %v6203_v23 = vadd.s32 %v5909_v2, %v2489_v0  ;;  %v3607_v3 = vpop.eup %3606 }
 0x297   : > { %3624 = vlog2.f32 %v2226_v59  ;;  %v2283_v59 = vmul.f32 0.6931472, %v3605_v33  ;;  %v2406_v51 = vsub.f32 %v4663_v57, %v2279_v22  ;;  %v6219_v39 = vadd.s32 %v5909_v2, %v2491_v36  ;;  %v3609_v0 = vpop.eup %3608 }
 0x298   : > { %3626 = vlog2.f32 %v2227_v25  ;;  %v3611_v2 = vpop.eup %3610  ;;  %v2850_v43 = vstv %s2813_s25 }
 0x299   : > { %v1416_v29 = vpop.xlane.xlu0 %1415  ;;  %3628 = vlog2.f32 %v2228_v9  ;;  %v2287_v9 = vmul.f32 0.6931472, %v3609_v0  ;;  %v3613_v36 = vpop.eup %3612  ;;  %v2289_v33 = vmul.f32 0.6931472, %v3611_v2 }
 0x29a   : > { %v2230_v11 = vadd.f32 %v5720_v30, %v1416_v29  ;;  %v2231_v25 = vadd.f32 %v5727_v58, %v1416_v29  ;;  %v2232_v57 = vadd.f32 %v5734_v16, %v1416_v29  ;;  %3630 = vlog2.f32 %v2229_v40 }
 0x29b   : > { %v2233_v30 = vadd.f32 %v5741_v35, %v1416_v29  ;;  %v2285_v58 = vmul.f32 0.6931472, %v3607_v3  ;;  %v2407_v40 = vsub.f32 %v4665_v53, %v2281_v44  ;;  %v2408_v35 = vsub.f32 %v4667_v48, %v2283_v59  ;;  %v3615_v29 = vpop.eup %3614 }
 0x29c   : > { %3632 = vlog2.f32 %v2230_v11  ;;  %v2666_v53 = vsel %vm6214_vm0, %v2406_v51, 0.0  ;;  %v2291_v48 = vmul.f32 0.6931472, %v3613_v36  ;;  %v3617_v27 = vpop.eup %3616  ;;  %v2293_v11 = vmul.f32 0.6931472, %v3615_v29  ;;  %vm6292_vm0 = vmand %vm6170_vm13, %vm2535_vm15 }
 0x29d   : > { %3634 = vlog2.f32 %v2231_v25  ;;  %v2409_v0 = vsub.f32 %v4669_v42, %v2285_v58  ;;  %v2667_v44 = vsel %vm6229_vm2, %v2407_v40, 0.0  ;;  %v2668_v59 = vsel %vm6241_vm12, %v2408_v35, 0.0  ;;  %v3619_v2 = vpop.eup %3618  ;;  %vm6317_vm2 = vmand %vm6198_vm3, %vm2537_vm6  ;;  %v7915_v40 = vld [vmem:[#allocation40_spill] sm:$0xff] }
 0x29e   : > { %3636 = vlog2.f32 %v2232_v57  ;;  %v6269_v25 = vmul.f32 0.6931472, %v3617_v27  ;;  %v2730_v50 = vadd.f32 %v2667_v44, %v2666_v53  ;;  %v3621_v22 = vpop.eup %3620  ;;  %v6282_v58 = vmul.f32 0.6931472, %v3619_v2  ;;  %v7910_v27 = vld [vmem:[#allocation114_spill] sm:$0xff] }
 0x29f   : > { %3638 = vlog2.f32 %v2233_v30  ;;  %v2669_v51 = vsel %vm6254_vm1, %v2409_v0, 0.0  ;;  %v3623_v35 = vpop.eup %3622  ;;  %v2410_v0 = vsub.f32 %v4697_v47, %v2287_v9  ;;  %vm2542_vm15 = vcmp.ne.s32.totalorder %v5888_v55, %v6128_v18  ;;  %vm6344_vm1 = vmand %vm6148_vm14, %vm2538_vm9 }
 0x2a0   : > { %v1421_v42 = vpop.xlane.xlu1 %1420  ;;  %v2731_v29 = vadd.f32 %v2730_v50, %v2668_v59  ;;  %v2413_v47 = vsub.f32 %v7910_v27, %v2293_v11  ;;  %v2299_v9 = vmul.f32 0.6931472, %v3621_v22  ;;  %vm2544_vm12 = vcmp.ne.s32.totalorder %v5917_v5, %v6128_v18  ;;  %vm6372_vm9 = vmand %vm6183_vm10, %vm2540_vm8 }
 0x2a1   : > { %v2234_v16 = vadd.f32 %v5748_v63, %v1421_v42  ;;  %v2235_v30 = vadd.f32 %v5755_v49, %v1421_v42  ;;  %v2236_v36 = vadd.f32 %v5762_v61, %v1421_v42  ;;  %v2237_v3 = vadd.f32 %v5769_v24, %v1421_v42  ;;  %v3625_v61 = vpop.eup %3624  ;;  %v7909_v24 = vld [vmem:[#allocation113_spill] sm:$0xff] }
 0x2a2   : > { %v2411_v63 = vsub.f32 %v4699_v62, %v2289_v33  ;;  %v2412_v53 = vsub.f32 %v7909_v24, %v2291_v48  ;;  %v3627_v33 = vpop.eup %3626  ;;  %v6323_v44 = vmul.f32 0.6931472, %v3625_v61  ;;  %v2732_v48 = vadd.f32 %v2731_v29, %v2669_v51  ;;  %v7918_v61 = vld [vmem:[#allocation45_spill] sm:$0xff] }
 0x2a3   : > { %3640 = vlog2.f32 %v2234_v16  ;;  %v2670_v59 = vsel %vm6278_vm7, %v2410_v0, 0.0  ;;  %v3629_v52 = vpop.eup %3628  ;;  %v6329_v11 = vmul.f32 0.6931472, %v3627_v33  ;;  %vm2545_vm6 = vcmp.ne.s32.totalorder %v5927_v28, %v6128_v18  ;;  %v7922_v62 = vld [vmem:[#allocation13_spill] sm:$0xff] }
 0x2a4   : > { %3642 = vlog2.f32 %v2235_v30  ;;  %v2671_v2 = vsel %vm6292_vm0, %v2411_v63, 0.0  ;;  %v2672_v42 = vsel %vm6304_vm11, %v2412_v53, 0.0  ;;  %v3631_v51 = vpop.eup %3630  ;;  %2733 = vadd.xlane.f32.xlu0 %v2732_v48  ;;  %v2673_v57 = vsel %vm6317_vm2, %v2413_v47, 0.0  ;;  %v7917_v63 = vld [vmem:[#allocation46_spill] sm:$0xff]  ;;  %v7923_v48 = vld [vmem:[#allocation89_spill] sm:$0xff]  ;;  %vm6385_vm11 = vmand %vm6198_vm3, %vm2541_vm4 }
 0x2a5   : > { %3644 = vlog2.f32 %v2236_v36  ;;  %v2735_v22 = vadd.f32 %v2671_v2, %v2670_v59  ;;  %v2301_v16 = vmul.f32 0.6931472, %v3623_v35  ;;  %vm7919_vm7 = vcmp.ne.s32.totalorder %v5905_v20, %v6115_v15  ;;  %vm6412_vm2 = vmand %vm6148_vm14, %vm2542_vm15 }
 0x2a6   : > { %3646 = vlog2.f32 %v2237_v3  ;;  %v3633_v36 = vpop.eup %3632  ;;  %v7916_v3 = vld [vmem:[#allocation43_spill] sm:$0xff]  ;;  %vm6357_vm0 = vmand %vm6170_vm13, %vm7919_vm7  ;;  %v2414_v33 = vsub.f32 %v7922_v62, %v6269_v25  ;;  %v2415_v59 = vsub.f32 %v7923_v48, %v6282_v58  ;;  %v7932_v48 = vld [vmem:[#allocation52_spill] sm:$0xff]  ;;  %vm2546_vm4 = vcmp.ne.s32.totalorder %v5888_v55, %v6136_v56 }
 0x2a7   : > { %v1426_v50 = vpop.xlane.xlu0 %1425  ;;  %v3635_v53 = vpop.eup %3634  ;;  %v6361_v27 = vmul.f32 0.6931472, %v3633_v36  ;;  %v2736_v47 = vadd.f32 %v2735_v22, %v2672_v42  ;;  %v7926_v42 = vld [vmem:[#allocation14_spill] sm:$0xff]  ;;  %v7927_v36 = vld [vmem:[#allocation15_spill] sm:$0xff]  ;;  %vm2547_vm8 = vcmp.ne.s32.totalorder %v5905_v20, %v6136_v56  ;;  %vm6429_vm15 = vmand %vm6170_vm13, %vm2543_vm5  ;;  %vm2549_vm7 = vcmp.ne.s32.totalorder %v5927_v28, %v6136_v56 }
 0x2a8   : > { %v2238_v29 = vadd.f32 %v7915_v40, %v1426_v50  ;;  %v2239_v0 = vadd.f32 %v7916_v3, %v1426_v50  ;;  %v2240_v49 = vadd.f32 %v7917_v63, %v1426_v50  ;;  %v2241_v24 = vadd.f32 %v7918_v61, %v1426_v50  ;;  %v3637_v50 = vpop.eup %3636  ;;  %vm6444_vm5 = vmand %vm6183_vm10, %vm2544_vm12 }
 0x2a9   : > { %v6376_v40 = vmul.f32 0.6931472, %v3635_v53  ;;  %v2416_v22 = vsub.f32 %v7926_v42, %v2299_v9  ;;  %v2417_v25 = vsub.f32 %v7927_v36, %v2301_v16  ;;  %v6389_v3 = vpop.eup %3638  ;;  %v2737_v61 = vadd.f32 %v2736_v47, %v2673_v57  ;;  %v7930_v16 = vld [vmem:[#allocation48_spill] sm:$0xff]  ;;  %v7931_v53 = vld [vmem:[#allocation50_spill] sm:$0xff] }
 0x2aa   : > { %3648 = vlog2.f32 %v2238_v29  ;;  %v2674_v29 = vsel %vm6344_vm1, %v2414_v33, 0.0  ;;  %v2675_v9 = vsel %vm6357_vm0, %v2415_v59, 0.0  ;;  %v2307_v47 = vmul.f32 0.6931472, %v3629_v52  ;;  %v7936_v52 = vld [vmem:[#allocation16_spill] sm:$0xff]  ;;  %vm6457_vm0 = vmand %vm6198_vm3, %vm2545_vm6 }
 0x2ab   : > { %3650 = vlog2.f32 %v2239_v0  ;;  %v7933_v0 = vld [vmem:[#allocation54_spill] sm:$0xff]  ;;  %2738 = vadd.xlane.f32.xlu1 %v2737_v61  ;;  %v2676_v57 = vsel %vm6372_vm9, %v2416_v22, 0.0  ;;  %v2677_v30 = vsel %vm6385_vm11, %v2417_v25, 0.0  ;;  %v2740_v35 = vadd.f32 %v2675_v9, %v2674_v29 }
 0x2ac   : > { %v1431_v63 = vpop.xlane.xlu1 %1430  ;;  %3652 = vlog2.f32 %v2240_v49  ;;  %v2309_v33 = vmul.f32 0.6931472, %v3631_v51  ;;  %vm2548_vm1 = vcmp.ne.s32.totalorder %v5917_v5, %v6136_v56  ;;  %v2418_v51 = vsub.f32 %v7936_v52, %v6323_v44  ;;  %v7937_v25 = vld [vmem:[#allocation98_spill] sm:$0xff]  ;;  %v7940_v44 = vld [vmem:[#allocation55_spill] sm:$0xff]  ;;  %v7948_v52 = vld [vmem:[#allocation17_spill] sm:$0xff] }
 0x2ad   : > { %v2242_v15 = vadd.f32 %v7930_v16, %v1431_v63  ;;  %v2243_v62 = vadd.f32 %v7931_v53, %v1431_v63  ;;  %v2244_v42 = vadd.f32 %v7932_v48, %v1431_v63  ;;  %3654 = vlog2.f32 %v2241_v24  ;;  %v3641_v49 = vpop.eup %3640  ;;  %v7941_v16 = vld [vmem:[#allocation57_spill] sm:$0xff] }
 0x2ae   : > { %v2245_v36 = vadd.f32 %v7933_v0, %v1431_v63  ;;  %v3643_v59 = vpop.eup %3642  ;;  %v6418_v2 = vmul.f32 0.6931472, %v3641_v49  ;;  %v2419_v58 = vsub.f32 %v7937_v25, %v6329_v11  ;;  %v7945_v0 = vld [vmem:[#allocation61_spill] sm:$0xff]  ;;  %v2741_v49 = vadd.f32 %v2740_v35, %v2676_v57  ;;  %v7949_v25 = vld [vmem:[#allocation19_spill] sm:$0xff] }
 0x2af   : > { %3656 = vlog2.f32 %v2242_v15  ;;  %v3645_v61 = vpop.eup %3644  ;;  %v6435_v29 = vmul.f32 0.6931472, %v3643_v59  ;;  %vm2550_vm12 = vcmp.ne.s32.totalorder %v5888_v55, %v6155_v32  ;;  %v2678_v57 = vsel %vm6412_vm2, %v2418_v51, 0.0  ;;  %vm6501_vm2 = vmand %vm6148_vm14, %vm2546_vm4 }
 0x2b0   : > { %3658 = vlog2.f32 %v2243_v62  ;;  %v6448_v53 = vpop.eup %3646  ;;  %v7944_v62 = vld [vmem:[#allocation59_spill] sm:$0xff]  ;;  %vm2551_vm9 = vcmp.ne.s32.totalorder %v5905_v20, %v6155_v32  ;;  %v2742_v18 = vadd.f32 %v2741_v49, %v2677_v30  ;;  %v2679_v35 = vsel %vm6429_vm15, %v2419_v58, 0.0 }
 0x2b1   : > { %v1436_v22 = vpop.xlane.xlu0 %1435  ;;  %3660 = vlog2.f32 %v2244_v42  ;;  %vm2552_vm6 = vcmp.ne.s32.totalorder %v5917_v5, %v6155_v32  ;;  %v2745_v51 = vadd.f32 %v2679_v35, %v2678_v57  ;;  %vm2553_vm11 = vcmp.ne.s32.totalorder %v5927_v28, %v6155_v32  ;;  %v7953_v49 = vld [vmem:[#allocation67_spill] sm:$0xff]  ;;  %v7955_v57 = vld [vmem:[#allocation22_spill] sm:$0xff] }
 0x2b2   : > { %v2246_v9 = vadd.f32 %v7940_v44, %v1436_v22  ;;  %v2247_v11 = vadd.f32 %v7941_v16, %v1436_v22  ;;  %3662 = vlog2.f32 %v2245_v36  ;;  %v2248_v48 = vadd.f32 %v7944_v62, %v1436_v22  ;;  %2743 = vadd.xlane.f32.xlu0 %v2742_v18  ;;  %v7951_v16 = vld [vmem:[#allocation64_spill] sm:$0xff] }
 0x2b3   : > { %v2249_v42 = vadd.f32 %v7945_v0, %v1436_v22  ;;  %v2420_v36 = vsub.f32 %v7948_v52, %v2307_v47  ;;  %v2421_v44 = vsub.f32 %v7949_v25, %v2309_v33  ;;  %v2315_v22 = vmul.f32 0.6931472, %v3637_v50  ;;  %v7950_v50 = vld [vmem:[#allocation63_spill] sm:$0xff] }
 0x2b4   : > { %3664 = vlog2.f32 %v2246_v9  ;;  %v3649_v9 = vpop.eup %3648  ;;  %v2317_v25 = vmul.f32 0.6931472, %v6389_v3  ;;  %v2423_v18 = vsub.f32 %v7955_v57, %v6376_v40  ;;  %vm2554_vm15 = vcmp.ne.s32.totalorder %v5888_v55, %v6158_v54 }
 0x2b5   : > { %3666 = vlog2.f32 %v2247_v11  ;;  %v2680_v33 = vsel %vm6444_vm5, %v2420_v36, 0.0  ;;  %v2681_v24 = vsel %vm6457_vm0, %v2421_v44, 0.0  ;;  %v3651_v30 = vpop.eup %3650  ;;  %v6479_v63 = vmul.f32 0.6931472, %v3649_v9  ;;  %vm6513_vm5 = vmand %vm6170_vm13, %vm2547_vm8 }
 0x2b6   : > { %3668 = vlog2.f32 %v2248_v48  ;;  %v1441_v47 = vpop.xlane.xlu1 %1440  ;;  %v6483_v62 = vpop.eup %3652  ;;  %v6485_v15 = vmul.f32 0.6931472, %v3651_v30  ;;  %v7952_v48 = vld [vmem:[#allocation65_spill] sm:$0xff]  ;;  %v2746_v52 = vadd.f32 %v2745_v51, %v2680_v33  ;;  %v6517_v51 = vmul.f32 0.6931472, %v3645_v61  ;;  %vm6530_vm8 = vmand %vm6183_vm10, %vm2548_vm1 }
 0x2b7   : > { %3670 = vlog2.f32 %v2249_v42  ;;  %v2250_v58 = vadd.f32 %v7950_v50, %v1441_v47  ;;  %v2251_v11 = vadd.f32 %v7951_v16, %v1441_v47  ;;  %v2252_v0 = vadd.f32 %v7952_v48, %v1441_v47  ;;  %v6489_v36 = vpop.eup %3654  ;;  %v7954_v42 = vld [vmem:[#allocation18_spill] sm:$0xff]  ;;  %vm6547_vm1 = vmand %vm6198_vm3, %vm2549_vm7 }
 0x2b8   : > { %v2253_v59 = vadd.f32 %v7953_v49, %v1441_v47  ;;  %v2422_v44 = vsub.f32 %v7954_v42, %v6361_v27  ;;  %v2747_v3 = vadd.f32 %v2746_v52, %v2681_v24  ;;  %v7958_v27 = vld [vmem:[#allocation107_spill] sm:$0xff]  ;;  %vm2555_vm4 = vcmp.ne.s32.totalorder %v5905_v20, %v6158_v54  ;;  %v7961_v24 = vld [vmem:[#allocation69_spill] sm:$0xff]  ;;  %vm6568_vm7 = vmand %vm6148_vm14, %vm2550_vm12 }
 0x2b9   : > { %3672 = vlog2.f32 %v2250_v58  ;;  %v3657_v9 = vpop.eup %3656  ;;  %v2424_v33 = vsub.f32 %v7958_v27, %v2315_v22  ;;  %vm2557_vm0 = vcmp.ne.s32.totalorder %v5927_v28, %v6158_v54  ;;  %vm2558_vm12 = vcmp.ne.s32.totalorder %v5888_v55, %v6190_v26 }
 0x2ba   : > { %3674 = vlog2.f32 %v2251_v11  ;;  %v1446_v47 = vpop.xlane.xlu0 %1445  ;;  %v3659_v30 = vpop.eup %3658  ;;  %v6521_v50 = vmul.f32 0.6931472, %v3657_v9  ;;  %2748 = vadd.xlane.f32.xlu1 %v2747_v3  ;;  %v2325_v9 = vmul.f32 0.6931472, %v6448_v53  ;;  %v7969_v3 = vld [vmem:[#allocation21_spill] sm:$0xff] }
 0x2bb   : > { %3676 = vlog2.f32 %v2252_v0  ;;  %v2254_v22 = vadd.f32 %v7961_v24, %v1446_v47  ;;  %v2255_v58 = vadd.f32 %v5915_v6, %v1446_v47  ;;  %v6536_v61 = vpop.eup %3660  ;;  %v6538_v11 = vmul.f32 0.6931472, %v3659_v30 }
 0x2bc   : > { %3678 = vlog2.f32 %v2253_v59  ;;  %v2256_v6 = vadd.f32 %v5925_v34, %v1446_v47  ;;  %v2257_v48 = vadd.f32 %v5931_v38, %v1446_v47  ;;  %v6553_v49 = vpop.eup %3662  ;;  %v7966_v59 = vld [vmem:[#allocation20_spill] sm:$0xff]  ;;  %v2682_v34 = vsel %vm6501_vm2, %v2422_v44, 0.0  ;;  %vm6583_vm2 = vmand %vm6170_vm13, %vm2551_vm9 }
 0x2bd   : > { %3680 = vlog2.f32 %v2254_v22  ;;  %v2425_v52 = vsub.f32 %v7966_v59, %v2317_v25  ;;  %v2683_v38 = vsel %vm6513_vm5, %v2423_v18, 0.0  ;;  %v2684_v42 = vsel %vm6530_vm8, %v2424_v33, 0.0  ;;  %vm6600_vm9 = vmand %vm6183_vm10, %vm2552_vm6 }
 0x2be   : > { %v3665_v56 = vpop.eup %3664  ;;  %3682 = vlog2.f32 %v2255_v58  ;;  %v2750_v57 = vadd.f32 %v2683_v38, %v2682_v34  ;;  %v2426_v47 = vsub.f32 %v7969_v3, %v6418_v2  ;;  %v7972_v2 = vld [vmem:[#allocation23_spill] sm:$0xff]  ;;  %vm2559_vm5 = vcmp.ne.s32.totalorder %v5905_v20, %v6190_v26  ;;  %vm6617_vm6 = vmand %vm6198_vm3, %vm2553_vm11 }
 0x2bf   : > { %v3667_v44 = vpop.eup %3666  ;;  %v6572_v35 = vmul.f32 0.6931472, %v3665_v56  ;;  %3684 = vlog2.f32 %v2256_v6  ;;  %v2685_v18 = vsel %vm6547_vm1, %v2425_v52, 0.0  ;;  %v2427_v24 = vsub.f32 %v7972_v2, %v6435_v29  ;;  %v7978_v52 = vld [vmem:[#allocation25_spill] sm:$0xff]  ;;  %vm6645_vm11 = vmand %vm6148_vm14, %vm2554_vm15  ;;  %v7981_v3 = vld [vmem:[#allocation111_spill] sm:$0xff] }
 0x2c0   : > { %v6589_v27 = vpop.eup %3668  ;;  %v6591_v33 = vmul.f32 0.6931472, %v3667_v44  ;;  %3686 = vlog2.f32 %v2257_v48  ;;  %v2751_v40 = vadd.f32 %v2750_v57, %v2684_v42  ;;  %v1451_v30 = vpop.xlane.xlu1 %1450  ;;  %vm2560_vm8 = vcmp.ne.s32.totalorder %v5917_v5, %v6190_v26  ;;  %vm6662_vm15 = vmand %vm6170_vm13, %vm2555_vm4 }
 0x2c1   : > { %v6606_v58 = vpop.eup %3670  ;;  %v2258_v16 = vadd.f32 %v5939_v45, %v1451_v30  ;;  %v2259_v6 = vadd.f32 %v5948_v12, %v1451_v30  ;;  %v2260_v29 = vadd.f32 %v5958_v10, %v1451_v30  ;;  %v2261_v48 = vadd.f32 %v5969_v7, %v1451_v30  ;;  %v7977_v45 = vld [vmem:[#allocation24_spill] sm:$0xff] }
 0x2c2   : > { %v2752_v59 = vadd.f32 %v2751_v40, %v2685_v18  ;;  %v2428_v12 = vsub.f32 %v7977_v45, %v6517_v51  ;;  %v2429_v10 = vsub.f32 %v7978_v52, %v2325_v9  ;;  %v2686_v7 = vsel %vm6568_vm7, %v2426_v47, 0.0 }
 0x2c3   : > { %vm2561_vm1 = vcmp.ne.s32.totalorder %v5927_v28, %v6190_v26  ;;  %v3673_v32 = vpop.eup %3672  ;;  %3688 = vlog2.f32 %v2258_v16  ;;  %v2687_v34 = vsel %vm6583_vm2, %v2427_v24, 0.0  ;;  %v2331_v38 = vmul.f32 0.6931472, %v6483_v62 }
 0x2c4   : > { %v2333_v56 = vmul.f32 0.6931472, %v6489_v36  ;;  %v3675_v42 = vpop.eup %3674  ;;  %v6634_v57 = vmul.f32 0.6931472, %v3673_v32  ;;  %2753 = vadd.xlane.f32.xlu0 %v2752_v59  ;;  %3690 = vlog2.f32 %v2259_v6  ;;  %v2688_v51 = vsel %vm6600_vm9, %v2428_v12, 0.0 }
 0x2c5   : > { %v2689_v9 = vsel %vm6617_vm6, %v2429_v10, 0.0  ;;  %vm2562_vm7 = vcmp.ne.s32.totalorder %v5888_v55, %v6203_v23  ;;  %v6651_v36 = vpop.eup %3676  ;;  %v6653_v25 = vmul.f32 0.6931472, %v3675_v42  ;;  %3692 = vlog2.f32 %v2260_v29  ;;  %v1456_v18 = vpop.xlane.xlu0 %1455 }
 0x2c6   : > { %v2755_v44 = vadd.f32 %v2687_v34, %v2686_v7  ;;  %v2430_v47 = vsub.f32 %v7981_v3, %v6479_v63  ;;  %v6668_v40 = vpop.eup %3678  ;;  %3694 = vlog2.f32 %v2261_v48  ;;  %v2262_v30 = vadd.f32 %v5983_v13, %v1456_v18 }
 0x2c7   : > { %v2263_v2 = vadd.f32 %v6007_v1, %v1456_v18  ;;  %v2264_v63 = vadd.f32 %v6017_v31, %v1456_v18  ;;  %vm7984_vm9 = vcmp.ne.s32.totalorder %v5917_v5, %v6158_v54  ;;  %v3681_v22 = vpop.eup %3680  ;;  %v2265_v13 = vadd.f32 %v6029_v19, %v1456_v18  ;;  %v7987_v1 = vld [vmem:[#allocation27_spill] sm:$0xff]  ;;  %v7988_v31 = vld [vmem:[#allocation108_spill] sm:$0xff]  ;;  %v7991_v19 = vld [vmem:[#allocation26_spill] sm:$0xff] }
 0x2c8   : > { %vm6678_vm4 = vmand %vm6183_vm10, %vm7984_vm9  ;;  %v2756_v16 = vadd.f32 %v2755_v44, %v2688_v51  ;;  %v2431_v6 = vsub.f32 %v7987_v1, %v6485_v15  ;;  %v2432_v29 = vsub.f32 %v7988_v31, %v2331_v38  ;;  %vm2565_vm6 = vcmp.ne.s32.totalorder %v5927_v28, %v6203_v23  ;;  %v3683_v0 = vpop.eup %3682 }
 0x2c9   : > { %vm6693_vm9 = vmand %vm6198_vm3, %vm2557_vm0  ;;  %v6699_v59 = vmul.f32 0.6931472, %v3681_v22  ;;  %3696 = vlog2.f32 %v2262_v30  ;;  %v2433_v15 = vsub.f32 %v7991_v19, %v2333_v56  ;;  %v2690_v45 = vsel %vm6645_vm11, %v2430_v47, 0.0  ;;  %v6706_v54 = vpop.eup %3684  ;;  %v8002_v22 = vld [vmem:[#allocation29_spill] sm:$0xff] }
 0x2ca   : > { %vm2566_vm2 = vcmp.ne.s32.totalorder %v5888_v55, %v6206_v46  ;;  %v6708_v12 = vmul.f32 0.6931472, %v3683_v0  ;;  %v2757_v52 = vadd.f32 %v2756_v16, %v2689_v9  ;;  %3698 = vlog2.f32 %v2263_v2  ;;  %v6714_v7 = vpop.eup %3686  ;;  %vm6725_vm11 = vmand %vm6148_vm14, %vm2558_vm12  ;;  %v7994_v9 = vld [vmem:[#allocation30_spill] sm:$0xff]  ;;  %v8003_v16 = vld [vmem:[#allocation31_spill] sm:$0xff] }
 0x2cb   : > { %v2691_v10 = vsel %vm6662_vm15, %v2431_v6, 0.0  ;;  %vm2567_vm0 = vcmp.ne.s32.totalorder %v5905_v20, %v6206_v46  ;;  %3700 = vlog2.f32 %v2264_v63  ;;  %v2692_v32 = vsel %vm6678_vm4, %v2432_v29, 0.0  ;;  %vm6740_vm12 = vmand %vm6170_vm13, %vm2559_vm5 }
 0x2cc   : > { %v2693_v34 = vsel %vm6693_vm9, %v2433_v15, 0.0  ;;  %v2760_v38 = vadd.f32 %v2691_v10, %v2690_v45  ;;  %vm2568_vm15 = vcmp.ne.s32.totalorder %v5917_v5, %v6206_v46  ;;  %2758 = vadd.xlane.f32.xlu1 %v2757_v52  ;;  %3702 = vlog2.f32 %v2265_v13  ;;  %v1461_v3 = vpop.xlane.xlu1 %1460  ;;  %vm6753_vm9 = vmand %vm6183_vm10, %vm2560_vm8  ;;  %v8009_v52 = vld [vmem:[#allocation84_spill] sm:$0xff] }
 0x2cd   : > { %v2339_v42 = vmul.f32 0.6931472, %v6536_v61  ;;  %v2341_v51 = vmul.f32 0.6931472, %v6553_v49  ;;  %v2434_v62 = vsub.f32 %v7994_v9, %v6521_v50  ;;  %v7997_v61 = vld [vmem:[#allocation28_spill] sm:$0xff]  ;;  %v3689_v30 = vpop.eup %3688  ;;  %v2267_v2 = vadd.f32 %v6051_v17, %v1461_v3  ;;  %vm6772_vm8 = vmand %vm6198_vm3, %vm2561_vm1 }
 0x2ce   : > { %v2761_v18 = vadd.f32 %v2760_v38, %v2692_v32  ;;  %v2435_v49 = vsub.f32 %v7997_v61, %v6538_v11  ;;  %v2347_v47 = vmul.f32 0.6931472, %v6589_v27  ;;  %v6759_v53 = vmul.f32 0.6931472, %v6606_v58  ;;  %v3691_v58 = vpop.eup %3690  ;;  %vm6797_vm1 = vmand %vm6148_vm14, %vm2562_vm7  ;;  %v8010_v32 = vld [vmem:[#allocation85_spill] sm:$0xff]  ;;  %v8011_v38 = vld [vmem:[#allocation86_spill] sm:$0xff] }
 0x2cf   : > { %v2266_v11 = vadd.f32 %v6039_v4, %v1461_v3  ;;  %v2268_v63 = vadd.f32 %v6063_v37, %v1461_v3  ;;  %v2269_v24 = vadd.f32 %v6080_v8, %v1461_v3  ;;  %vm2571_vm5 = vcmp.ne.s32.totalorder %v5905_v20, %v6219_v39  ;;  %v6784_v26 = vpop.eup %3692 }
 0x2d0   : > { %v6778_v4 = vmul.f32 0.6931472, %v3689_v30  ;;  %v2762_v17 = vadd.f32 %v2761_v18, %v2693_v34  ;;  %v2436_v37 = vsub.f32 %v8002_v22, %v2339_v42  ;;  %v2437_v8 = vsub.f32 %v8003_v16, %v2341_v51  ;;  %v6803_v29 = vpop.eup %3694  ;;  %v1466_v15 = vpop.xlane.xlu0 %1465  ;;  %v8016_v18 = vld [vmem:[#allocation32_spill] sm:$0xff]  ;;  %v8019_v30 = vld [vmem:[#allocation110_spill] sm:$0xff] }
 0x2d1   : > { %v6786_v13 = vmul.f32 0.6931472, %v3691_v58  ;;  %3704 = vlog2.f32 %v2266_v11  ;;  %v2694_v1 = vsel %vm6725_vm11, %v2434_v62, 0.0  ;;  %v2695_v6 = vsel %vm6740_vm12, %v2435_v49, 0.0  ;;  %v8015_v62 = vld [vmem:[#allocation87_spill] sm:$0xff] }
 0x2d2   : > { %vm2573_vm4 = vcmp.ne.s32.totalorder %v5927_v28, %v6219_v39  ;;  %2763 = vadd.xlane.f32.xlu0 %v2762_v17  ;;  %3706 = vlog2.f32 %v2267_v2  ;;  %v2696_v48 = vsel %vm6753_vm9, %v2436_v37, 0.0  ;;  %v2697_v0 = vsel %vm6772_vm8, %v2437_v8, 0.0  ;;  %vm6838_vm8 = vmand %vm6198_vm3, %vm2565_vm6  ;;  %v8020_v2 = vld [vmem:[#allocation33_spill] sm:$0xff]  ;;  %v8023_v58 = vld [vmem:[#allocation35_spill] sm:$0xff] }
 0x2d3   : > { %v2765_v19 = vadd.f32 %v2695_v6, %v2694_v1  ;;  %vm8006_vm7 = vcmp.ne.s32.totalorder %v5905_v20, %v6203_v23  ;;  %3708 = vlog2.f32 %v2268_v63  ;;  %v2270_v10 = vadd.f32 %v8009_v52, %v1466_v15  ;;  %v3697_v51 = vpop.eup %3696  ;;  %vm6867_vm6 = vmand %vm6170_vm13, %vm2567_vm0  ;;  %v8033_v52 = vld [vmem:[#allocation91_spill] sm:$0xff] }
 0x2d4   : > { %vm6814_vm11 = vmand %vm6170_vm13, %vm8006_vm7  ;;  %v2271_v34 = vadd.f32 %v8010_v32, %v1466_v15  ;;  %v2272_v56 = vadd.f32 %v8011_v38, %v1466_v15  ;;  %vm8012_vm12 = vcmp.ne.s32.totalorder %v5917_v5, %v6203_v23  ;;  %3710 = vlog2.f32 %v2269_v24  ;;  %v3699_v49 = vpop.eup %3698  ;;  %v8037_v38 = vld [vmem:[#allocation34_spill] sm:$0xff] }
 0x2d5   : > { %vm6826_vm9 = vmand %vm6183_vm10, %vm8012_vm12  ;;  %v2766_v9 = vadd.f32 %v2765_v19, %v2696_v48  ;;  %v2273_v44 = vadd.f32 %v8015_v62, %v1466_v15  ;;  %v2438_v3 = vsub.f32 %v8016_v18, %v6572_v35  ;;  %v6842_v50 = vmul.f32 0.6931472, %v3697_v51  ;;  %v6856_v35 = vpop.eup %3700  ;;  %v1471_v16 = vpop.xlane.xlu1 %1470  ;;  %v8032_v15 = vld [vmem:[#allocation90_spill] sm:$0xff]  ;;  %v8041_v62 = vld [vmem:[#allocation36_spill] sm:$0xff] }
 0x2d6   : > { %3712 = vlog2.f32 %v2270_v10  ;;  %v2439_v11 = vsub.f32 %v8019_v30, %v6591_v33  ;;  %v2440_v63 = vsub.f32 %v8020_v2, %v2347_v47  ;;  %vm6852_vm7 = vmand %vm6148_vm14, %vm2566_vm2  ;;  %v6858_v24 = vmul.f32 0.6931472, %v3699_v49  ;;  %v6871_v17 = vpop.eup %3702  ;;  %v8040_v51 = vld [vmem:[#allocation38_spill] sm:$0xff]  ;;  %v8045_v49 = vld [vmem:[#allocation112_spill] sm:$0xff] }
 0x2d7   : > { %v2767_v27 = vadd.f32 %v2766_v9, %v2697_v0  ;;  %3714 = vlog2.f32 %v2271_v34  ;;  %v2441_v33 = vsub.f32 %v8023_v58, %v6759_v53  ;;  %v2698_v22 = vsel %vm6797_vm1, %v2438_v3, 0.0  ;;  %vm6884_vm2 = vmand %vm6183_vm10, %vm2568_vm15  ;;  %v8031_v0 = vld [vmem:[#allocation88_spill] sm:$0xff] }
 0x2d8   : > { %3716 = vlog2.f32 %v2272_v56  ;;  %v2699_v37 = vsel %vm6814_vm11, %v2439_v11, 0.0  ;;  %v2700_v53 = vsel %vm6826_vm9, %v2440_v63, 0.0  ;;  %v2274_v31 = vadd.f32 %v6119_v14, %v1471_v16  ;;  %vm6921_vm12 = vmand %vm6170_vm13, %vm2571_vm5 }
 0x2d9   : > { %2768 = vadd.xlane.f32.xlu1 %v2767_v27  ;;  %3718 = vlog2.f32 %v2273_v44  ;;  %v2701_v1 = vsel %vm6838_vm8, %v2441_v33, 0.0  ;;  %v2770_v6 = vadd.f32 %v2699_v37, %v2698_v22  ;;  %vm8028_vm0 = vcmp.ne.s32.totalorder %v5927_v28, %v6206_v46  ;;  %vm6946_vm5 = vmand %vm6198_vm3, %vm2573_vm4  ;;  %v8048_v27 = vld [vmem:[#allocation71_spill] sm:$0xff] }
 0x2da   : > { %vm6896_vm1 = vmand %vm6198_vm3, %vm8028_vm0  ;;  %v2275_v19 = vadd.f32 %v8031_v0, %v1471_v16  ;;  %v2276_v45 = vadd.f32 %v8032_v15, %v1471_v16  ;;  %v2277_v10 = vadd.f32 %v8033_v52, %v1471_v16  ;;  %v2355_v32 = vmul.f32 0.6931472, %v6651_v36  ;;  %v8055_v16 = vld [vmem:[#allocation37_spill] sm:$0xff]  ;;  %v8069_v36 = vld [vmem:[#allocation44_spill] sm:$0xff] }
 0x2db   : > { %vm8034_vm15 = vcmp.ne.s32.totalorder %v5888_v55, %v6219_v39  ;;  %v2771_v46 = vadd.f32 %v2770_v6, %v2700_v53  ;;  %3720 = vlog2.f32 %v2274_v31  ;;  %v2357_v34 = vmul.f32 0.6931472, %v6668_v40  ;;  %v3705_v42 = vpop.eup %3704  ;;  %v8057_v31 = vld [vmem:[#allocation41_spill] sm:$0xff] }
 0x2dc   : > { %vm6909_vm11 = vmand %vm6148_vm14, %vm8034_vm15  ;;  %v2442_v56 = vsub.f32 %v8037_v38, %v6634_v57  ;;  %3722 = vlog2.f32 %v2275_v19  ;;  %v2443_v9 = vsub.f32 %v8040_v51, %v6653_v25  ;;  %v2444_v44 = vsub.f32 %v8041_v62, %v2355_v32  ;;  %v3707_v18 = vpop.eup %3706  ;;  %v8065_v38 = vld [vmem:[#allocation72_spill] sm:$0xff] }
 0x2dd   : > { %v2363_v40 = vmul.f32 0.6931472, %v6706_v54  ;;  %vm8042_vm9 = vcmp.ne.s32.totalorder %v5917_v5, %v6219_v39  ;;  %v6938_v3 = vmul.f32 0.6931472, %v3705_v42  ;;  %v2772_v61 = vadd.f32 %v2771_v46, %v2701_v1  ;;  %v6950_v30 = vpop.eup %3708  ;;  %v8056_v1 = vld [vmem:[#allocation39_spill] sm:$0xff] }
 0x2de   : > { %vm6934_vm8 = vmand %vm6183_vm10, %vm8042_vm9  ;;  %3724 = vlog2.f32 %v2276_v45  ;;  %v2445_v25 = vsub.f32 %v8045_v49, %v2357_v34  ;;  %v6952_v11 = vmul.f32 0.6931472, %v3707_v18  ;;  %v2702_v2 = vsel %vm6852_vm7, %v2442_v56, 0.0  ;;  %v6967_v58 = vpop.eup %3710  ;;  %v8061_v45 = vld [vmem:[#allocation42_spill] sm:$0xff]  ;;  %v8074_v18 = vld [vmem:[#allocation49_spill] sm:$0xff] }
 0x2df   : > { %3726 = vlog2.f32 %v2277_v10  ;;  %v2703_v63 = vsel %vm6867_vm6, %v2443_v9, 0.0  ;;  %vm8049_vm0 = vcmp.ne.s32.totalorder %v5888_v55, %v8048_v27  ;;  %2773 = vadd.xlane.f32.xlu0 %v2772_v61  ;;  %v2704_v33 = vsel %vm6884_vm2, %v2444_v44, 0.0  ;;  %v8075_v49 = vld [vmem:[#allocation51_spill] sm:$0xff] }
 0x2e0   : > { %vm6963_vm4 = vmand %vm6148_vm14, %vm8049_vm0  ;;  %v2705_v23 = vsel %vm6896_vm1, %v2445_v25, 0.0  ;;  %v2775_v47 = vadd.f32 %v2703_v63, %v2702_v2  ;;  %v2365_v22 = vmul.f32 0.6931472, %v6714_v7  ;;  %vm8052_vm7 = vcmp.ne.s32.totalorder %v5905_v20, %v8048_v27  ;;  %v3713_v53 = vpop.eup %3712 }
 0x2e1   : > { %vm6979_vm6 = vmand %vm6170_vm13, %vm8052_vm7  ;;  %v2446_v8 = vsub.f32 %v8055_v16, %v6699_v59  ;;  %v2447_v6 = vsub.f32 %v8056_v1, %v6708_v12  ;;  %v2448_v48 = vsub.f32 %v8057_v31, %v2363_v40  ;;  %v2371_v7 = vmul.f32 0.6931472, %v6784_v26  ;;  %v3715_v19 = vpop.eup %3714  ;;  %v8073_v40 = vld [vmem:[#allocation47_spill] sm:$0xff]  ;;  %v8087_v31 = vld [vmem:[#allocation56_spill] sm:$0xff] }
 0x2e2   : > { %vm8058_vm2 = vcmp.ne.s32.totalorder %v5917_v5, %v8048_v27  ;;  %v6998_v15 = vmul.f32 0.6931472, %v3713_v53  ;;  %v2776_v59 = vadd.f32 %v2775_v47, %v2704_v33  ;;  %v2449_v52 = vsub.f32 %v8061_v45, %v2365_v22  ;;  %v3717_v10 = vpop.eup %3716  ;;  %v8079_v33 = vld [vmem:[#allocation53_spill] sm:$0xff]  ;;  %v8083_v53 = vld [vmem:[#allocation74_spill] sm:$0xff]  ;;  %v8092_v45 = vld [vmem:[#allocation60_spill] sm:$0xff] }
 0x2e3   : > { %vm6994_vm1 = vmand %vm6183_vm10, %vm8058_vm2  ;;  %v2373_v12 = vmul.f32 0.6931472, %v6803_v29  ;;  %vm8062_vm15 = vcmp.ne.s32.totalorder %v5927_v28, %v8048_v27  ;;  %v7011_v32 = vmul.f32 0.6931472, %v3715_v19  ;;  %v2706_v46 = vsel %vm6909_vm11, %v2446_v8, 0.0  ;;  %v3719_v42 = vpop.eup %3718  ;;  %v8091_v19 = vld [vmem:[#allocation58_spill] sm:$0xff] }
 0x2e4   : > { %vm7007_vm9 = vmand %vm6198_vm3, %vm8062_vm15  ;;  %v2707_v34 = vsel %vm6921_vm12, %v2447_v6, 0.0  ;;  %v2708_v29 = vsel %vm6934_vm8, %v2448_v48, 0.0  ;;  %vm8066_vm0 = vcmp.ne.s32.totalorder %v5888_v55, %v8065_v38  ;;  %v2777_v51 = vadd.f32 %v2776_v59, %v2705_v23  ;;  %v8115_v23 = vld [vmem:[#allocation76_spill] sm:$0xff] }
 0x2e5   : > { %vm7024_vm7 = vmand %vm6148_vm14, %vm8066_vm0  ;;  %v2709_v14 = vsel %vm6946_vm5, %v2449_v52, 0.0  ;;  %v2780_v9 = vadd.f32 %v2707_v34, %v2706_v46  ;;  %v2450_v62 = vsub.f32 %v8069_v36, %v6778_v4  ;;  %vm8070_vm11 = vcmp.ne.s32.totalorder %v5905_v20, %v8065_v38  ;;  %v3721_v2 = vpop.eup %3720  ;;  %v8118_v16 = vld [vmem:[#allocation80_spill] sm:$0xff] }
 0x2e6   : > { %vm7037_vm12 = vmand %vm6170_vm13, %vm8070_vm11  ;;  %v2451_v57 = vsub.f32 %v8073_v40, %v6786_v13  ;;  %v2452_v61 = vsub.f32 %v8074_v18, %v2371_v7  ;;  %v2453_v25 = vsub.f32 %v8075_v49, %v2373_v12  ;;  %v2379_v54 = vmul.f32 0.6931472, %v6856_v35  ;;  %2778 = vadd.xlane.f32.xlu1 %v2777_v51  ;;  %v3723_v47 = vpop.eup %3722  ;;  %v8105_v40 = vld [vmem:[#allocation68_spill] sm:$0xff]  ;;  %v8106_v18 = vld [vmem:[#allocation70_spill] sm:$0xff] }
 0x2e7   : > { %vm8076_vm8 = vcmp.ne.s32.totalorder %v5917_v5, %v8065_v38  ;;  %v2781_v63 = vadd.f32 %v2780_v9, %v2708_v29  ;;  %v2710_v13 = vsel %vm6963_vm4, %v2450_v62, 0.0  ;;  %v2381_v27 = vmul.f32 0.6931472, %v6871_v17 }
 0x2e8   : > { %vm7051_vm5 = vmand %vm6183_vm10, %vm8076_vm8  ;;  %v2454_v35 = vsub.f32 %v8079_v33, %v6842_v50  ;;  %vm8080_vm2 = vcmp.ne.s32.totalorder %v5927_v28, %v8065_v38  ;;  %v7069_v22 = vmul.f32 0.6931472, %v3721_v2  ;;  %v2711_v39 = vsel %vm6979_vm6, %v2451_v57, 0.0  ;;  %v3725_v8 = vpop.eup %3724  ;;  %v8096_v38 = vld [vmem:[#allocation62_spill] sm:$0xff] }
 0x2e9   : > { %vm7065_vm15 = vmand %vm6198_vm3, %vm8080_vm2  ;;  %v2712_v17 = vsel %vm6994_vm1, %v2452_v61, 0.0  ;;  %v2713_v50 = vsel %vm7007_vm9, %v2453_v25, 0.0  ;;  %vm8084_vm4 = vcmp.ne.s32.totalorder %v5888_v55, %v8083_v53  ;;  %v7086_v1 = vmul.f32 0.6931472, %v3723_v47  ;;  %v3727_v0 = vpop.eup %3726 }
 0x2ea   : > { %vm7082_vm0 = vmand %vm6148_vm14, %vm8084_vm4  ;;  %v2782_v37 = vadd.f32 %v2781_v63, %v2709_v14  ;;  %v2785_v6 = vadd.f32 %v2711_v39, %v2710_v13  ;;  %v2455_v48 = vsub.f32 %v8087_v31, %v6858_v24  ;;  %vm8088_vm6 = vcmp.ne.s32.totalorder %v5905_v20, %v8083_v53  ;;  %v8116_v39 = vld [vmem:[#allocation77_spill] sm:$0xff] }
 0x2eb   : > { %vm7095_vm1 = vmand %vm6170_vm13, %vm8088_vm6  ;;  %v2456_v59 = vsub.f32 %v8091_v19, %v2379_v54  ;;  %v2457_v52 = vsub.f32 %v8092_v45, %v2381_v27  ;;  %v2714_v12 = vsel %vm7024_vm7, %v2454_v35, 0.0  ;;  %v2387_v26 = vmul.f32 0.6931472, %v6950_v30  ;;  %v8127_v19 = vld [vmem:[#allocation81_spill] sm:$0xff]  ;;  %v8128_v45 = vld [vmem:[#allocation82_spill] sm:$0xff] }
 0x2ec   : > { %vm8093_vm9 = vcmp.ne.s32.totalorder %v5917_v5, %v8083_v53  ;;  %2783 = vadd.xlane.f32.xlu0 %v2782_v37  ;;  %v2786_v46 = vadd.f32 %v2785_v6, %v2712_v17  ;;  %v2715_v34 = vsel %vm7037_vm12, %v2455_v48, 0.0  ;;  %v2389_v29 = vmul.f32 0.6931472, %v6967_v58  ;;  %v8100_v58 = vld [vmem:[#allocation66_spill] sm:$0xff] }
 0x2ed   : > { %vm7109_vm11 = vmand %vm6183_vm10, %vm8093_vm9  ;;  %v2458_v56 = vsub.f32 %v8096_v38, %v6938_v3  ;;  %vm8097_vm7 = vcmp.ne.s32.totalorder %v5927_v28, %v8083_v53  ;;  %v2716_v51 = vsel %vm7051_vm5, %v2456_v59, 0.0  ;;  %v2717_v14 = vsel %vm7065_vm15, %v2457_v52, 0.0  ;;  %v8101_v3 = vld [vmem:[#allocation75_spill] sm:$0xff] }
 0x2ee   : > { %vm7123_vm8 = vmand %vm6198_vm3, %vm8097_vm7  ;;  %v2790_v9 = vadd.f32 %v2715_v34, %v2714_v12  ;;  %v2459_v36 = vsub.f32 %v8100_v58, %v6952_v11  ;;  %vm8102_vm12 = vcmp.ne.s32.totalorder %v5888_v55, %v8101_v3  ;;  %v2787_v44 = vadd.f32 %v2786_v46, %v2713_v50  ;;  %v8117_v50 = vld [vmem:[#allocation78_spill] sm:$0xff]  ;;  %v3731_v58 = vld [vmem:[%s4196_s23 + $0x8] sm:$0xff] }
 0x2ef   : > { %vm7138_vm2 = vmand %vm6148_vm14, %vm8102_vm12  ;;  %v2460_v57 = vsub.f32 %v8105_v40, %v2387_v26  ;;  %v2461_v61 = vsub.f32 %v8106_v18, %v2389_v29  ;;  %v2718_v49 = vsel %vm7082_vm0, %v2458_v56, 0.0  ;;  %vm8107_vm5 = vcmp.ne.s32.totalorder %v5905_v20, %v8101_v3 }
 0x2f0   : > { %vm7151_vm15 = vmand %vm6170_vm13, %vm8107_vm5  ;;  %v2791_v25 = vadd.f32 %v2790_v9, %v2716_v51  ;;  %v2719_v54 = vsel %vm7095_vm1, %v2459_v36, 0.0  ;;  %v2395_v4 = vmul.f32 0.6931472, %v3717_v10  ;;  %v2397_v2 = vmul.f32 0.6931472, %v3719_v42  ;;  %2788 = vadd.xlane.f32.xlu1 %v2787_v44  ;;  %v8113_v10 = vld [vmem:[#allocation73_spill] sm:$0xff] }
 0x2f1   : > { %vm8110_vm4 = vcmp.ne.s32.totalorder %v5917_v5, %v8101_v3  ;;  %v2720_v13 = vsel %vm7109_vm11, %v2460_v57, 0.0  ;;  %v2721_v27 = vsel %vm7123_vm8, %v2461_v61, 0.0  ;;  %v2795_v33 = vadd.f32 %v2719_v54, %v2718_v49  ;;  %v3730_v9 = vld [vmem:[%s4196_s23] sm:$0xff]  ;;  %v3732_v49 = vld [vmem:[%s4196_s23 + $0x10] sm:$0xff] }
 0x2f2   : > { %vm7162_vm0 = vmand %vm6183_vm10, %vm8110_vm4  ;;  %v2462_v42 = vsub.f32 %v8113_v10, %v6998_v15  ;;  %vm8114_vm6 = vcmp.ne.s32.totalorder %v5927_v28, %v8101_v3  ;;  %v2792_v35 = vadd.f32 %v2791_v25, %v2717_v14  ;;  %v2463_v47 = vsub.f32 %v8115_v23, %v7011_v32  ;;  %v3735_v15 = vld [vmem:[%s4196_s23 + $0x28] sm:$0xff] }
 0x2f3   : > { %vm2661_vm1 = vmand %vm6198_vm3, %vm8114_vm6  ;;  %v2464_v17 = vsub.f32 %v8116_v39, %v2395_v4  ;;  %v2465_v53 = vsub.f32 %v8117_v50, %v2397_v2  ;;  %vm8119_vm9 = vcmp.ne.s32.totalorder %v5888_v55, %v8118_v16  ;;  %v2796_v37 = vadd.f32 %v2795_v33, %v2720_v13  ;;  %v3733_v2 = vld [vmem:[%s4196_s23 + $0x18] sm:$0xff] }
 0x2f4   : > { %vm7186_vm11 = vmand %vm6148_vm14, %vm8119_vm9  ;;  %v2722_v6 = vsel %vm7138_vm2, %v2462_v42, 0.0  ;;  %v2403_v31 = vmul.f32 0.6931472, %v3725_v8  ;;  %v2405_v48 = vmul.f32 0.6931472, %v3727_v0  ;;  %vm8122_vm7 = vcmp.ne.s32.totalorder %v5905_v20, %v8118_v16  ;;  %2793 = vadd.xlane.f32.xlu0 %v2792_v35  ;;  %v8125_v8 = vld [vmem:[#allocation79_spill] sm:$0xff] }
 0x2f5   : > { %vm7197_vm8 = vmand %vm6170_vm13, %vm8122_vm7  ;;  %v2723_v55 = vsel %vm7151_vm15, %v2463_v47, 0.0  ;;  %v2724_v21 = vsel %vm7162_vm0, %v2464_v17, 0.0  ;;  %v2725_v7 = vsel %vm2661_vm1, %v2465_v53, 0.0  ;;  %v2466_v0 = vsub.f32 %v8125_v8, %v7069_v22  ;;  %v8130_v22 = vld [vmem:[#allocation83_spill] sm:$0xff] }
 0x2f6   : > { %vm8126_vm14 = vcmp.ne.s32.totalorder %v5917_v5, %v8118_v16  ;;  %v2797_v20 = vadd.f32 %v2796_v37, %v2721_v27  ;;  %v2800_v41 = vadd.f32 %v2723_v55, %v2722_v6  ;;  %v2467_v59 = vsub.f32 %v8127_v19, %v7086_v1  ;;  %v3734_v47 = vld [vmem:[%s4196_s23 + $0x20] sm:$0xff]  ;;  %v3736_v55 = vld [vmem:[%s4196_s23 + $0x30] sm:$0xff]  ;;  %v3737_v19 = vld [vmem:[%s4196_s23 + $0x38] sm:$0xff] }
 0x2f7   : > { %vm2664_vm13 = vmand %vm6183_vm10, %vm8126_vm14  ;;  %v2468_v52 = vsub.f32 %v8128_v45, %v2403_v31  ;;  %vm8129_vm12 = vcmp.ne.s32.totalorder %v5927_v28, %v8118_v16  ;;  %v2469_v12 = vsub.f32 %v8130_v22, %v2405_v48  ;;  %v2726_v5 = vsel %vm7186_vm11, %v2466_v0, 0.0 }
 0x2f8   : > { %vm2665_vm2 = vmand %vm6198_vm3, %vm8129_vm12  ;;  %2798 = vadd.xlane.f32.xlu1 %v2797_v20  ;;  %v2801_v60 = vadd.f32 %v2800_v41, %v2724_v21  ;;  %v2727_v1 = vsel %vm7197_vm8, %v2467_v59, 0.0  ;;  %3728 = vrcp.f32 %v2850_v43  ;;  %v2832_v56 = vstv %s2831_s26 }
 0x2f9   : > { %v2728_v26 = vsel %vm2664_vm13, %v2468_v52, 0.0  ;;  %v2729_v24 = vsel %vm2665_vm2, %v2469_v12, 0.0  ;;  %v2805_v46 = vadd.f32 %v2727_v1, %v2726_v5  ;;  %vm7230_vm10 = vcmp.eq.s32.totalorder %v2832_v56, 1 }
 0x2fa   : > { %v2802_v34 = vadd.f32 %v2801_v60, %v2725_v7  ;;  %vm2815_vm3 = vcmp.ge.s32.totalorder %v3730_v9, 0  ;;  %vm2816_vm5 = vcmp.ge.s32.totalorder %v3731_v58, 0  ;;  %vm2900_vm0 = vcmask 7168   ;;  %v3738_v60 = vld [vmem:[%s4196_s23 + $0x40] sm:$0xff]  ;;  %v3740_v58 = vld [vmem:[%s4196_s23 + $0x50] sm:$0xff] }
 0x2fb   : > { %v2806_v29 = vadd.f32 %v2805_v46, %v2728_v26  ;;  %vm2834_vm15 = vmand %vm2815_vm3, %vm7230_vm10  ;;  %vm2817_vm6 = vcmp.ge.s32.totalorder %v3732_v49, 0  ;;  %vm2818_vm9 = vcmp.ge.s32.totalorder %v3733_v2, 0  ;;  %vm2819_vm7 = vcmp.ge.s32.totalorder %v3734_v47, 0 }
 0x2fc   : > { %2803 = vadd.xlane.f32.xlu0 %v2802_v34  ;;  %vm2835_vm4 = vmand %vm2816_vm5, %vm7230_vm10  ;;  %vm2820_vm14 = vcmp.ge.s32.totalorder %v3735_v15, 0  ;;  %vm2821_vm12 = vcmp.ge.s32.totalorder %v3736_v55, 0  ;;  %vm2822_vm3 = vcmp.ge.s32.totalorder %v3737_v19, 0 }
 0x2fd   : > { %v2807_v28 = vadd.f32 %v2806_v29, %v2729_v24  ;;  %vm2836_vm1 = vmand %vm2817_vm6, %vm7230_vm10 }
 0x2fe   : > { %vm2837_vm11 = vmand %vm2818_vm9, %vm7230_vm10  ;;  %vm2825_vm9 = vcmp.ge.s32.totalorder %v3740_v58, 0 }
 0x2ff   : > { %2808 = vadd.xlane.f32.xlu1 %v2807_v28  ;;  %vm2838_vm8 = vmand %vm2819_vm7, %vm7230_vm10  ;;  %v3739_v28 = vld [vmem:[%s4196_s23 + $0x48] sm:$0xff] }
 0x300   : > { %vm2839_vm13 = vmand %vm2820_vm14, %vm7230_vm10  ;;  %vm2824_vm6 = vcmp.ge.s32.totalorder %v3739_v28, 0 }
 0x301   : > { %vm2840_vm2 = vmand %vm2821_vm12, %vm7230_vm10 }
 0x302   : > { %v7227_v38 = vpop.eup %3728  ;;  %vm2841_vm5 = vmand %vm2822_vm3, %vm7230_vm10 }
 0x331   : > { %v2734_v30 = vpop.xlane.xlu0 %2733 }
 0x332   : > { %v2852_v51 = vmul.f32 %v7227_v38, %v2734_v30 }
 0x334   : > { %v2868_v36 = vsub.f32 0.0, %v2852_v51 }
 0x336   : > { %v2884_v44 = vsel %vm2834_vm15, %v2868_v36, 0.0  ;;  %vm2823_vm15 = vcmp.ge.s32.totalorder %v3738_v60, 0 }
 0x337   : > { %v2901_v18 = vsel %vm2900_vm0, %v2884_v44, 0.0 }
 0x338   : > { %v2739_v3 = vpop.xlane.xlu1 %2738 }
 0x339   : > { %v2853_v62 = vmul.f32 %v7227_v38, %v2739_v3 }
 0x33b   : > { %v2869_v40 = vsub.f32 0.0, %v2853_v62 }
 0x33d   : > { %v2885_v57 = vsel %vm2835_vm4, %v2869_v40, 0.0  ;;  %vm2842_vm4 = vmand %vm2823_vm15, %vm7230_vm10 }
 0x33e   : > { %v2902_v61 = vsel %vm2900_vm0, %v2885_v57, 0.0  ;;  %v3741_v57 = vld [vmem:[%s4196_s23 + $0x58] sm:$0xff] }
 0x33f   : > { %v2903_v11 = vadd.f32 %v2902_v61, %v2901_v18  ;;  %v2744_v25 = vpop.xlane.xlu0 %2743  ;;  %vm2826_vm7 = vcmp.ge.s32.totalorder %v3741_v57, 0 }
 0x340   : > { %v2854_v54 = vmul.f32 %v7227_v38, %v2744_v25 }
 0x342   : > { %v2870_v4 = vsub.f32 0.0, %v2854_v54  ;;  %v3742_v54 = vld [vmem:[%s4196_s23 + $0x60] sm:$0xff] }
 0x343   : > { %vm2827_vm14 = vcmp.ge.s32.totalorder %v3742_v54, 0 }
 0x344   : > { %v2886_v63 = vsel %vm2836_vm1, %v2870_v4, 0.0  ;;  %vm2843_vm1 = vmand %vm2824_vm6, %vm7230_vm10 }
 0x345   : > { %v2904_v27 = vsel %vm2900_vm0, %v2886_v63, 0.0 }
 0x346   : > { %v2905_v10 = vadd.f32 %v2904_v27, %v2903_v11 }
 0x347   : > { %v2749_v13 = vpop.xlane.xlu1 %2748 }
 0x348   : > { %v2855_v33 = vmul.f32 %v7227_v38, %v2749_v13 }
 0x34a   : > { %v2871_v42 = vsub.f32 0.0, %v2855_v33  ;;  %v3743_v33 = vld [vmem:[%s4196_s23 + $0x68] sm:$0xff] }
 0x34b   : > { %vm2828_vm12 = vcmp.ge.s32.totalorder %v3743_v33, 0 }
 0x34c   : > { %v2887_v35 = vsel %vm2837_vm11, %v2871_v42, 0.0  ;;  %vm2844_vm11 = vmand %vm2825_vm9, %vm7230_vm10 }
 0x34d   : > { %v2906_v23 = vsel %vm2900_vm0, %v2887_v35, 0.0 }
 0x34e   : > { %v2907_v39 = vadd.f32 %v2906_v23, %v2905_v10 }
 0x351   : > { %v2754_v17 = vpop.xlane.xlu0 %2753 }
 0x352   : > { %v2856_v50 = vmul.f32 %v7227_v38, %v2754_v17 }
 0x354   : > { %v2872_v53 = vsub.f32 0.0, %v2856_v50  ;;  %v3744_v50 = vld [vmem:[%s4196_s23 + $0x70] sm:$0xff] }
 0x355   : > { %vm2829_vm3 = vcmp.ge.s32.totalorder %v3744_v50, 0 }
 0x356   : > { %v2888_v16 = vsel %vm2838_vm8, %v2872_v53, 0.0  ;;  %vm2845_vm8 = vmand %vm2826_vm7, %vm7230_vm10 }
 0x357   : > { %v2908_v37 = vsel %vm2900_vm0, %v2888_v16, 0.0 }
 0x358   : > { %v2909_v6 = vadd.f32 %v2908_v37, %v2907_v39 }
 0x359   : > { %v2759_v31 = vpop.xlane.xlu1 %2758 }
 0x35a   : > { %v2857_v48 = vmul.f32 %v7227_v38, %v2759_v31 }
 0x35c   : > { %v2873_v32 = vsub.f32 0.0, %v2857_v48  ;;  %v3745_v48 = vld [vmem:[%s4196_s23 + $0x78] sm:$0xff] }
 0x35d   : > { %vm2830_vm15 = vcmp.ge.s32.totalorder %v3745_v48, 0 }
 0x35e   : > { %v2889_v21 = vsel %vm2839_vm13, %v2873_v32, 0.0  ;;  %vm2846_vm13 = vmand %vm2827_vm14, %vm7230_vm10 }
 0x35f   : > { %v2764_v7 = vpop.xlane.xlu0 %2763  ;;  %v2910_v8 = vsel %vm2900_vm0, %v2889_v21, 0.0 }
 0x360   : > { %v2858_v0 = vmul.f32 %v7227_v38, %v2764_v7  ;;  %v2911_v20 = vadd.f32 %v2910_v8, %v2909_v6 }
 0x362   : > { %v2874_v41 = vsub.f32 0.0, %v2858_v0 }
 0x364   : > { %v2890_v59 = vsel %vm2840_vm2, %v2874_v41, 0.0  ;;  %vm2847_vm2 = vmand %vm2828_vm12, %vm7230_vm10 }
 0x365   : > { %v2912_v45 = vsel %vm2900_vm0, %v2890_v59, 0.0 }
 0x366   : > { %v2769_v52 = vpop.xlane.xlu1 %2768  ;;  %v2913_v22 = vadd.f32 %v2912_v45, %v2911_v20 }
 0x367   : > { %v2859_v12 = vmul.f32 %v7227_v38, %v2769_v52 }
 0x369   : > { %v2875_v5 = vsub.f32 0.0, %v2859_v12 }
 0x36b   : > { %v2891_v1 = vsel %vm2841_vm5, %v2875_v5, 0.0  ;;  %vm2848_vm5 = vmand %vm2829_vm3, %vm7230_vm10 }
 0x36c   : > { %v2914_v26 = vsel %vm2900_vm0, %v2891_v1, 0.0  ;;  %v2774_v24 = vpop.xlane.xlu0 %2773 }
 0x36d   : > { %v2915_v46 = vadd.f32 %v2914_v26, %v2913_v22  ;;  %v2860_v34 = vmul.f32 %v7227_v38, %v2774_v24 }
 0x36f   : > { %v2876_v29 = vsub.f32 0.0, %v2860_v34 }
 0x371   : > { %v2892_v43 = vsel %vm2842_vm4, %v2876_v29, 0.0  ;;  %vm2849_vm4 = vmand %vm2830_vm15, %vm7230_vm10 }
 0x372   : > { %v2916_v56 = vsel %vm2900_vm0, %v2892_v43, 0.0 }
 0x373   : > { %v2779_v30 = vpop.xlane.xlu1 %2778  ;;  %v2917_v51 = vadd.f32 %v2916_v56, %v2915_v46 }
 0x374   : > { %v2861_v9 = vmul.f32 %v7227_v38, %v2779_v30 }
 0x376   : > { %v2877_v36 = vsub.f32 0.0, %v2861_v9 }
 0x378   : > { %v2893_v62 = vsel %vm2843_vm1, %v2877_v36, 0.0 }
 0x379   : > { %v2784_v3 = vpop.xlane.xlu0 %2783  ;;  %v2918_v40 = vsel %vm2900_vm0, %v2893_v62, 0.0 }
 0x37a   : > { %v2862_v44 = vmul.f32 %v7227_v38, %v2784_v3  ;;  %v2919_v18 = vadd.f32 %v2918_v40, %v2917_v51 }
 0x37c   : > { %v2878_v61 = vsub.f32 0.0, %v2862_v44 }
 0x37d   : > { %v2789_v49 = vpop.xlane.xlu1 %2788 }
 0x37e   : > { %v2894_v11 = vsel %vm2844_vm11, %v2878_v61, 0.0  ;;  %v2863_v25 = vmul.f32 %v7227_v38, %v2789_v49 }
 0x37f   : > { %v2920_v4 = vsel %vm2900_vm0, %v2894_v11, 0.0 }
 0x380   : > { %v2921_v2 = vadd.f32 %v2920_v4, %v2919_v18  ;;  %v2879_v63 = vsub.f32 0.0, %v2863_v25 }
 0x381   : > { %v2794_v13 = vpop.xlane.xlu0 %2793 }
 0x382   : > { %v2864_v27 = vmul.f32 %v7227_v38, %v2794_v13  ;;  %v2895_v10 = vsel %vm2845_vm8, %v2879_v63, 0.0 }
 0x383   : > { %v2922_v42 = vsel %vm2900_vm0, %v2895_v10, 0.0 }
 0x384   : > { %v2880_v35 = vsub.f32 0.0, %v2864_v27  ;;  %v2923_v47 = vadd.f32 %v2922_v42, %v2921_v2 }
 0x385   : > { %v2799_v23 = vpop.xlane.xlu1 %2798 }
 0x386   : > { %v2865_v39 = vmul.f32 %v7227_v38, %v2799_v23  ;;  %v2896_v17 = vsel %vm2846_vm13, %v2880_v35, 0.0 }
 0x387   : > { %v2924_v53 = vsel %vm2900_vm0, %v2896_v17, 0.0 }
 0x388   : > { %v2881_v16 = vsub.f32 0.0, %v2865_v39  ;;  %v2925_v15 = vadd.f32 %v2924_v53, %v2923_v47 }
 0x389   : > { %v2804_v37 = vpop.xlane.xlu0 %2803 }
 0x38a   : > { %v2897_v6 = vsel %vm2847_vm2, %v2881_v16, 0.0  ;;  %v2866_v31 = vmul.f32 %v7227_v38, %v2804_v37 }
 0x38b   : > { %v2926_v32 = vsel %vm2900_vm0, %v2897_v6, 0.0 }
 0x38c   : > { %v2927_v55 = vadd.f32 %v2926_v32, %v2925_v15  ;;  %v2882_v21 = vsub.f32 0.0, %v2866_v31  ;;  %v2809_v7 = vpop.xlane.xlu1 %2808 }
 0x38d   : > { %v2867_v8 = vmul.f32 %v7227_v38, %v2809_v7 }
 0x38e   : > { %v2898_v0 = vsel %vm2848_vm5, %v2882_v21, 0.0 }
 0x38f   : > { %v2928_v20 = vsel %vm2900_vm0, %v2898_v0, 0.0  ;;  %v2883_v41 = vsub.f32 0.0, %v2867_v8 }
 0x390   : > { %v2929_v19 = vadd.f32 %v2928_v20, %v2927_v55 }
 0x391   : > { %v2899_v59 = vsel %vm2849_vm4, %v2883_v41, 0.0 }
 0x392   : > { %v2930_v45 = vsel %vm2900_vm0, %v2899_v59, 0.0 }
 0x393   : > { %v2931_v52 = vadd.f32 %v2930_v45, %v2929_v19 }
 0x395   : > { %2932 = vadd.xlane.f32.xlu0 %v2931_v52 }
 0x422   : > { %v2933_v22 = vpop.xlane.xlu0 %2932 }
 0x423   : > { %v2934_v12 = vrot.slane %v2933_v22, 4 }
 0x425   : > { %v2935_v5 = vadd.f32 %v2934_v12, %v2933_v22 }
 0x427   : > { %v2936_v60 = vrot.slane %v2935_v5, 2 }
 0x429   : > { %v2937_v38 = vadd.f32 %v2936_v60, %v2935_v5 }
 0x42b   : > { %v2938_v14 = vrot.slane %v2937_v38, 1 }
 0x42d   : > { %v2939_v1 = vadd.f32 %v2938_v14, %v2937_v38 }
 0x42f   : > { %3196 = vpush %v2939_v1 }
 0x460   : > { %s3197_s21 = spop %3196 }
 0x461   : > { %v2941_v26 = vstv %s3197_s21 }
 0x462   : > { %2942 = vst [vmem:[%s262_s20] sm:$0xff] %v2941_v26 }
 0x463   : > { %3819 = shalt.err (!%p3816_p8)
}
 0x464   : > { %s3820_s9 = scalar_lea.hbm %s7321_s17, 128  ;;  %s3824_s26 = scalar_lea.hbm %s7367_s8, 512 }
 0x465   : > { %p3821_p10 = scmp.ne.s32.totalorder %s7321_s17, %s3820_s9  ;;  %p3825_p2 = scmp.lt.u32.totalorder %s7321_s17, %s7367_s8 }
 0x466   : > { %p3826_p3 = scmp.lt.u32.totalorder %s3824_s26, %s3820_s9  ;;  %p3828_p7 = scmp.lt.u32.totalorder %s3820_s9, %s7321_s17 }
 0x467   : > { %p3822_p12 = pnand %p3821_p10, %p8133_p9 }
 0x468   : > { %p3827_p6 = por %p3826_p3, %p3825_p2 }
 0x469   : > { %p3823_p11 = pneg %p3822_p12 }
 0x46a   : > { %p3829_p13 = por %p3828_p7, %p3827_p6 }
 0x46c   : > { %p3830_p0 = pnand %p3829_p13, %p3823_p11 }
 0x46e   : > { %3833 = shalt.err (!%p3830_p0)
}
 0x46f   : > { %3202 = dma.vmem_to_hbm [thread:$0]  (%p8133_p9), %s7314_s28, 128, %s7321_s17, %s2944_s27  }
 0x470 PF: > { %p3214_p1 = scmp.ge.s32.totalorder %s3874_s30, 2  ;;  %s2969_s20 = sand.u32 1, %s3862_s1  }
 0x471   : > { %p8134_p4 = scmp.ne.s32.totalorder %s7489_s16, 0  ;;  %s2970_s21 = scalar_lea.sflag [#allocation8], %s2969_s20 }
 0x473   : > { %p3209_p5 = pnand %p3214_p1, %p8134_p4 }
 0x475   : > { %3857 = dma.done.wait (!%p3209_p5), %s2970_s21, 128  }
 0x476   : > { %3859 = vsyncadd (!%p3209_p5), %s2970_s21, 4294967168  ;;  %p29_p8 = scmp.ge.s32.totalorder %s3981_s11, 6   ;;  %s8135_s1 = smov %s3866_s29 }
 0x477   : > { %s8136_s29 = smov %s3870_s2  ;;  %s8137_s2 = smov %s3992_s14 }
 0x478   : > { %s8138_s30 = smov %s3981_s11  ;;  %31 = sbr.rel (!%p29_p8) target bundleno = 33 (0x21), region = 84 }
 0x47f   :  { %2975 = vsyncpa [#allocation7], 1 }
 0x480   :  { %2977 = vsyncpa [#allocation7 + $0x1], 1 }
 0x481   :  { %2978 = vsyncpa [#allocation8], 1 }
 0x482   :  { %2980 = vsyncpa [#allocation8 + $0x1], 1 }

</bundles_post_ra>
